<compile_context>
chip_gen: v7x
topology: tpu7x:2x2x1
jax: 0.10.0
libtpu: 0.0.40
codegen_flags: <defaults>
</compile_context>

<pallas_src>
import functools
import math

import jax
import jax.numpy as jnp
import numpy as np
from jax.experimental import pallas as pl
from jax.experimental.pallas import tpu as pltpu

EPS = 1e-5  # layernorm_epsilon
_VMEM_LIMIT = 64 * 1024 * 1024


# ----------------------------- kernel helpers -----------------------------

def _layernorm(x, g, b):
    mu = jnp.mean(x, axis=-1, keepdims=True)
    var = jnp.mean((x - mu) ** 2, axis=-1, keepdims=True)
    return (x - mu) * jax.lax.rsqrt(var + EPS) * g + b


def _gelu(x):
    # GLM gelu_impl (tanh approximation)
    return 0.5 * x * (1.0 + jnp.tanh(0.7978845608028654 * x * (1.0 + 0.044715 * x * x)))


# ----------------------------- Pallas kernels -----------------------------

def glm_block_kernel(num_heads,
                     x_ref, bias_ref,
                     ln1_g, ln1_b, qkv_w, qkv_b, dense_w, dense_b,
                     ln2_g, ln2_b, h4h_w, h4h_b, fourh_w, fourh_b,
                     o_ref):
    """One GLMBlock (pre-LN self-attention + pre-LN MLP, residuals) for one batch row."""
    S, H = x_ref.shape[1], x_ref.shape[2]
    nh = num_heads
    dh = H // nh
    cdt = qkv_w.dtype                       # bf16 compute dtype for MXU inputs
    x = x_ref[0]                            # (S, H) fp32
    bias = bias_ref[0, 0]                   # (S, S) additive mask bias, fp32

    # ---- self attention (pre-LN) ----
    ln1 = _layernorm(x, ln1_g[0], ln1_b[0])
    qkv = jnp.dot(ln1.astype(cdt), qkv_w[...],
                  preferred_element_type=jnp.float32) + qkv_b[0]          # (S, 3H)

    inv_sqrt_dh = 1.0 / math.sqrt(dh)
    q = (qkv[:, :H] * inv_sqrt_dh).reshape(S, nh, dh)   # scale folded into Q
    k = qkv[:, H:2 * H].reshape(S, nh, dh)
    v = qkv[:, 2 * H:].reshape(S, nh, dh)

    # batched-over-heads score / context contractions (single MXU call each)
    scores = jnp.einsum('qhd,khd->hqk', q.astype(cdt), k.astype(cdt),
                        preferred_element_type=jnp.float32)               # (nh, S, S)
    scores = scores + bias[None]
    scores = scores - jnp.max(scores, axis=-1, keepdims=True)
    p = jnp.exp(scores)
    probs = p * pl.reciprocal(jnp.sum(p, axis=-1, keepdims=True), approx=True)
    ctx = jnp.einsum('hqk,khd->qhd', probs.astype(cdt), v.astype(cdt),
                     preferred_element_type=jnp.float32).reshape(S, H)    # (S, H)

    attn_out = jnp.dot(ctx.astype(cdt), dense_w[...],
                       preferred_element_type=jnp.float32) + dense_b[0]
    ln_input = x + attn_out

    # ---- MLP (pre-LN) ----
    ln2 = _layernorm(ln_input, ln2_g[0], ln2_b[0])
    h4 = jnp.dot(ln2.astype(cdt), h4h_w[...],
                 preferred_element_type=jnp.float32) + h4h_b[0]
    h4 = _gelu(h4)
    mlp_out = jnp.dot(h4.astype(cdt), fourh_w[...],
                      preferred_element_type=jnp.float32) + fourh_b[0]

    o_ref[0] = ln_input + mlp_out


def final_kernel(x_ref, lnf_g, lnf_b, embt_ref, o_ref):
    """Final layernorm + one vocab tile of logits = LN(h) @ word_embeddings.T (tied)."""
    x = x_ref[0]                                           # (S, H) fp32
    y = _layernorm(x, lnf_g[0], lnf_b[0])
    o_ref[0] = jnp.dot(y.astype(embt_ref.dtype), embt_ref[...],
                       preferred_element_type=jnp.float32)


# ----------------------------- wrappers -----------------------------

def _const_spec(shape):
    nd = len(shape)
    return pl.BlockSpec(shape, lambda *g, _nd=nd: (0,) * _nd)


def glm_block(x, bias, p, num_heads):
    B, S, H = x.shape
    bf = jnp.bfloat16
    weights = [p["ln1_g"], p["ln1_b"],
               p["qkv_w"].astype(bf), p["qkv_b"],
               p["dense_w"].astype(bf), p["dense_b"],
               p["ln2_g"], p["ln2_b"],
               p["h4h_w"].astype(bf), p["h4h_b"],
               p["4h_w"].astype(bf), p["4h_b"]]
    in_specs = [pl.BlockSpec((1, S, H), lambda b: (b, 0, 0)),
                pl.BlockSpec((1, 1, S, S), lambda b: (0, 0, 0, 0))]
    in_specs += [_const_spec(w.shape) for w in weights]
    return pl.pallas_call(
        functools.partial(glm_block_kernel, num_heads),
        grid=(B,),
        in_specs=in_specs,
        out_specs=pl.BlockSpec((1, S, H), lambda b: (b, 0, 0)),
        out_shape=jax.ShapeDtypeStruct((B, S, H), jnp.float32),
        compiler_params=pltpu.CompilerParams(
            dimension_semantics=("parallel",),
            vmem_limit_bytes=_VMEM_LIMIT),
    )(x, bias, *weights)


def final_projection(x, lnf_g, lnf_b, emb_t):
    B, S, H = x.shape
    V = emb_t.shape[1]
    # Tile the vocab dimension (lane-dense, pipelineable) if it is large.
    tv = V
    for cand in (4096, 2048, 1024, 512, 256, 128):
        if V % cand == 0:
            tv = cand
            break
    in_specs = [pl.BlockSpec((1, S, H), lambda b, v: (b, 0, 0)),
                pl.BlockSpec(lnf_g.shape, lambda b, v: (0, 0)),
                pl.BlockSpec(lnf_b.shape, lambda b, v: (0, 0)),
                pl.BlockSpec((H, tv), lambda b, v: (0, v))]
    return pl.pallas_call(
        final_kernel,
        grid=(B, V // tv),
        in_specs=in_specs,
        out_specs=pl.BlockSpec((1, S, tv), lambda b, v: (b, 0, v)),
        out_shape=jax.ShapeDtypeStruct((B, S, V), jnp.float32),
        compiler_params=pltpu.CompilerParams(
            dimension_semantics=("parallel", "parallel"),
            vmem_limit_bytes=_VMEM_LIMIT),
    )(x, lnf_g, lnf_b, emb_t)


def glm_forward(params, input_ids, position_ids, sep, num_heads):
    """GLMModel.forward with scalar attention_mask (= sep), block position encoding,
    max_memory_length = 0, output_predict = True."""
    B, S = input_ids.shape
    # word embeddings + position + block-position embeddings (plain-JAX gathers)
    h = jnp.take(params["word_emb"], input_ids, axis=0)
    pos_ids, block_pos_ids = position_ids[:, 0], position_ids[:, 1]
    h = h + jnp.take(params["pos_emb"], pos_ids, axis=0)
    h = h + jnp.take(params["block_pos_emb"], block_pos_ids, axis=0)

    # build_mask_matrix for scalar sep, folded into an additive bias:
    # 0 where attended, -10000 where masked (matches scores*m - 10000*(1-m) after softmax).
    m = jnp.tril(jnp.ones((S, S), jnp.float32))
    m = m.at[:, :sep].set(1.0)
    bias = ((m - 1.0) * 10000.0)[None, None]        # (1, 1, S, S)

    for layer_p in params["layers"]:
        h = glm_block(h, bias, layer_p, num_heads)

    # tied embedding logits: pre-transpose once to (H, V) bf16, no in-kernel .T
    emb_t = params["word_emb"].T.astype(jnp.bfloat16)
    logits = final_projection(h, params["lnf_g"], params["lnf_b"], emb_t)
    # hidden_states: max_memory_length == 0 and return_memory=False -> []
    return {"logits": logits, "hidden_states": []}


# ------------------- reference (plain JAX, same bf16/f32 precision) -------------------

def _ref_block(x, bias, p, nh):
    bf = jnp.bfloat16
    B, S, H = x.shape
    dh = H // nh
    inv_sqrt_dh = 1.0 / math.sqrt(dh)
    ln = _layernorm(x, p["ln1_g"][0], p["ln1_b"][0])
    qkv = jnp.dot(ln.astype(bf), p["qkv_w"].astype(bf),
                  preferred_element_type=jnp.float32) + p["qkv_b"][0]
    q = (qkv[..., :H] * inv_sqrt_dh).reshape(B, S, nh, dh)
    k = qkv[..., H:2 * H].reshape(B, S, nh, dh)
    v = qkv[..., 2 * H:].reshape(B, S, nh, dh)
    scores = jnp.einsum("bqhd,bkhd->bhqk", q.astype(bf), k.astype(bf),
                        preferred_element_type=jnp.float32) + bias
    probs = jax.nn.softmax(scores, axis=-1)
    ctx = jnp.einsum("bhqk,bkhd->bqhd", probs.astype(bf), v.astype(bf),
                     preferred_element_type=jnp.float32).reshape(B, S, H)
    attn = jnp.dot(ctx.astype(bf), p["dense_w"].astype(bf),
                   preferred_element_type=jnp.float32) + p["dense_b"][0]
    ln_input = x + attn
    y = _layernorm(ln_input, p["ln2_g"][0], p["ln2_b"][0])
    h4 = _gelu(jnp.dot(y.astype(bf), p["h4h_w"].astype(bf),
                       preferred_element_type=jnp.float32) + p["h4h_b"][0])
    mlp = jnp.dot(h4.astype(bf), p["4h_w"].astype(bf),
                  preferred_element_type=jnp.float32) + p["4h_b"][0]
    return ln_input + mlp


def reference_forward(params, input_ids, position_ids, sep, num_heads):
    B, S = input_ids.shape
    h = jnp.take(params["word_emb"], input_ids, axis=0)
    h = h + jnp.take(params["pos_emb"], position_ids[:, 0], axis=0)
    h = h + jnp.take(params["block_pos_emb"], position_ids[:, 1], axis=0)
    m = jnp.tril(jnp.ones((S, S), jnp.float32))
    m = m.at[:, :sep].set(1.0)
    bias = ((m - 1.0) * 10000.0)[None, None]
    for layer_p in params["layers"]:
        h = _ref_block(h, bias, layer_p, num_heads)
    y = _layernorm(h, params["lnf_g"][0], params["lnf_b"][0])
    emb_t = params["word_emb"].T.astype(jnp.bfloat16)
    return jnp.dot(y.astype(jnp.bfloat16), emb_t, preferred_element_type=jnp.float32)


# ----------------------------- parameter init -----------------------------

def init_params(key, num_layers, vocab_size, hidden_size, max_sequence_length):
    std = 0.02
    out_std = std / math.sqrt(2.0 * num_layers)  # scaled_init_method for output weights
    keys = jax.random.split(key, 3 + 4 * num_layers)
    H = hidden_size
    params = {
        "word_emb": std * jax.random.normal(keys[0], (vocab_size, H), jnp.float32),
        "pos_emb": std * jax.random.normal(keys[1], (max_sequence_length + 1, H), jnp.float32),
        "block_pos_emb": std * jax.random.normal(keys[2], (max_sequence_length + 1, H), jnp.float32),
        "lnf_g": jnp.ones((1, H), jnp.float32),
        "lnf_b": jnp.zeros((1, H), jnp.float32),
        "layers": [],
    }
    for l in range(num_layers):
        k0, k1, k2, k3 = keys[3 + 4 * l: 3 + 4 * (l + 1)]
        params["layers"].append({
            "ln1_g": jnp.ones((1, H), jnp.float32),
            "ln1_b": jnp.zeros((1, H), jnp.float32),
            "qkv_w": std * jax.random.normal(k0, (H, 3 * H), jnp.float32),
            "qkv_b": jnp.zeros((1, 3 * H), jnp.float32),
            "dense_w": out_std * jax.random.normal(k1, (H, H), jnp.float32),
            "dense_b": jnp.zeros((1, H), jnp.float32),
            "ln2_g": jnp.ones((1, H), jnp.float32),
            "ln2_b": jnp.zeros((1, H), jnp.float32),
            "h4h_w": std * jax.random.normal(k2, (H, 4 * H), jnp.float32),
            "h4h_b": jnp.zeros((1, 4 * H), jnp.float32),
            "4h_w": out_std * jax.random.normal(k3, (4 * H, H), jnp.float32),
            "4h_b": jnp.zeros((1, H), jnp.float32),
        })
    return params


# ----------------------------- main -----------------------------

if __name__ == "__main__":
    # Small GLM config
    NUM_LAYERS = 2
    VOCAB = 128
    HIDDEN = 128
    NUM_HEADS = 4
    MAX_SEQ = 16
    B, S = 2, 8
    SEP = 4  # scalar attention_mask (separation position)

    key = jax.random.PRNGKey(0)
    pkey, ikey = jax.random.split(key)
    params = init_params(pkey, NUM_LAYERS, VOCAB, HIDDEN, MAX_SEQ)

    input_ids = jax.random.randint(ikey, (B, S), 0, VOCAB, dtype=jnp.int32)
    # position_ids: [B, 2, S] -> (token positions, block positions)
    pos = jnp.broadcast_to(jnp.arange(S, dtype=jnp.int32), (B, S))
    block_pos = jnp.zeros((B, S), jnp.int32)
    position_ids = jnp.stack([pos, block_pos], axis=1)

    out = glm_forward(params, input_ids, position_ids, SEP, NUM_HEADS)
    logits = jax.block_until_ready(out["logits"])
    assert logits.shape == (B, S, VOCAB)
    assert bool(jnp.all(jnp.isfinite(logits)))

    # cross-check against a pure-JAX reference that mirrors the kernel's precision
    # policy (bf16 MXU inputs / fp32 accumulation, fp32 elementwise math)
    ref = jax.block_until_ready(
        reference_forward(params, input_ids, position_ids, SEP, NUM_HEADS))
    np.testing.assert_allclose(np.asarray(logits), np.asarray(ref), rtol=1e-2, atol=1e-2)

    print("KERNEL_OK")
</pallas_src>

<mosaic_0001>
module attributes {stable_mosaic.version = 11 : i64} {
  func.func @glm_block_kernel(%arg0: i32, %arg1: memref<1x8x128xf32, #tpu.memory_space<vmem>>, %arg2: memref<1x1x8x8xf32, #tpu.memory_space<vmem>>, %arg3: memref<1x128xf32, #tpu.memory_space<vmem>>, %arg4: memref<1x128xf32, #tpu.memory_space<vmem>>, %arg5: memref<128x384xbf16, #tpu.memory_space<vmem>>, %arg6: memref<1x384xf32, #tpu.memory_space<vmem>>, %arg7: memref<128x128xbf16, #tpu.memory_space<vmem>>, %arg8: memref<1x128xf32, #tpu.memory_space<vmem>>, %arg9: memref<1x128xf32, #tpu.memory_space<vmem>>, %arg10: memref<1x128xf32, #tpu.memory_space<vmem>>, %arg11: memref<128x512xbf16, #tpu.memory_space<vmem>>, %arg12: memref<1x512xf32, #tpu.memory_space<vmem>>, %arg13: memref<512x128xbf16, #tpu.memory_space<vmem>>, %arg14: memref<1x128xf32, #tpu.memory_space<vmem>>, %arg15: memref<1x8x128xf32, #tpu.memory_space<vmem>>) attributes {dimension_semantics = [#tpu.dimension_semantics<parallel>], iteration_bounds = array<i64: 2>, scalar_prefetch = 0 : i64, scratch_operands = 0 : i64, tpu.core_type = #tpu.core_type<tc>, window_params = [{transform_indices = @transform_0, window_bounds = array<i64: 1, 8, 128>}, {pipeline_mode = #tpu.pipeline_mode<synchronous>, transform_indices = @transform_1, window_bounds = array<i64: 1, 1, 8, 8>}, {pipeline_mode = #tpu.pipeline_mode<synchronous>, transform_indices = @transform_2, window_bounds = array<i64: 1, 128>}, {pipeline_mode = #tpu.pipeline_mode<synchronous>, transform_indices = @transform_3, window_bounds = array<i64: 1, 128>}, {pipeline_mode = #tpu.pipeline_mode<synchronous>, transform_indices = @transform_4, window_bounds = array<i64: 128, 384>}, {pipeline_mode = #tpu.pipeline_mode<synchronous>, transform_indices = @transform_5, window_bounds = array<i64: 1, 384>}, {pipeline_mode = #tpu.pipeline_mode<synchronous>, transform_indices = @transform_6, window_bounds = array<i64: 128, 128>}, {pipeline_mode = #tpu.pipeline_mode<synchronous>, transform_indices = @transform_7, window_bounds = array<i64: 1, 128>}, {pipeline_mode = #tpu.pipeline_mode<synchronous>, transform_indices = @transform_8, window_bounds = array<i64: 1, 128>}, {pipeline_mode = #tpu.pipeline_mode<synchronous>, transform_indices = @transform_9, window_bounds = array<i64: 1, 128>}, {pipeline_mode = #tpu.pipeline_mode<synchronous>, transform_indices = @transform_10, window_bounds = array<i64: 128, 512>}, {pipeline_mode = #tpu.pipeline_mode<synchronous>, transform_indices = @transform_11, window_bounds = array<i64: 1, 512>}, {pipeline_mode = #tpu.pipeline_mode<synchronous>, transform_indices = @transform_12, window_bounds = array<i64: 512, 128>}, {pipeline_mode = #tpu.pipeline_mode<synchronous>, transform_indices = @transform_13, window_bounds = array<i64: 1, 128>}, {transform_indices = @transform_14, window_bounds = array<i64: 1, 8, 128>}]} {
    %c0 = arith.constant 0 : index
    %c0_0 = arith.constant 0 : index
    %c0_1 = arith.constant 0 : index
    %0 = vector.load %arg1[%c0, %c0_0, %c0_1] : memref<1x8x128xf32, #tpu.memory_space<vmem>>, vector<1x8x128xf32>
    %1 = vector.shape_cast %0 : vector<1x8x128xf32> to vector<8x128xf32>
    %c0_2 = arith.constant 0 : index
    %c0_3 = arith.constant 0 : index
    %c0_4 = arith.constant 0 : index
    %c0_5 = arith.constant 0 : index
    %2 = vector.load %arg2[%c0_2, %c0_3, %c0_4, %c0_5] : memref<1x1x8x8xf32, #tpu.memory_space<vmem>>, vector<1x1x8x8xf32>
    %3 = vector.shape_cast %2 : vector<1x1x8x8xf32> to vector<8x8xf32>
    %c0_6 = arith.constant 0 : index
    %c0_7 = arith.constant 0 : index
    %4 = vector.load %arg3[%c0_6, %c0_7] : memref<1x128xf32, #tpu.memory_space<vmem>>, vector<1x128xf32>
    %5 = vector.shape_cast %4 : vector<1x128xf32> to vector<128xf32>
    %c0_8 = arith.constant 0 : index
    %c0_9 = arith.constant 0 : index
    %6 = vector.load %arg4[%c0_8, %c0_9] : memref<1x128xf32, #tpu.memory_space<vmem>>, vector<1x128xf32>
    %7 = vector.shape_cast %6 : vector<1x128xf32> to vector<128xf32>
    %cst = arith.constant dense<0.000000e+00> : vector<8xf32>
    %8 = vector.multi_reduction <add>, %1, %cst [1] : vector<8x128xf32> to vector<8xf32>
    %9 = vector.shape_cast %8 : vector<8xf32> to vector<8x1xf32>
    %cst_10 = arith.constant 1.280000e+02 : f32
    %10 = vector.broadcast %cst_10 : f32 to vector<8x1xf32>
    %11 = arith.divf %9, %10 : vector<8x1xf32>
    %12 = vector.broadcast %11 : vector<8x1xf32> to vector<8x128xf32>
    %13 = arith.subf %1, %12 : vector<8x128xf32>
    %14 = arith.mulf %13, %13 : vector<8x128xf32>
    %cst_11 = arith.constant dense<0.000000e+00> : vector<8xf32>
    %15 = vector.multi_reduction <add>, %14, %cst_11 [1] : vector<8x128xf32> to vector<8xf32>
    %16 = vector.shape_cast %15 : vector<8xf32> to vector<8x1xf32>
    %cst_12 = arith.constant 1.280000e+02 : f32
    %17 = vector.broadcast %cst_12 : f32 to vector<8x1xf32>
    %18 = arith.divf %16, %17 : vector<8x1xf32>
    %19 = vector.broadcast %11 : vector<8x1xf32> to vector<8x128xf32>
    %20 = arith.subf %1, %19 : vector<8x128xf32>
    %cst_13 = arith.constant 9.99999974E-6 : f32
    %21 = vector.broadcast %cst_13 : f32 to vector<8x1xf32>
    %22 = arith.addf %18, %21 : vector<8x1xf32>
    %23 = math.rsqrt %22 : vector<8x1xf32>
    %24 = vector.broadcast %23 : vector<8x1xf32> to vector<8x128xf32>
    %25 = arith.mulf %20, %24 : vector<8x128xf32>
    %26 = vector.shape_cast %5 : vector<128xf32> to vector<1x128xf32>
    %27 = vector.broadcast %26 : vector<1x128xf32> to vector<8x128xf32>
    %28 = arith.mulf %25, %27 : vector<8x128xf32>
    %29 = vector.shape_cast %7 : vector<128xf32> to vector<1x128xf32>
    %30 = vector.broadcast %29 : vector<1x128xf32> to vector<8x128xf32>
    %31 = arith.addf %28, %30 : vector<8x128xf32>
    %32 = arith.truncf %31 : vector<8x128xf32> to vector<8x128xbf16>
    %c0_14 = arith.constant 0 : index
    %c0_15 = arith.constant 0 : index
    %33 = vector.load %arg5[%c0_14, %c0_15] : memref<128x384xbf16, #tpu.memory_space<vmem>>, vector<128x384xbf16>
    %cst_16 = arith.constant dense<0.000000e+00> : vector<8x384xf32>
    %34 = tpu.matmul %32, %33, %cst_16 {dimension_numbers = #tpu.dot_dimension_numbers<[1], [0], [0], [1], [0, 0, 1, 1], [], []>} : vector<8x128xbf16>, vector<128x384xbf16>, vector<8x384xf32> -> vector<8x384xf32>
    %c0_17 = arith.constant 0 : index
    %c0_18 = arith.constant 0 : index
    %35 = vector.load %arg6[%c0_17, %c0_18] : memref<1x384xf32, #tpu.memory_space<vmem>>, vector<1x384xf32>
    %36 = vector.shape_cast %35 : vector<1x384xf32> to vector<384xf32>
    %37 = vector.shape_cast %36 : vector<384xf32> to vector<1x384xf32>
    %38 = vector.broadcast %37 : vector<1x384xf32> to vector<8x384xf32>
    %39 = arith.addf %34, %38 : vector<8x384xf32>
    %40 = vector.extract_strided_slice %39 {offsets = [0, 0], sizes = [8, 128], strides = [1, 1]} : vector<8x384xf32> to vector<8x128xf32>
    %cst_19 = arith.constant 0.176776692 : f32
    %41 = vector.broadcast %cst_19 : f32 to vector<8x128xf32>
    %42 = arith.mulf %40, %41 : vector<8x128xf32>
    %43 = vector.shape_cast %42 : vector<8x128xf32> to vector<8x4x32xf32>
    %44 = vector.extract_strided_slice %39 {offsets = [0, 128], sizes = [8, 128], strides = [1, 1]} : vector<8x384xf32> to vector<8x128xf32>
    %45 = vector.shape_cast %44 : vector<8x128xf32> to vector<8x4x32xf32>
    %46 = vector.extract_strided_slice %39 {offsets = [0, 256], sizes = [8, 128], strides = [1, 1]} : vector<8x384xf32> to vector<8x128xf32>
    %47 = vector.shape_cast %46 : vector<8x128xf32> to vector<8x4x32xf32>
    %48 = arith.truncf %43 : vector<8x4x32xf32> to vector<8x4x32xbf16>
    %49 = arith.truncf %45 : vector<8x4x32xf32> to vector<8x4x32xbf16>
    "tpu.trace_start"() <{level = 10 : i32, message = "qhd,khd->hqk"}> : () -> ()
    %cst_20 = arith.constant dense<0.000000e+00> : vector<4x8x8xf32>
    %50 = tpu.matmul %48, %49, %cst_20 {dimension_numbers = #tpu.dot_dimension_numbers<[2], [2], [0], [0], [0, 1, 0, 0, 1, 0], [1], [1]>} : vector<8x4x32xbf16>, vector<8x4x32xbf16>, vector<4x8x8xf32> -> vector<4x8x8xf32>
    "tpu.trace_stop"() : () -> ()
    %51 = vector.shape_cast %3 : vector<8x8xf32> to vector<1x8x8xf32>
    %52 = vector.broadcast %51 : vector<1x8x8xf32> to vector<4x8x8xf32>
    %53 = arith.addf %50, %52 : vector<4x8x8xf32>
    %cst_21 = arith.constant dense<0xFF800000> : vector<4x8xf32>
    %54 = vector.multi_reduction <maximumf>, %53, %cst_21 [2] : vector<4x8x8xf32> to vector<4x8xf32>
    %55 = vector.shape_cast %54 : vector<4x8xf32> to vector<4x8x1xf32>
    %56 = vector.broadcast %55 : vector<4x8x1xf32> to vector<4x8x8xf32>
    %57 = arith.subf %53, %56 : vector<4x8x8xf32>
    %58 = math.exp %57 : vector<4x8x8xf32>
    %cst_22 = arith.constant dense<0.000000e+00> : vector<4x8xf32>
    %59 = vector.multi_reduction <add>, %58, %cst_22 [2] : vector<4x8x8xf32> to vector<4x8xf32>
    %60 = vector.shape_cast %59 : vector<4x8xf32> to vector<4x8x1xf32>
    %61 = tpu.reciprocal %60 {approx = true} : vector<4x8x1xf32> -> vector<4x8x1xf32>
    %62 = vector.broadcast %61 : vector<4x8x1xf32> to vector<4x8x8xf32>
    %63 = arith.mulf %58, %62 : vector<4x8x8xf32>
    %64 = arith.truncf %63 : vector<4x8x8xf32> to vector<4x8x8xbf16>
    %65 = arith.truncf %47 : vector<8x4x32xf32> to vector<8x4x32xbf16>
    "tpu.trace_start"() <{level = 10 : i32, message = "hqk,khd->qhd"}> : () -> ()
    %cst_23 = arith.constant dense<0.000000e+00> : vector<4x32x8xf32>
    %66 = tpu.matmul %65, %64, %cst_23 {dimension_numbers = #tpu.dot_dimension_numbers<[0], [2], [2], [1], [0, 1, 0, 2, 1, 1], [1], [0]>} : vector<8x4x32xbf16>, vector<4x8x8xbf16>, vector<4x32x8xf32> -> vector<4x32x8xf32>
    %67 = tpu.transpose %66, [2, 0, 1] : vector<4x32x8xf32> -> vector<8x4x32xf32>
    "tpu.trace_stop"() : () -> ()
    %68 = vector.shape_cast %67 : vector<8x4x32xf32> to vector<8x128xf32>
    %69 = arith.truncf %68 : vector<8x128xf32> to vector<8x128xbf16>
    %c0_24 = arith.constant 0 : index
    %c0_25 = arith.constant 0 : index
    %70 = vector.load %arg7[%c0_24, %c0_25] : memref<128x128xbf16, #tpu.memory_space<vmem>>, vector<128x128xbf16>
    %cst_26 = arith.constant dense<0.000000e+00> : vector<8x128xf32>
    %71 = tpu.matmul %69, %70, %cst_26 {dimension_numbers = #tpu.dot_dimension_numbers<[1], [0], [0], [1], [0, 0, 1, 1], [], []>} : vector<8x128xbf16>, vector<128x128xbf16>, vector<8x128xf32> -> vector<8x128xf32>
    %c0_27 = arith.constant 0 : index
    %c0_28 = arith.constant 0 : index
    %72 = vector.load %arg8[%c0_27, %c0_28] : memref<1x128xf32, #tpu.memory_space<vmem>>, vector<1x128xf32>
    %73 = vector.shape_cast %72 : vector<1x128xf32> to vector<128xf32>
    %74 = vector.shape_cast %73 : vector<128xf32> to vector<1x128xf32>
    %75 = vector.broadcast %74 : vector<1x128xf32> to vector<8x128xf32>
    %76 = arith.addf %71, %75 : vector<8x128xf32>
    %77 = arith.addf %1, %76 : vector<8x128xf32>
    %c0_29 = arith.constant 0 : index
    %c0_30 = arith.constant 0 : index
    %78 = vector.load %arg9[%c0_29, %c0_30] : memref<1x128xf32, #tpu.memory_space<vmem>>, vector<1x128xf32>
    %79 = vector.shape_cast %78 : vector<1x128xf32> to vector<128xf32>
    %c0_31 = arith.constant 0 : index
    %c0_32 = arith.constant 0 : index
    %80 = vector.load %arg10[%c0_31, %c0_32] : memref<1x128xf32, #tpu.memory_space<vmem>>, vector<1x128xf32>
    %81 = vector.shape_cast %80 : vector<1x128xf32> to vector<128xf32>
    %cst_33 = arith.constant dense<0.000000e+00> : vector<8xf32>
    %82 = vector.multi_reduction <add>, %77, %cst_33 [1] : vector<8x128xf32> to vector<8xf32>
    %83 = vector.shape_cast %82 : vector<8xf32> to vector<8x1xf32>
    %cst_34 = arith.constant 1.280000e+02 : f32
    %84 = vector.broadcast %cst_34 : f32 to vector<8x1xf32>
    %85 = arith.divf %83, %84 : vector<8x1xf32>
    %86 = vector.broadcast %85 : vector<8x1xf32> to vector<8x128xf32>
    %87 = arith.subf %77, %86 : vector<8x128xf32>
    %88 = arith.mulf %87, %87 : vector<8x128xf32>
    %cst_35 = arith.constant dense<0.000000e+00> : vector<8xf32>
    %89 = vector.multi_reduction <add>, %88, %cst_35 [1] : vector<8x128xf32> to vector<8xf32>
    %90 = vector.shape_cast %89 : vector<8xf32> to vector<8x1xf32>
    %cst_36 = arith.constant 1.280000e+02 : f32
    %91 = vector.broadcast %cst_36 : f32 to vector<8x1xf32>
    %92 = arith.divf %90, %91 : vector<8x1xf32>
    %93 = vector.broadcast %85 : vector<8x1xf32> to vector<8x128xf32>
    %94 = arith.subf %77, %93 : vector<8x128xf32>
    %cst_37 = arith.constant 9.99999974E-6 : f32
    %95 = vector.broadcast %cst_37 : f32 to vector<8x1xf32>
    %96 = arith.addf %92, %95 : vector<8x1xf32>
    %97 = math.rsqrt %96 : vector<8x1xf32>
    %98 = vector.broadcast %97 : vector<8x1xf32> to vector<8x128xf32>
    %99 = arith.mulf %94, %98 : vector<8x128xf32>
    %100 = vector.shape_cast %79 : vector<128xf32> to vector<1x128xf32>
    %101 = vector.broadcast %100 : vector<1x128xf32> to vector<8x128xf32>
    %102 = arith.mulf %99, %101 : vector<8x128xf32>
    %103 = vector.shape_cast %81 : vector<128xf32> to vector<1x128xf32>
    %104 = vector.broadcast %103 : vector<1x128xf32> to vector<8x128xf32>
    %105 = arith.addf %102, %104 : vector<8x128xf32>
    %106 = arith.truncf %105 : vector<8x128xf32> to vector<8x128xbf16>
    %c0_38 = arith.constant 0 : index
    %c0_39 = arith.constant 0 : index
    %107 = vector.load %arg11[%c0_38, %c0_39] : memref<128x512xbf16, #tpu.memory_space<vmem>>, vector<128x512xbf16>
    %cst_40 = arith.constant dense<0.000000e+00> : vector<8x512xf32>
    %108 = tpu.matmul %106, %107, %cst_40 {dimension_numbers = #tpu.dot_dimension_numbers<[1], [0], [0], [1], [0, 0, 1, 1], [], []>} : vector<8x128xbf16>, vector<128x512xbf16>, vector<8x512xf32> -> vector<8x512xf32>
    %c0_41 = arith.constant 0 : index
    %c0_42 = arith.constant 0 : index
    %109 = vector.load %arg12[%c0_41, %c0_42] : memref<1x512xf32, #tpu.memory_space<vmem>>, vector<1x512xf32>
    %110 = vector.shape_cast %109 : vector<1x512xf32> to vector<512xf32>
    %111 = vector.shape_cast %110 : vector<512xf32> to vector<1x512xf32>
    %112 = vector.broadcast %111 : vector<1x512xf32> to vector<8x512xf32>
    %113 = arith.addf %108, %112 : vector<8x512xf32>
    %cst_43 = arith.constant 5.000000e-01 : f32
    %114 = vector.broadcast %cst_43 : f32 to vector<8x512xf32>
    %115 = arith.mulf %114, %113 : vector<8x512xf32>
    %cst_44 = arith.constant 0.797884583 : f32
    %116 = vector.broadcast %cst_44 : f32 to vector<8x512xf32>
    %117 = arith.mulf %116, %113 : vector<8x512xf32>
    %cst_45 = arith.constant 4.471500e-02 : f32
    %118 = vector.broadcast %cst_45 : f32 to vector<8x512xf32>
    %119 = arith.mulf %118, %113 : vector<8x512xf32>
    %120 = arith.mulf %119, %113 : vector<8x512xf32>
    %cst_46 = arith.constant 1.000000e+00 : f32
    %121 = vector.broadcast %cst_46 : f32 to vector<8x512xf32>
    %122 = arith.addf %121, %120 : vector<8x512xf32>
    %123 = arith.mulf %117, %122 : vector<8x512xf32>
    %124 = math.tanh %123 : vector<8x512xf32>
    %cst_47 = arith.constant 1.000000e+00 : f32
    %125 = vector.broadcast %cst_47 : f32 to vector<8x512xf32>
    %126 = arith.addf %125, %124 : vector<8x512xf32>
    %127 = arith.mulf %115, %126 : vector<8x512xf32>
    %128 = arith.truncf %127 : vector<8x512xf32> to vector<8x512xbf16>
    %c0_48 = arith.constant 0 : index
    %c0_49 = arith.constant 0 : index
    %129 = vector.load %arg13[%c0_48, %c0_49] : memref<512x128xbf16, #tpu.memory_space<vmem>>, vector<512x128xbf16>
    %cst_50 = arith.constant dense<0.000000e+00> : vector<8x128xf32>
    %130 = tpu.matmul %128, %129, %cst_50 {dimension_numbers = #tpu.dot_dimension_numbers<[1], [0], [0], [1], [0, 0, 1, 1], [], []>} : vector<8x512xbf16>, vector<512x128xbf16>, vector<8x128xf32> -> vector<8x128xf32>
    %c0_51 = arith.constant 0 : index
    %c0_52 = arith.constant 0 : index
    %131 = vector.load %arg14[%c0_51, %c0_52] : memref<1x128xf32, #tpu.memory_space<vmem>>, vector<1x128xf32>
    %132 = vector.shape_cast %131 : vector<1x128xf32> to vector<128xf32>
    %133 = vector.shape_cast %132 : vector<128xf32> to vector<1x128xf32>
    %134 = vector.broadcast %133 : vector<1x128xf32> to vector<8x128xf32>
    %135 = arith.addf %130, %134 : vector<8x128xf32>
    %136 = arith.addf %77, %135 : vector<8x128xf32>
    %c0_53 = arith.constant 0 : index
    %c0_54 = arith.constant 0 : index
    %c0_55 = arith.constant 0 : index
    %137 = vector.load %arg15[%c0_53, %c0_54, %c0_55] : memref<1x8x128xf32, #tpu.memory_space<vmem>>, vector<1x8x128xf32>
    %138 = vector.shape_cast %137 : vector<1x8x128xf32> to vector<8x128xf32>
    %139 = vector.shape_cast %136 : vector<8x128xf32> to vector<1x8x128xf32>
    tpu.vector_store %arg15[%c0_53, %c0_54, %c0_55], %139 {strides = array<i32>} : memref<1x8x128xf32, #tpu.memory_space<vmem>>, vector<1x8x128xf32>,
    return
  }
  func.func @transform_0(%arg0: i32) -> (i32, i32, i32) {
    %c0_i32 = arith.constant 0 : i32
    %c0_i32_0 = arith.constant 0 : i32
    %c0_i32_1 = arith.constant 0 : i32
    return %arg0, %c0_i32, %c0_i32_0 : i32, i32, i32
  }
  func.func @transform_1(%arg0: i32) -> (i32, i32, i32, i32) {
    %c0_i32 = arith.constant 0 : i32
    %c0_i32_0 = arith.constant 0 : i32
    %c0_i32_1 = arith.constant 0 : i32
    %c0_i32_2 = arith.constant 0 : i32
    %c0_i32_3 = arith.constant 0 : i32
    return %c0_i32, %c0_i32_0, %c0_i32_1, %c0_i32_2 : i32, i32, i32, i32
  }
  func.func @transform_2(%arg0: i32) -> (i32, i32) {
    %c0_i32 = arith.constant 0 : i32
    %c0_i32_0 = arith.constant 0 : i32
    %c0_i32_1 = arith.constant 0 : i32
    return %c0_i32, %c0_i32_0 : i32, i32
  }
  func.func @transform_3(%arg0: i32) -> (i32, i32) {
    %c0_i32 = arith.constant 0 : i32
    %c0_i32_0 = arith.constant 0 : i32
    %c0_i32_1 = arith.constant 0 : i32
    return %c0_i32, %c0_i32_0 : i32, i32
  }
  func.func @transform_4(%arg0: i32) -> (i32, i32) {
    %c0_i32 = arith.constant 0 : i32
    %c0_i32_0 = arith.constant 0 : i32
    %c0_i32_1 = arith.constant 0 : i32
    return %c0_i32, %c0_i32_0 : i32, i32
  }
  func.func @transform_5(%arg0: i32) -> (i32, i32) {
    %c0_i32 = arith.constant 0 : i32
    %c0_i32_0 = arith.constant 0 : i32
    %c0_i32_1 = arith.constant 0 : i32
    return %c0_i32, %c0_i32_0 : i32, i32
  }
  func.func @transform_6(%arg0: i32) -> (i32, i32) {
    %c0_i32 = arith.constant 0 : i32
    %c0_i32_0 = arith.constant 0 : i32
    %c0_i32_1 = arith.constant 0 : i32
    return %c0_i32, %c0_i32_0 : i32, i32
  }
  func.func @transform_7(%arg0: i32) -> (i32, i32) {
    %c0_i32 = arith.constant 0 : i32
    %c0_i32_0 = arith.constant 0 : i32
    %c0_i32_1 = arith.constant 0 : i32
    return %c0_i32, %c0_i32_0 : i32, i32
  }
  func.func @transform_8(%arg0: i32) -> (i32, i32) {
    %c0_i32 = arith.constant 0 : i32
    %c0_i32_0 = arith.constant 0 : i32
    %c0_i32_1 = arith.constant 0 : i32
    return %c0_i32, %c0_i32_0 : i32, i32
  }
  func.func @transform_9(%arg0: i32) -> (i32, i32) {
    %c0_i32 = arith.constant 0 : i32
    %c0_i32_0 = arith.constant 0 : i32
    %c0_i32_1 = arith.constant 0 : i32
    return %c0_i32, %c0_i32_0 : i32, i32
  }
  func.func @transform_10(%arg0: i32) -> (i32, i32) {
    %c0_i32 = arith.constant 0 : i32
    %c0_i32_0 = arith.constant 0 : i32
    %c0_i32_1 = arith.constant 0 : i32
    return %c0_i32, %c0_i32_0 : i32, i32
  }
  func.func @transform_11(%arg0: i32) -> (i32, i32) {
    %c0_i32 = arith.constant 0 : i32
    %c0_i32_0 = arith.constant 0 : i32
    %c0_i32_1 = arith.constant 0 : i32
    return %c0_i32, %c0_i32_0 : i32, i32
  }
  func.func @transform_12(%arg0: i32) -> (i32, i32) {
    %c0_i32 = arith.constant 0 : i32
    %c0_i32_0 = arith.constant 0 : i32
    %c0_i32_1 = arith.constant 0 : i32
    return %c0_i32, %c0_i32_0 : i32, i32
  }
  func.func @transform_13(%arg0: i32) -> (i32, i32) {
    %c0_i32 = arith.constant 0 : i32
    %c0_i32_0 = arith.constant 0 : i32
    %c0_i32_1 = arith.constant 0 : i32
    return %c0_i32, %c0_i32_0 : i32, i32
  }
  func.func @transform_14(%arg0: i32) -> (i32, i32, i32) {
    %c0_i32 = arith.constant 0 : i32
    %c0_i32_0 = arith.constant 0 : i32
    %c0_i32_1 = arith.constant 0 : i32
    return %arg0, %c0_i32, %c0_i32_0 : i32, i32, i32
  }
}

</mosaic_0001>

<bundles_post_ra>
// kernel: tpu_custom_call.1
= control target key start
LH: loop header
LB: loop body
LE: loop exit
PB: predicated region body
PF: predicated region fallthrough
CT: control target
= control target key end

     0   :  { %s7709_s0 = inlined_call_operand.hbm [shape: f32[2,8,128], index: 0, kind: input, shape index: {}]   ;;  %s7710_s1 = inlined_call_operand.hbm [shape: f32[1,1,8,8], index: 1, kind: input, shape index: {}]   ;;  %s7711_s2 = inlined_call_operand.hbm [shape: f32[1,128], index: 2, kind: input, shape index: {}]   ;;  %s7712_s3 = inlined_call_operand.hbm [shape: f32[1,128], index: 3, kind: input, shape index: {}]   ;;  %s7713_s4 = inlined_call_operand.hbm [shape: bf16[128,384], index: 4, kind: input, shape index: {}]   ;;  %s7714_s5 = inlined_call_operand.hbm [shape: f32[1,384], index: 5, kind: input, shape index: {}]   ;;  %s7715_s6 = inlined_call_operand.hbm [shape: bf16[128,128], index: 6, kind: input, shape index: {}]   ;;  %s7716_s7 = inlined_call_operand.hbm [shape: f32[1,128], index: 7, kind: input, shape index: {}]   ;;  %s7717_s8 = inlined_call_operand.hbm [shape: f32[1,128], index: 8, kind: input, shape index: {}]   ;;  %s7718_s9 = inlined_call_operand.hbm [shape: f32[1,128], index: 9, kind: input, shape index: {}]   ;;  %s7719_s10 = inlined_call_operand.hbm [shape: bf16[128,512], index: 10, kind: input, shape index: {}]   ;;  %s7720_s11 = inlined_call_operand.hbm [shape: f32[1,512], index: 11, kind: input, shape index: {}]   ;;  %s7721_s12 = inlined_call_operand.hbm [shape: bf16[512,128], index: 12, kind: input, shape index: {}]   ;;  %s7722_s13 = inlined_call_operand.hbm [shape: f32[1,128], index: 13, kind: input, shape index: {}]   ;;  %s7723_s14 = inlined_call_operand.hbm [shape: f32[2,8,128], index: 14, kind: output, shape index: {}]  }
   0x1   :  { %7735 = sst [smem:[#allocation38_spill]] %s7709_s0 }
   0x2   :  { %7736 = sst [smem:[#allocation39_spill]] %s7710_s1 }
   0x3   :  { %7737 = sst [smem:[#allocation40_spill]] %s7711_s2 }
   0x4   :  { %7738 = sst [smem:[#allocation41_spill]] %s7712_s3 }
   0x5   :  { %7739 = sst [smem:[#allocation42_spill]] %s7723_s14 }
   0x6   :  { %19 = vsyncpa [#allocation3], 0 }
   0x7   :  { %21 = vsyncpa [#allocation3 + $0x1], 0 }
   0x8   :  { %22 = vsyncpa [#allocation6], 0 }
   0x9   :  { %23 = vsyncpa [#allocation9], 0 }
   0xa   :  { %24 = vsyncpa [#allocation12], 0 }
   0xb   :  { %25 = vsyncpa [#allocation15], 0 }
   0xc   :  { %26 = vsyncpa [#allocation18], 0 }
   0xd   :  { %27 = vsyncpa [#allocation21], 0 }
   0xe   :  { %28 = vsyncpa [#allocation24], 0 }
   0xf   :  { %29 = vsyncpa [#allocation4], 0 }
  0x10   :  { %31 = vsyncpa [#allocation4 + $0x1], 0  ;;  %s6716_s29 = smov 0   ;;  %s6718_s30 = smov 0  }
  0x11   :  { %s6720_s15 = smov 0   ;;  %s6722_s16 = smov 0  }
  0x12 LB: > { %7740 = sst [smem:[#allocation35_spill]] %s6598_s29  ;;  %s6612_s17 = smov [#allocation5]   ;;  %s6610_s16 = sphi %s6722_s16, %s7784_s16   ;;  %s6606_s15 = sphi %s6720_s15, %s7783_s15   ;;  %s6602_s30 = sphi %s6718_s30, %s7782_s30   ;;  %s6598_s29 = sphi %s6716_s29, %s7781_s29  }
  0x13   : > { %s380_s18 = sshll.u32 %s6612_s17, 4  ;;  %s6737_s19 = sadd.s32 4294967295, %s6610_s16   ;;  %s6742_s18 = int_to_ptr.vmem [resolvable:$true] %s380_s18 }
  0x14   : > { %7741 = sst [smem:[#allocation36_spill]] %s6737_s19  ;;  %p5439_p0 = scmp.ge.s32.totalorder %s6610_s16, 1 }
  0x15   : > { %p7730_p1 = scmp.eq.s32.totalorder %s6737_s19, 0  ;;  %p367_p2 = scmp.lt.s32.totalorder %s6610_s16, 3 }
  0x16   : > { %s6613_s21 = smov [#allocation8]   ;;  %s6614_s23 = smov [#allocation11]  }
  0x17   : > { %p6744_p3 = pnand %p5439_p0, %p367_p2  ;;  %s402_s22 = sshll.u32 %s6613_s21, 4  ;;  %s6751_s22 = int_to_ptr.vmem [resolvable:$true] %s402_s22 }
  0x18   : > { %s426_s24 = sshll.u32 %s6614_s23, 4  ;;  %s6615_s26 = smov [#allocation14]   ;;  %s6759_s24 = int_to_ptr.vmem [resolvable:$true] %s426_s24 }
  0x19   : > { %s7742_s20 = scalar_select %p6744_p3, 1, 0 }
  0x1a   : > { %p5838_p5 = pneg %p6744_p3  ;;  %s6761_s27 = sshll.u32 %s6615_s26, 4  ;;  %s451_s27 = int_to_ptr.vmem [resolvable:$true] %s6761_s27 }
  0x1b   : > { %7743 = sst [smem:[#allocation37_spill]] %s7742_s20  ;;  %s7745_s1 = sld [smem:[#allocation39_spill]] }
  0x1c   : > { %p6755_p6 = pnand %p5838_p5, %p7730_p1 }
  0x1e   : > { %p6771_p8 = pneg %p6755_p6 }
  0x21   : > { %s6122_s14 = scalar_lea.hbm %s7745_s1, 128 }
  0x22   : > { %p6123_p7 = scmp.ne.s32.totalorder %s7745_s1, %s6122_s14  ;;  %p6129_p11 = scmp.lt.u32.totalorder %s6122_s14, %s7745_s1 }
  0x24   : > { %p6125_p9 = pnand %p6771_p8, %p6123_p7 }
  0x26   : > { %p6126_p10 = pneg %p6125_p9 }
  0x28   : > { %p6131_p12 = pnand %p6129_p11, %p6126_p10 }
  0x2a   : > { %6134 = shalt.err (!%p6131_p12)
}
  0x2b   : > { %s6135_s20 = scalar_lea.vmem %s6742_s18, 128  ;;  %p6143_p5 = scmp.lt.s32.totalorder %s6742_s18, %s6742_s18 }
  0x2c   : > { %p6136_p13 = scmp.ne.s32.totalorder %s6742_s18, %s6135_s20  ;;  %p6144_p4 = scmp.lt.s32.totalorder %s6135_s20, %s6135_s20 }
  0x2e   : > { %p6138_p0 = pnand %p6136_p13, %p6771_p8  ;;  %p6145_p7 = por %p6144_p4, %p6143_p5 }
  0x30   : > { %p6139_p2 = pneg %p6138_p0 }
  0x32   : > { %p6146_p9 = pnand %p6145_p7, %p6139_p2 }
  0x34   : > { %6149 = shalt.err (!%p6146_p9)
}
  0x35   : > { %5841 = dma.hbm_to_vmem [thread:$0]  (!%p6755_p6), %s7745_s1, 128, %s6742_s18, [#allocation6]  }
  0x36   : > { %s7747_s3 = sld [smem:[#allocation41_spill]] }
  0x3c   : > { %s6150_s21 = scalar_lea.hbm %s7747_s3, 16 }
  0x3d   : > { %p6151_p10 = scmp.ne.s32.totalorder %s7747_s3, %s6150_s21  ;;  %p6157_p12 = scmp.lt.u32.totalorder %s6150_s21, %s7747_s3 }
  0x3f   : > { %p6153_p4 = pnand %p6151_p10, %p6771_p8 }
  0x41   : > { %p6154_p11 = pneg %p6153_p4 }
  0x43   : > { %p6159_p13 = pnand %p6157_p12, %p6154_p11 }
  0x45   : > { %6162 = shalt.err (!%p6159_p13)
}
  0x46   : > { %s6163_s18 = scalar_lea.vmem %s6751_s22, 16  ;;  %s6170_s19 = scalar_lea.vmem %s6751_s22, 32 }
  0x47   : > { %p6164_p0 = scmp.ne.s32.totalorder %s6751_s22, %s6163_s18  ;;  %p6171_p7 = scmp.lt.s32.totalorder %s6751_s22, %s6751_s22 }
  0x48   : > { %p6172_p9 = scmp.lt.s32.totalorder %s6170_s19, %s6163_s18 }
  0x49   : > { %p6166_p2 = pnand %p6164_p0, %p6771_p8 }
  0x4a   : > { %p6173_p10 = por %p6172_p9, %p6171_p7 }
  0x4b   : > { %p6167_p5 = pneg %p6166_p2 }
  0x4d   : > { %p6174_p4 = pnand %p6173_p10, %p6167_p5 }
  0x4f   : > { %6177 = shalt.err (!%p6174_p4)
}
  0x50   : > { %5847 = dma.hbm_to_vmem [thread:$0]  (!%p6755_p6), %s7747_s3, 16, %s6751_s22, [#allocation9]  }
  0x51   : > { %s6178_s17 = scalar_lea.hbm %s7714_s5, 48 }
  0x52   : > { %p6179_p11 = scmp.ne.s32.totalorder %s7714_s5, %s6178_s17  ;;  %p6185_p0 = scmp.lt.u32.totalorder %s6178_s17, %s7714_s5 }
  0x54   : > { %p6181_p12 = pnand %p6179_p11, %p6771_p8 }
  0x56   : > { %p6182_p13 = pneg %p6181_p12 }
  0x58   : > { %p6187_p2 = pnand %p6185_p0, %p6182_p13 }
  0x5a   : > { %6190 = shalt.err (!%p6187_p2)
}
  0x5b   : > { %s6191_s22 = scalar_lea.vmem %s6759_s24, 48  ;;  %s6198_s19 = scalar_lea.vmem %s6759_s24, 64 }
  0x5c   : > { %p6192_p5 = scmp.ne.s32.totalorder %s6759_s24, %s6191_s22  ;;  %p6199_p10 = scmp.lt.s32.totalorder %s6759_s24, %s6759_s24 }
  0x5d   : > { %p6200_p4 = scmp.lt.s32.totalorder %s6198_s19, %s6191_s22 }
  0x5e   : > { %p6194_p7 = pnand %p6192_p5, %p6771_p8 }
  0x5f   : > { %p6201_p11 = por %p6200_p4, %p6199_p10 }
  0x60   : > { %p6195_p9 = pneg %p6194_p7 }
  0x62   : > { %p6202_p12 = pnand %p6201_p11, %p6195_p9 }
  0x64   : > { %6205 = shalt.err (!%p6202_p12)
}
  0x65   : > { %5853 = dma.hbm_to_vmem [thread:$0]  (!%p6755_p6), %s7714_s5, 48, %s6759_s24, [#allocation12]  }
  0x66   : > { %s6616_s14 = smov [#allocation17]   ;;  %s6206_s26 = scalar_lea.hbm %s7716_s7, 16 }
  0x67   : > { %s472_s28 = sshll.u32 %s6616_s14, 4  ;;  %p6207_p13 = scmp.ne.s32.totalorder %s7716_s7, %s6206_s26  ;;  %s473_s28 = int_to_ptr.vmem [resolvable:$true] %s472_s28 }
  0x68   : > { %p6213_p5 = scmp.lt.u32.totalorder %s6206_s26, %s7716_s7 }
  0x69   : > { %p6209_p0 = pnand %p6207_p13, %p6771_p8 }
  0x6b   : > { %p6210_p2 = pneg %p6209_p0 }
  0x6d   : > { %p6215_p7 = pnand %p6213_p5, %p6210_p2 }
  0x6f   : > { %6218 = shalt.err (!%p6215_p7)
}
  0x70   : > { %s6219_s24 = scalar_lea.vmem %s451_s27, 16  ;;  %s6226_s29 = scalar_lea.vmem %s451_s27, 32 }
  0x71   : > { %p6220_p9 = scmp.ne.s32.totalorder %s451_s27, %s6219_s24  ;;  %p6227_p11 = scmp.lt.s32.totalorder %s451_s27, %s451_s27 }
  0x72   : > { %p6228_p12 = scmp.lt.s32.totalorder %s6226_s29, %s6219_s24 }
  0x73   : > { %p6222_p10 = pnand %p6220_p9, %p6771_p8 }
  0x74   : > { %p6229_p1 = por %p6228_p12, %p6227_p11 }
  0x75   : > { %p6223_p4 = pneg %p6222_p10 }
  0x77   : > { %p6230_p3 = pnand %p6229_p1, %p6223_p4 }
  0x79   : > { %6233 = shalt.err (!%p6230_p3)
}
  0x7a   : > { %5859 = dma.hbm_to_vmem [thread:$0]  (!%p6755_p6), %s7716_s7, 16, %s451_s27, [#allocation15]  }
  0x7b   : > { %s6234_s26 = scalar_lea.hbm %s7718_s9, 16 }
  0x7c   : > { %p6235_p13 = scmp.ne.s32.totalorder %s7718_s9, %s6234_s26  ;;  %p6241_p3 = scmp.lt.u32.totalorder %s6234_s26, %s7718_s9 }
  0x7e   : > { %p6237_p0 = pnand %p6235_p13, %p6771_p8 }
  0x80   : > { %p6238_p1 = pneg %p6237_p0 }
  0x82   : > { %p6243_p2 = pnand %p6241_p3, %p6238_p1 }
  0x84   : > { %6246 = shalt.err (!%p6243_p2)
}
  0x85   : > { %s6247_s24 = scalar_lea.vmem %s473_s28, 16  ;;  %s6254_s27 = scalar_lea.vmem %s473_s28, 32 }
  0x86   : > { %p6248_p5 = scmp.ne.s32.totalorder %s473_s28, %s6247_s24  ;;  %p6255_p10 = scmp.lt.s32.totalorder %s473_s28, %s473_s28 }
  0x87   : > { %p6256_p4 = scmp.lt.s32.totalorder %s6254_s27, %s6247_s24 }
  0x88   : > { %p6250_p7 = pnand %p6248_p5, %p6771_p8 }
  0x89   : > { %p6257_p11 = por %p6256_p4, %p6255_p10 }
  0x8a   : > { %p6251_p9 = pneg %p6250_p7 }
  0x8c   : > { %p6258_p12 = pnand %p6257_p11, %p6251_p9 }
  0x8e   : > { %6261 = shalt.err (!%p6258_p12)
}
  0x8f   : > { %5865 = dma.hbm_to_vmem [thread:$0]  (!%p6755_p6), %s7718_s9, 16, %s473_s28, [#allocation18]  }
  0x90   : > { %s6617_s14 = smov [#allocation20]   ;;  %s6618_s21 = smov [#allocation7]  }
  0x91   : > { %s496_s17 = sshll.u32 %s6617_s14, 4  ;;  %s391_s26 = sshll.u32 %s6618_s21, 4  ;;  %s497_s17 = int_to_ptr.vmem [resolvable:$true] %s496_s17  ;;  %s392_s26 = int_to_ptr.vmem [resolvable:$true] %s391_s26 }
  0x92   : > { %s6262_s22 = scalar_lea.hbm %s7720_s11, 64 }
  0x93   : > { %p6263_p13 = scmp.ne.s32.totalorder %s7720_s11, %s6262_s22  ;;  %p6269_p3 = scmp.lt.u32.totalorder %s6262_s22, %s7720_s11 }
  0x95   : > { %p6265_p0 = pnand %p6263_p13, %p6771_p8 }
  0x97   : > { %p6266_p1 = pneg %p6265_p0 }
  0x99   : > { %p6271_p2 = pnand %p6269_p3, %p6266_p1 }
  0x9b   : > { %6274 = shalt.err (!%p6271_p2)
}
  0x9c   : > { %s6275_s28 = scalar_lea.vmem %s497_s17, 64  ;;  %p6283_p10 = scmp.lt.s32.totalorder %s497_s17, %s497_s17 }
  0x9d   : > { %p6276_p5 = scmp.ne.s32.totalorder %s497_s17, %s6275_s28  ;;  %p6284_p4 = scmp.lt.s32.totalorder %s6275_s28, %s6275_s28 }
  0x9f   : > { %p6278_p7 = pnand %p6276_p5, %p6771_p8  ;;  %p6285_p11 = por %p6284_p4, %p6283_p10 }
  0xa1   : > { %p6279_p9 = pneg %p6278_p7 }
  0xa3   : > { %p6286_p12 = pnand %p6285_p11, %p6279_p9 }
  0xa5   : > { %6289 = shalt.err (!%p6286_p12)
}
  0xa6   : > { %5871 = dma.hbm_to_vmem [thread:$0]  (!%p6755_p6), %s7720_s11, 64, %s497_s17, [#allocation21]  }
  0xa7   : > { %s7748_s2 = sld [smem:[#allocation40_spill]] }
  0xad   : > { %s6290_s18 = scalar_lea.hbm %s7748_s2, 16 }
  0xae   : > { %p6291_p13 = scmp.ne.s32.totalorder %s7748_s2, %s6290_s18  ;;  %p6297_p3 = scmp.lt.u32.totalorder %s6290_s18, %s7748_s2 }
  0xb0   : > { %p6293_p0 = pnand %p6291_p13, %p6771_p8 }
  0xb2   : > { %p6294_p1 = pneg %p6293_p0 }
  0xb4   : > { %p6299_p2 = pnand %p6297_p3, %p6294_p1 }
  0xb6   : > { %6302 = shalt.err (!%p6299_p2)
}
  0xb7   : > { %s6303_s29 = scalar_lea.vmem %s392_s26, 16  ;;  %s6310_s17 = scalar_lea.vmem %s392_s26, 32 }
  0xb8   : > { %p6304_p5 = scmp.ne.s32.totalorder %s392_s26, %s6303_s29  ;;  %p6311_p10 = scmp.lt.s32.totalorder %s392_s26, %s392_s26 }
  0xb9   : > { %p6312_p4 = scmp.lt.s32.totalorder %s6310_s17, %s6303_s29 }
  0xba   : > { %p6306_p7 = pnand %p6304_p5, %p6771_p8 }
  0xbb   : > { %p6313_p11 = por %p6312_p4, %p6311_p10 }
  0xbc   : > { %p6307_p9 = pneg %p6306_p7 }
  0xbe   : > { %p6314_p12 = pnand %p6313_p11, %p6307_p9 }
  0xc0   : > { %6317 = shalt.err (!%p6314_p12)
}
  0xc1   : > { %5844 = dma.hbm_to_vmem [thread:$0]  (!%p6755_p6), %s7748_s2, 16, %s392_s26, [#allocation6]  }
  0xc2   : > { %s6619_s14 = smov [#allocation10]   ;;  %s6318_s22 = scalar_lea.hbm %s7713_s4, 3072 }
  0xc3   : > { %s412_s21 = sshll.u32 %s6619_s14, 4  ;;  %p6319_p13 = scmp.ne.s32.totalorder %s7713_s4, %s6318_s22  ;;  %s413_s21 = int_to_ptr.vmem [resolvable:$true] %s412_s21 }
  0xc4   : > { %p6325_p3 = scmp.lt.u32.totalorder %s6318_s22, %s7713_s4 }
  0xc5   : > { %p6321_p0 = pnand %p6319_p13, %p6771_p8 }
  0xc7   : > { %p6322_p1 = pneg %p6321_p0 }
  0xc9   : > { %p6327_p2 = pnand %p6325_p3, %p6322_p1 }
  0xcb   : > { %6330 = shalt.err (!%p6327_p2)
}
  0xcc   : > { %s6331_s26 = scalar_lea.vmem %s413_s21, 3072  ;;  %p6339_p10 = scmp.lt.s32.totalorder %s413_s21, %s413_s21 }
  0xcd   : > { %p6332_p5 = scmp.ne.s32.totalorder %s413_s21, %s6331_s26  ;;  %p6340_p4 = scmp.lt.s32.totalorder %s6331_s26, %s6331_s26 }
  0xcf   : > { %p6334_p7 = pnand %p6332_p5, %p6771_p8  ;;  %p6341_p11 = por %p6340_p4, %p6339_p10 }
  0xd1   : > { %p6335_p9 = pneg %p6334_p7 }
  0xd3   : > { %p6342_p12 = pnand %p6341_p11, %p6335_p9 }
  0xd5   : > { %6345 = shalt.err (!%p6342_p12)
}
  0xd6   : > { %s6620_s17 = smov 192   ;;  %s6621_s28 = smov 12  }
  0xd7   : > { %5850 = dma.hbm_to_vmem [thread:$0]  (!%p6755_p6), %s7713_s4, 3072, %s413_s21, [#allocation9], %s6620_s17, %s6620_s17, %s6621_s28  }
  0xd8   : > { %s6622_s20 = smov [#allocation13]   ;;  %s6346_s24 = scalar_lea.hbm %s7715_s6, 1024 }
  0xd9   : > { %s436_s18 = sshll.u32 %s6622_s20, 4  ;;  %p6347_p13 = scmp.ne.s32.totalorder %s7715_s6, %s6346_s24  ;;  %s437_s18 = int_to_ptr.vmem [resolvable:$true] %s436_s18 }
  0xda   : > { %p6353_p3 = scmp.lt.u32.totalorder %s6346_s24, %s7715_s6 }
  0xdb   : > { %p6349_p0 = pnand %p6347_p13, %p6771_p8 }
  0xdd   : > { %p6350_p1 = pneg %p6349_p0 }
  0xdf   : > { %p6355_p2 = pnand %p6353_p3, %p6350_p1 }
  0xe1   : > { %6358 = shalt.err (!%p6355_p2)
}
  0xe2   : > { %s6359_s21 = scalar_lea.vmem %s437_s18, 1024  ;;  %p6367_p10 = scmp.lt.s32.totalorder %s437_s18, %s437_s18 }
  0xe3   : > { %p6360_p5 = scmp.ne.s32.totalorder %s437_s18, %s6359_s21  ;;  %p6368_p4 = scmp.lt.s32.totalorder %s6359_s21, %s6359_s21 }
  0xe5   : > { %p6362_p7 = pnand %p6360_p5, %p6771_p8  ;;  %p6369_p11 = por %p6368_p4, %p6367_p10 }
  0xe7   : > { %p6363_p9 = pneg %p6362_p7 }
  0xe9   : > { %p6370_p12 = pnand %p6369_p11, %p6363_p9 }
  0xeb   : > { %6373 = shalt.err (!%p6370_p12)
}
  0xec   : > { %s7732_s17 = smov 64   ;;  %s7733_s28 = smov 4  }
  0xed   : > { %5856 = dma.hbm_to_vmem [thread:$0]  (!%p6755_p6), %s7715_s6, 1024, %s437_s18, [#allocation12], %s7732_s17, %s7732_s17, %s7733_s28  }
  0xee   : > { %s6625_s14 = smov [#allocation16]   ;;  %s6626_s22 = smov [#allocation19]  }
  0xef   : > { %s461_s20 = sshll.u32 %s6625_s14, 4  ;;  %s482_s19 = sshll.u32 %s6626_s22, 4  ;;  %s462_s20 = int_to_ptr.vmem [resolvable:$true] %s461_s20  ;;  %s483_s19 = int_to_ptr.vmem [resolvable:$true] %s482_s19 }
  0xf0   : > { %s6374_s29 = scalar_lea.hbm %s7717_s8, 16 }
  0xf1   : > { %p6375_p13 = scmp.ne.s32.totalorder %s7717_s8, %s6374_s29  ;;  %p6381_p3 = scmp.lt.u32.totalorder %s6374_s29, %s7717_s8 }
  0xf3   : > { %p6377_p0 = pnand %p6375_p13, %p6771_p8 }
  0xf5   : > { %p6378_p1 = pneg %p6377_p0 }
  0xf7   : > { %p6383_p2 = pnand %p6381_p3, %p6378_p1 }
  0xf9   : > { %6386 = shalt.err (!%p6383_p2)
}
  0xfa   : > { %s6387_s18 = scalar_lea.vmem %s462_s20, 16  ;;  %s6394_s1 = scalar_lea.vmem %s462_s20, 32 }
  0xfb   : > { %p6388_p5 = scmp.ne.s32.totalorder %s462_s20, %s6387_s18  ;;  %p6395_p10 = scmp.lt.s32.totalorder %s462_s20, %s462_s20 }
  0xfc   : > { %p6396_p4 = scmp.lt.s32.totalorder %s6394_s1, %s6387_s18 }
  0xfd   : > { %p6390_p7 = pnand %p6388_p5, %p6771_p8 }
  0xfe   : > { %p6397_p11 = por %p6396_p4, %p6395_p10 }
  0xff   : > { %p6391_p9 = pneg %p6390_p7 }
 0x101   : > { %p6398_p12 = pnand %p6397_p11, %p6391_p9 }
 0x103   : > { %6401 = shalt.err (!%p6398_p12)
}
 0x104   : > { %5862 = dma.hbm_to_vmem [thread:$0]  (!%p6755_p6), %s7717_s8, 16, %s462_s20, [#allocation15]  }
 0x105   : > { %s6402_s22 = scalar_lea.hbm %s7719_s10, 4096 }
 0x106   : > { %p6403_p13 = scmp.ne.s32.totalorder %s7719_s10, %s6402_s22  ;;  %p6409_p3 = scmp.lt.u32.totalorder %s6402_s22, %s7719_s10 }
 0x108   : > { %p6405_p0 = pnand %p6403_p13, %p6771_p8 }
 0x10a   : > { %p6406_p1 = pneg %p6405_p0 }
 0x10c   : > { %p6411_p2 = pnand %p6409_p3, %p6406_p1 }
 0x10e   : > { %6414 = shalt.err (!%p6411_p2)
}
 0x10f   : > { %s6415_s21 = scalar_lea.vmem %s483_s19, 4096  ;;  %p6423_p10 = scmp.lt.s32.totalorder %s483_s19, %s483_s19 }
 0x110   : > { %p6416_p5 = scmp.ne.s32.totalorder %s483_s19, %s6415_s21  ;;  %p6424_p4 = scmp.lt.s32.totalorder %s6415_s21, %s6415_s21 }
 0x112   : > { %p6418_p7 = pnand %p6416_p5, %p6771_p8  ;;  %p6425_p11 = por %p6424_p4, %p6423_p10 }
 0x114   : > { %p6419_p9 = pneg %p6418_p7 }
 0x116   : > { %p6426_p12 = pnand %p6425_p11, %p6419_p9 }
 0x118   : > { %6429 = shalt.err (!%p6426_p12)
}
 0x119   : > { %s6627_s20 = smov 256   ;;  %s6628_s18 = smov 16  }
 0x11a   : > { %5868 = dma.hbm_to_vmem [thread:$0]  (!%p6755_p6), %s7719_s10, 4096, %s483_s19, [#allocation18], %s6627_s20, %s6627_s20, %s6628_s18  }
 0x11b   : > { %s6629_s14 = smov [#allocation22]   ;;  %s6630_s3 = smov [#allocation23]  }
 0x11c   : > { %s506_s2 = sshll.u32 %s6629_s14, 4  ;;  %s520_s22 = sshll.u32 %s6630_s3, 4  ;;  %s507_s2 = int_to_ptr.vmem [resolvable:$true] %s506_s2  ;;  %s521_s22 = int_to_ptr.vmem [resolvable:$true] %s520_s22 }
 0x11d   : > { %s6430_s29 = scalar_lea.hbm %s7721_s12, 4096 }
 0x11e   : > { %p6431_p13 = scmp.ne.s32.totalorder %s7721_s12, %s6430_s29  ;;  %p6437_p3 = scmp.lt.u32.totalorder %s6430_s29, %s7721_s12 }
 0x120   : > { %p6433_p0 = pnand %p6431_p13, %p6771_p8 }
 0x122   : > { %p6434_p1 = pneg %p6433_p0 }
 0x124   : > { %p6439_p2 = pnand %p6437_p3, %p6434_p1 }
 0x126   : > { %6442 = shalt.err (!%p6439_p2)
}
 0x127   : > { %s6443_s19 = scalar_lea.vmem %s507_s2, 4096  ;;  %p6451_p10 = scmp.lt.s32.totalorder %s507_s2, %s507_s2 }
 0x128   : > { %p6444_p5 = scmp.ne.s32.totalorder %s507_s2, %s6443_s19  ;;  %p6452_p4 = scmp.lt.s32.totalorder %s6443_s19, %s6443_s19 }
 0x12a   : > { %p6446_p7 = pnand %p6444_p5, %p6771_p8  ;;  %p6453_p11 = por %p6452_p4, %p6451_p10 }
 0x12c   : > { %p6447_p9 = pneg %p6446_p7 }
 0x12e   : > { %p6454_p12 = pnand %p6453_p11, %p6447_p9 }
 0x130   : > { %6457 = shalt.err (!%p6454_p12)
}
 0x131   : > { %s7749_s20 = smov 4   ;;  %s7750_s18 = smov 64  }
 0x132   : > { %5874 = dma.hbm_to_vmem [thread:$0]  (!%p6755_p6), %s7721_s12, 4096, %s507_s2, [#allocation21], %s7750_s18, %s7750_s18, %s7749_s20  }
 0x133   : > { %s6458_s14 = scalar_lea.hbm %s7722_s13, 16 }
 0x134   : > { %p6459_p13 = scmp.ne.s32.totalorder %s7722_s13, %s6458_s14  ;;  %p6465_p3 = scmp.lt.u32.totalorder %s6458_s14, %s7722_s13 }
 0x136   : > { %p6461_p0 = pnand %p6459_p13, %p6771_p8 }
 0x138   : > { %p6462_p1 = pneg %p6461_p0 }
 0x13a   : > { %p6467_p2 = pnand %p6465_p3, %p6462_p1 }
 0x13c   : > { %6470 = shalt.err (!%p6467_p2)
}
 0x13d   : > { %s6471_s26 = scalar_lea.vmem %s521_s22, 16  ;;  %s6478_s2 = scalar_lea.vmem %s521_s22, 32 }
 0x13e   : > { %p6472_p5 = scmp.ne.s32.totalorder %s521_s22, %s6471_s26  ;;  %p6479_p10 = scmp.lt.s32.totalorder %s521_s22, %s521_s22 }
 0x13f   : > { %p6480_p4 = scmp.lt.s32.totalorder %s6478_s2, %s6471_s26 }
 0x140   : > { %p6474_p7 = pnand %p6472_p5, %p6771_p8 }
 0x141   : > { %p6481_p11 = por %p6480_p4, %p6479_p10 }
 0x142   : > { %p6475_p9 = pneg %p6474_p7 }
 0x144   : > { %p6482_p12 = pnand %p6481_p11, %p6475_p9 }
 0x146   : > { %6485 = shalt.err (!%p6482_p12)
}
 0x147   : > { %s7751_s23 = sld [smem:[#allocation35_spill]]  ;;  %s7752_s20 = sld [smem:[#allocation36_spill]] }
 0x148   : > { %5877 = dma.hbm_to_vmem [thread:$0]  (!%p6755_p6), %s7722_s13, 16, %s521_s22, [#allocation24]  }
 0x149   : > { %s5438_s18 = sadd.s32 4294967294, %s6610_s16   ;;  %s7029_s25 = sadd.s32 1, %s6610_s16  }
 0x14a   : > { %s44_s17 = sadd.s32 1, %s6606_s15  ;;  %s41_s28 = ssub.s32 %s6610_s16, %s7029_s25 }
 0x14b   : > { %p51_p8 = scmp.ne.s32.totalorder %s6606_s15, %s6602_s30  ;;  %p42_p13 = scmp.eq.s32.totalorder %s41_s28, 0 }
 0x14c   : > { %p52_p0 = scmp.eq.s32.totalorder %s6610_s16, 0  ;;  %p360_p9 = scmp.eq.s32.totalorder %s5438_s18, 1 }
 0x14d   : > { %p57_p1 = scmp.ne.s32.totalorder %s6602_s30, %s7751_s23  ;;  %p354_p3 = scmp.eq.s32.totalorder %s7752_s20, 1 }
 0x14e   : > { %s7041_s1 = scalar_select %p42_p13, %s6606_s15, %s44_s17  }
 0x14f   : > { %p53_p2 = por %p52_p0, %p51_p8  ;;  %p7753_p5 = scmp.eq.s32.totalorder %s7752_s20, 0 }
 0x150   : > { %p7049_p6 = por %p354_p3, %p51_p8  ;;  %p5899_p10 = scmp.lt.s32.totalorder %s6610_s16, 2 }
 0x151   : > { %p7045_p7 = por %p7753_p5, %p57_p1  ;;  %s531_s14 = sand.u32 1, %s6606_s15  }
 0x152   : > { %s7755_s22 = scalar_select %p7049_p6, 1, 0 }
 0x153   : > { %p7055_p4 = por %p360_p9, %p57_p1  ;;  %s5454_s24 = sshll.u32 %s531_s14, 3 }
 0x154   : > { %s5455_s27 = sshll.u32 %s6610_s16, 7  ;;  %s7757_s2 = sld [smem:[#allocation38_spill]] }
 0x155   : > { %s7756_s3 = scalar_select %p7055_p4, 1, 0 }
 0x156   : > { %s535_s19 = scalar_lea.vmem [#allocation2], %s5454_s24  ;;  %p7065_p11 = pnand %p5899_p10, %p53_p2 }
 0x157   : > { %s542_s23 = sshll.u32 %s535_s19, 4  ;;  %s532_s18 = scalar_lea.sflag [#allocation3], %s531_s14  ;;  %s7069_s23 = int_to_ptr.vmem [resolvable:$true] %s542_s23 }
 0x158   : > { %p6488_p8 = pneg %p7065_p11 }
 0x15a   : > { %s7063_s21 = scalar_lea.hbm %s7757_s2, %s5455_s27  ;;  %s6491_s27 = scalar_lea.hbm %s7757_s2, 256 }
 0x15b   : > { %s6486_s17 = scalar_lea.hbm %s7063_s21, 128  ;;  %p6492_p1 = scmp.lt.u32.totalorder %s7063_s21, %s7757_s2 }
 0x15c   : > { %p6487_p12 = scmp.ne.s32.totalorder %s7063_s21, %s6486_s17  ;;  %p6493_p3 = scmp.lt.u32.totalorder %s6491_s27, %s6486_s17 }
 0x15d   : > { %p6495_p5 = scmp.lt.u32.totalorder %s6486_s17, %s7063_s21 }
 0x15e   : > { %p6489_p13 = pnand %p6488_p8, %p6487_p12  ;;  %p6494_p2 = por %p6493_p3, %p6492_p1 }
 0x160   : > { %p6490_p0 = pneg %p6489_p13  ;;  %p6496_p9 = por %p6495_p5, %p6494_p2 }
 0x162   : > { %p6497_p10 = pnand %p6496_p9, %p6490_p0 }
 0x164   : > { %6500 = shalt.err (!%p6497_p10)
}
 0x165   : > { %s6501_s14 = scalar_lea.vmem %s7069_s23, 128  ;;  %s6631_s19 = smov [#allocation2]  }
 0x166   : > { %p6502_p12 = scmp.ne.s32.totalorder %s7069_s23, %s6501_s14  ;;  %s6506_s28 = sshll.u32 %s6631_s19, 4  ;;  %s6507_s28 = int_to_ptr.vmem [resolvable:$false] %s6506_s28 }
 0x167   : > { %s6508_s24 = scalar_lea.vmem %s6507_s28, 256  ;;  %p6509_p6 = scmp.lt.s32.totalorder %s7069_s23, %s6507_s28 }
 0x168   : > { %p6504_p13 = pnand %p6502_p12, %p6488_p8  ;;  %p6510_p1 = scmp.lt.s32.totalorder %s6508_s24, %s6501_s14 }
 0x16a   : > { %p6505_p4 = pneg %p6504_p13  ;;  %p6511_p3 = por %p6510_p1, %p6509_p6 }
 0x16c   : > { %p6512_p2 = pnand %p6511_p3, %p6505_p4 }
 0x16e   : > { %6515 = shalt.err (!%p6512_p2)
}
 0x16f   : > { %5881 = dma.hbm_to_vmem [thread:$0]  (!%p7065_p11), %s7063_s21, 128, %s7069_s23, %s532_s18  }
 0x170   : > { %s7759_s17 = sld [smem:[#allocation37_spill]] }
 0x176   : > { %p7760_p0 = scmp.ne.s32.totalorder %s7759_s17, 0 }
 0x177   : > { %s7099_s27 = sand.u32 (!%p7760_p0), 1, %s6602_s30  }
 0x178   : > { %551 = sbr.rel (%p7760_p0) target bundleno = 3510 (0xdb6), region = 76  ;;  %s5457_s29 = sshll.u32 (!%p7760_p0), %s7099_s27, 3 }
 0x179   : > { %s554_s26 = scalar_lea.sflag (!%p7760_p0), [#allocation3], %s7099_s27  ;;  %s7105_s14 = scalar_lea.vmem (!%p7760_p0), [#allocation2], %s5457_s29 }
 0x17f   : > { %6561 = dma.done.wait (%p7045_p7), %s554_s26, 128  }
 0x180   : > { %6563 = vsyncadd (%p7045_p7), %s554_s26, 4294967168  ;;  %s7761_s21 = sld [smem:[#allocation36_spill]] }
 0x186   : > { %p7762_p6 = scmp.eq.s32.totalorder %s7761_s21, 0 }
 0x188   : > { %6565 = dma.done.wait (%p7762_p6), [#allocation6], 144   ;;  %p7763_p4 = pmov %p7762_p6 }
 0x18a   : > { %6567 = vsyncadd (%p7763_p4), [#allocation6], 4294967152  ;;  %p7764_p11 = pmov %p7763_p4 }
 0x18b   : > { %p7765_p8 = pmov %p7763_p4 }
 0x18c   : > { %6569 = dma.done.wait (%p7764_p11), [#allocation9], 3088  }
 0x18d   : > { %6571 = vsyncadd (%p7765_p8), [#allocation9], 4294964208  ;;  %p7766_p5 = pmov %p7763_p4 }
 0x18e   : > { %p7767_p9 = pmov %p7763_p4 }
 0x18f   : > { %6573 = dma.done.wait (%p7766_p5), [#allocation12], 1072  }
 0x190   : > { %6575 = vsyncadd (%p7767_p9), [#allocation12], 4294966224  ;;  %p7768_p7 = pmov %p7763_p4 }
 0x191   : > { %p7769_p10 = pmov %p7763_p4 }
 0x192   : > { %6577 = dma.done.wait (%p7768_p7), [#allocation15], 32  }
 0x193   : > { %6579 = vsyncadd (%p7769_p10), [#allocation15], 4294967264  ;;  %p7770_p12 = pmov %p7763_p4 }
 0x194   : > { %p7771_p13 = pmov %p7763_p4 }
 0x195   : > { %6581 = dma.done.wait (%p7770_p12), [#allocation18], 4112  }
 0x196   : > { %6583 = vsyncadd (%p7771_p13), [#allocation18], 4294963184  ;;  %p7772_p1 = pmov %p7763_p4 }
 0x198   : > { %6585 = dma.done.wait (%p7772_p1), [#allocation21], 4160   ;;  %p7773_p3 = pmov %p7772_p1 }
 0x199   : > { %p7774_p2 = pmov %p7772_p1 }
 0x19a   : > { %6587 = vsyncadd (%p7773_p3), [#allocation21], 4294963136 }
 0x19b   : > { %6589 = dma.done.wait (%p7774_p2), [#allocation24], 16   ;;  %p7775_p0 = pmov %p7772_p1 }
 0x19c   : > { %v655_v0 = vld [vmem:[%s7105_s14] sm:$0xff]  ;;  %v6632_v3 = vmov 0.0   ;;  %v5981_v8 = vld [vmem:[#allocation10 + $0x34] ss:$12 sps:$4 sm:$0xff]   ;;  %v6633_v25 = vmov 0   ;;  %vm6634_vm0 = vmmov 0   ;;  %v720_v41 = vlaneseq }
 0x19d   : > { %6591 = vsyncadd (%p7775_p0), [#allocation24], 4294967280  ;;  %659 = vadd.xlane.f32.xlu0 %v655_v0  ;;  %v5973_v1 = vld [vmem:[#allocation10 + $0x4] ss:$12 sps:$4 sm:$0xff]   ;;  %v5975_v2 = vld [vmem:[#allocation10] ss:$12 sps:$4 sm:$0xff]   ;;  %5682 = vmatprep.subr.bf16.mxu1 %v6632_v3 }
 0x19e   : > { %v5976_v4 = vld [vmem:[#allocation10 + $0x8] ss:$12 sps:$4 sm:$0xff]   ;;  %v5979_v6 = vld [vmem:[#allocation10 + $0x18] ss:$12 sps:$4 sm:$0xff]   ;;  %863 = vmatprep.subr.bf16.mxu0 %v5973_v1  ;;  %v5980_v7 = vld [vmem:[#allocation10 + $0x20] ss:$12 sps:$4 sm:$0xff]   ;;  %895 = vmatprep.mubr.bf16.mxu0 %v6633_v25 }
 0x19f   : > { %v5977_v5 = vld [vmem:[#allocation10 + $0x1c] ss:$12 sps:$4 sm:$0xff]   ;;  %864 = vmatpush1.bf16.msra.mxu0 %v5975_v2  ;;  %5683 = vmatpush3.bf16.msra.mxu1 %v5976_v4  ;;  %v5984_v14 = vld [vmem:[#allocation10 + $0x38] ss:$12 sps:$4 sm:$0xff]   ;;  %v5991_v19 = vld [vmem:[#allocation10 + $0x60] ss:$12 sps:$4 sm:$0xff]  }
 0x1a0   : > { %865 = vmatprep.subr.bf16.mxu0 %v5977_v5  ;;  %5684 = vmatprep.subr.bf16.mxu1 %v6632_v3  ;;  %v5983_v13 = vld [vmem:[#allocation10 + $0x30] ss:$12 sps:$4 sm:$0xff]   ;;  %v5985_v15 = vld [vmem:[#allocation10 + $0x4c] ss:$12 sps:$4 sm:$0xff]   ;;  %v5987_v16 = vld [vmem:[#allocation10 + $0x48] ss:$12 sps:$4 sm:$0xff]  }
 0x1a1   : > { %v5988_v17 = vld [vmem:[#allocation10 + $0x50] ss:$12 sps:$4 sm:$0xff]   ;;  %v5992_v20 = vld [vmem:[#allocation10 + $0x68] ss:$12 sps:$4 sm:$0xff]   ;;  %v5995_v22 = vld [vmem:[#allocation10 + $0x78] ss:$12 sps:$4 sm:$0xff]   ;;  %5698 = vmatprep.mubr.msk.bf16.mxu1 %vm6634_vm0, %v6632_v3 }
 0x1a2   : > { %v5989_v18 = vld [vmem:[#allocation10 + $0x64] ss:$12 sps:$4 sm:$0xff]   ;;  %v5993_v21 = vld [vmem:[#allocation10 + $0x7c] ss:$12 sps:$4 sm:$0xff]   ;;  %v5996_v23 = vld [vmem:[#allocation10 + $0x80] ss:$12 sps:$4 sm:$0xff]  }
 0x1a3   : > { %866 = vmatpush1.bf16.msra.mxu0 %v5979_v6  ;;  %5685 = vmatpush3.bf16.msra.mxu1 %v5980_v7  ;;  %v5997_v24 = vld [vmem:[#allocation10 + $0x94] ss:$12 sps:$4 sm:$0xff]   ;;  %v5999_v26 = vld [vmem:[#allocation10 + $0x90] ss:$12 sps:$4 sm:$0xff]   ;;  %v6000_v27 = vld [vmem:[#allocation10 + $0x98] ss:$12 sps:$4 sm:$0xff]  }
 0x1a4   : > { %867 = vmatprep.subr.bf16.mxu0 %v5981_v8  ;;  %5686 = vmatprep.subr.bf16.mxu1 %v6632_v3  ;;  %v6001_v28 = vld [vmem:[#allocation10 + $0xac] ss:$12 sps:$4 sm:$0xff]   ;;  %v6003_v29 = vld [vmem:[#allocation10 + $0xa8] ss:$12 sps:$4 sm:$0xff]   ;;  %v6004_v30 = vld [vmem:[#allocation10 + $0xb0] ss:$12 sps:$4 sm:$0xff]  }
 0x1a5   : > { %v5472_v35 = vld [vmem:[#allocation7] ss:$0 sm:$0xff]  ;;  %v5473_v37 = vld [vmem:[#allocation8] ss:$0 sm:$0xff]  ;;  %v7154_v42 = vshrl.u32 %v720_v41, 7  ;;  %s6635_s0 = smov 32  }
 0x1a6   : > { %v7158_v45 = vld [vmem:[#allocation11] sm:$0x7]  ;;  %s6636_s23 = smov 96   ;;  %s6637_s20 = smov 64   ;;  %v6638_v59 = vmov 1983009808  }
 0x1a7   : > { %868 = vmatpush1.bf16.msra.mxu0 %v5983_v13  ;;  %5687 = vmatpush3.bf16.msra.mxu1 %v5984_v14  ;;  %v722_v43 = vsub.s32 0, %v7154_v42  ;;  %v726_v44 = vsub.s32 1, %v7154_v42  ;;  %v958_v60 = vunpack.c.l.s4 %v6638_v59  ;;  %v6639_v61 = vmov 1934713408   ;;  %s5593_s18 = sshll.u32 %s7761_s21, 7  ;;  %s653_s19 = scalar_lea.vmem [#allocation25], %s5457_s29 }
 0x1a8   : > { %5688 = vmatprep.subr.bf16.mxu1 %v6632_v3  ;;  %869 = vmatprep.subr.bf16.mxu0 %v5985_v15  ;;  %v990_v62 = vunpack.c.l.s4 %v6639_v61  ;;  %vm2465_vm1 = vcmask 261120   ;;  %vm2638_vm2 = vcmask 64512   ;;  %vm4404_vm3 = vcmask 523264   ;;  %s5244_s28 = sshll.u32 %s653_s19, 4  ;;  %s7776_s26 = sld [smem:[#allocation42_spill]]  ;;  %s7667_s28 = int_to_ptr.vmem [resolvable:$true] %s5244_s28 }
 0x1a9   : > { %v723_v46 = vrot.slane %v7158_v45, %v722_v43  ;;  %v727_v47 = vrot.slane %v7158_v45, %v726_v44  ;;  %v959_v63 = vunpack.c.0.s8 %v958_v60  ;;  %vm4406_vm4 = vcmask 785408   ;;  %p7777_p4 = scmp.ne.s32.totalorder %s7755_s22, 0  ;;  %s6640_s29 = smov [#allocation25]  }
 0x1aa   : > { %v991_v2 = vunpack.c.0.s8 %v990_v62  ;;  %s6520_s21 = sshll.u32 %s6640_s29, 4  ;;  %s6521_s21 = int_to_ptr.vmem [resolvable:$false] %s6520_s21 }
 0x1ab   : > { %870 = vmatpush1.bf16.msra.mxu0 %v5987_v16  ;;  %5689 = vmatpush3.bf16.msra.mxu1 %v5988_v17  ;;  %v7180_v4 = vsub.s32 %v959_v63, %v7154_v42  ;;  %p6523_p5 = scmp.lt.s32.totalorder %s7667_s28, %s6521_s21 }
 0x1ac   : > { %5690 = vmatprep.subr.bf16.mxu1 %v6632_v3  ;;  %871 = vmatprep.subr.bf16.mxu0 %v5989_v18 }
 0x1af   : > { %872 = vmatpush1.bf16.msra.mxu0 %v5991_v19  ;;  %5691 = vmatpush3.bf16.msra.mxu1 %v5992_v20 }
 0x1b0   : > { %873 = vmatprep.subr.bf16.mxu0 %v5993_v21  ;;  %5692 = vmatprep.subr.bf16.mxu1 %v6632_v3 }
 0x1b3   : > { %874 = vmatpush1.bf16.msra.mxu0 %v5995_v22  ;;  %5693 = vmatpush3.bf16.msra.mxu1 %v5996_v23 }
 0x1b4   : > { %875 = vmatprep.subr.bf16.mxu0 %v5997_v24  ;;  %5694 = vmatprep.subr.bf16.mxu1 %v6632_v3 }
 0x1b7   : > { %876 = vmatpush1.bf16.msra.mxu0 %v5999_v26  ;;  %5695 = vmatpush3.bf16.msra.mxu1 %v6000_v27 }
 0x1b8   : > { %877 = vmatprep.subr.bf16.mxu0 %v6001_v28  ;;  %5696 = vmatprep.subr.bf16.mxu1 %v6632_v3 }
 0x1bb   : > { %878 = vmatpush1.bf16.msra.mxu0 %v6003_v29  ;;  %5697 = vmatpush3.bf16.msra.mxu1 %v6004_v30 }
 0x1bc   : > { %5702 = vmatprep.subr.bf16.mxu1 %v6632_v3 }
 0x22a   : > { %v660_v9 = vpop.xlane.xlu0 %659 }
 0x22b   : > { %v662_v10 = vmul.f32 0.0078125, %v660_v9 }
 0x22d   : > { %v663_v11 = vsub.f32 %v655_v0, %v662_v10  ;;  %v7183_v10 = vsub.s32 %v991_v2, %v7154_v42 }
 0x22f   : > { %v664_v12 = vmul.f32 %v663_v11, %v663_v11 }
 0x231   : > { %665 = vadd.xlane.f32.xlu0 %v664_v12 }
 0x2be   : > { %v666_v31 = vpop.xlane.xlu0 %665 }
 0x2bf   : > { %v667_v32 = vmul.f32 0.0078125, %v666_v31 }
 0x2c1   : > { %v668_v33 = vadd.f32 1e-05, %v667_v32 }
 0x2c3   : > { %6093 = vrsqrt.f32 %v668_v33 }
 0x2cd   : > { %v6094_v34 = vpop.eup %6093 }
 0x2ce   : > { %v670_v36 = vmul.f32 %v6094_v34, %v663_v11 }
 0x2d0   : > { %v677_v38 = vmul.f32 %v5472_v35, %v670_v36 }
 0x2d2   : > { %v684_v39 = vadd.f32 %v5473_v37, %v677_v38 }
 0x2d4   : > { %v685_v40 = vpack.c.bf16 %v684_v39, %v684_v39 }
 0x2d6   : > { %896 = vmatmul.mubr.bf16.vlgmr.msra.gmra.mrb[0].mxu0 %v685_v40  ;;  %5699 = vmatmul.mubr.bf16.vlgmr.msra.gmra.mrb[0].mxu1 %v685_v40 }
 0x2d7   : > { %5706 = vmatprep.mubr.msk.bf16.mxu1 %vm6634_vm0, %v6632_v3 }
 0x3a9   : > { %v897_v48 = vpop.f32.mrb[0].mxu0  ;;  %v7166_v49 = vpop.f32.mrb[0].mxu1 }
 0x3aa   : > { %v899_v50 = vpop.f32.mrb[1].mxu0  ;;  %v5700_v51 = vpop.f32.mrb[1].mxu1  ;;  %v898_v52 = vadd.f32 %v897_v48, %v723_v46 }
 0x3ab   : > { %v900_v53 = vadd.f32 %v899_v50, %v727_v47  ;;  %v901_v54 = vpop.f32.mrb[2].mxu0  ;;  %v941_v55 = vpop.f32.mrb[2].mxu1 }
 0x3ac   : > { %v902_v56 = vpop.f32.mrb[3].mxu0  ;;  %v5701_v57 = vpop.f32.mrb[3].mxu1  ;;  %v7170_v58 = vmul.f32 0.17677669, %v898_v52 }
 0x3ad   : > { %1030 = vrot.lane.b32.xlu0 %v900_v53, %s6635_s0  ;;  %1024 = vrot.lane.b32.xlu1 %v900_v53, %s6636_s23 }
 0x3b1   : > { %1027 = vrot.lane.b32.xlu1 %v900_v53, %s6637_s20  ;;  %946 = vrot.lane.b32.xlu0 %v7170_v58, %s6636_s23 }
 0x3b5   : > { %949 = vrot.lane.b32.xlu1 %v7170_v58, %s6637_s20 }
 0x3b9   : > { %952 = vrot.lane.b32.xlu1 %v7170_v58, %s6635_s0 }
 0x41f   : > { %v1031_v0 = vpop.permute.xlu0 %1030  ;;  %v1025_v1 = vpop.permute.xlu1 %1024 }
 0x420   : > { %v1049_v5 = vcombine.low %v1025_v1, %v1031_v0  ;;  %v1050_v6 = vcombine.high %v1025_v1, %v1031_v0 }
 0x422   : > { %v1057_v11 = vrot.slane %v1049_v5, %v7180_v4  ;;  %v1064_v12 = vrot.slane %v1050_v6, %v7180_v4 }
 0x423   : > { %v1028_v7 = vpop.permute.xlu1 %1027  ;;  %v7205_v47 = vpop.permute.xlu0 %946 }
 0x424   : > { %v1033_v8 = vcombine.low %v900_v53, %v1028_v7  ;;  %v1034_v9 = vcombine.high %v900_v53, %v1028_v7 }
 0x426   : > { %v1041_v13 = vrot.slane %v1033_v8, %v7180_v4  ;;  %v1048_v14 = vrot.slane %v1034_v9, %v7180_v4 }
 0x427   : > { %v7197_v36 = vpop.permute.xlu1 %949 }
 0x428   : > { %v1065_v15 = vcombine.low %v1041_v13, %v1057_v11  ;;  %v1082_v16 = vcombine.high %v1048_v14, %v1064_v12  ;;  %v1066_v17 = vcombine.high %v1041_v13, %v1057_v11  ;;  %v1081_v24 = vcombine.low %v1048_v14, %v1064_v12 }
 0x42a   : > { %v1073_v18 = vrot.slane %v1065_v15, %v7183_v10  ;;  %v1096_v19 = vrot.slane %v1082_v16, %v7183_v10  ;;  %v1080_v22 = vrot.slane %v1066_v17, %v7183_v10  ;;  %v1089_v28 = vrot.slane %v1081_v24, %v7183_v10 }
 0x42b   : > { %v7199_v37 = vpop.permute.xlu1 %952 }
 0x42c   : > { %v1187_v20 = vpack.c.bf16 %v1073_v18, %v1073_v18  ;;  %v1193_v21 = vpack.c.bf16 %v1096_v19, %v1096_v19  ;;  %v1097_v23 = vcombine.high %v1073_v18, %v6632_v3  ;;  %v1189_v26 = vpack.c.bf16 %v1080_v22, %v1080_v22 }
 0x42d   : > { %v1191_v29 = vpack.c.bf16 %v1089_v28, %v1089_v28  ;;  %v1098_v30 = vcombine.high %v1080_v22, %v6632_v3  ;;  %v1099_v32 = vcombine.high %v1089_v28, %v6632_v3  ;;  %v1100_v34 = vcombine.high %v1096_v19, %v6632_v3 }
 0x42e   : > { %1257 = vxpose.xlu1.c.b16.start.end [1/1] (short) (narrow) %v1187_v20, 32  ;;  %1353 = vxpose.xlu0.c.b16.start.end [1/1] (short) (narrow) %v1193_v21, 32  ;;  %v1188_v27 = vpack.c.bf16 %v1097_v23, %v1097_v23 }
 0x42f   : > { %v1190_v31 = vpack.c.bf16 %v1098_v30, %v1098_v30  ;;  %v1192_v33 = vpack.c.bf16 %v1099_v32, %v1099_v32  ;;  %v1194_v35 = vpack.c.bf16 %v1100_v34, %v1100_v34 }
 0x433   : > { %1289 = vxpose.xlu1.c.b16.start.end [1/1] (short) (narrow) %v1189_v26, 32  ;;  %1273 = vxpose.xlu0.c.b16.start.end [1/1] (short) (narrow) %v1188_v27, 32 }
 0x438   : > { %1321 = vxpose.xlu1.c.b16.start.end [1/1] (short) (narrow) %v1191_v29, 32 }
 0x43d   : > { %1305 = vxpose.xlu1.c.b16.start.end [1/1] (short) (narrow) %v1190_v31, 32 }
 0x442   : > { %1337 = vxpose.xlu1.c.b16.start.end [1/1] (short) (narrow) %v1192_v33, 32 }
 0x447   : > { %1369 = vxpose.xlu1.c.b16.start.end [1/1] (short) (narrow) %v1194_v35, 32 }
 0x494   : > { %v1265_v38 = vpop.trf.xlu1  ;;  %v1361_v50 = vpop.trf.xlu0 }
 0x495   : > { %v1413_v60 = vshrl.u32 %v1361_v50, 16  ;;  %v1389_v14 = vshrl.u32 %v1265_v38, 16 }
 0x498   : > { %v7201_v39 = vpop.trf.xlu1  ;;  %v7211_v53 = vpop.trf.xlu0 }
 0x49c   : > { %v1297_v40 = vpop.trf.xlu1  ;;  %v1281_v55 = vpop.trf.xlu0 }
 0x49d   : > { %v1387_v59 = vpack.i.b16 %v1281_v55, %v1265_v38  ;;  %v1397_v6 = vshrl.u32 %v1297_v40, 16  ;;  %v1390_v7 = vshrl.u32 %v1281_v55, 16 }
 0x49f   : > { %v1391_v20 = vpack.i.b16 %v1390_v7, %v1389_v14 }
 0x4a0   : > { %v7203_v41 = vpop.trf.xlu1 }
 0x4a4   : > { %v1329_v46 = vpop.trf.xlu1 }
 0x4a5   : > { %v1405_v8 = vshrl.u32 %v1329_v46, 16 }
 0x4a8   : > { %v7207_v48 = vpop.trf.xlu1 }
 0x4ac   : > { %v1313_v51 = vpop.trf.xlu1 }
 0x4ad   : > { %v1398_v61 = vshrl.u32 %v1313_v51, 16  ;;  %v1395_v0 = vpack.i.b16 %v1313_v51, %v1297_v40 }
 0x4af   : > { %v1399_v15 = vpack.i.b16 %v1398_v61, %v1397_v6 }
 0x4b0   : > { %v7209_v52 = vpop.trf.xlu1 }
 0x4b4   : > { %v1345_v54 = vpop.trf.xlu1 }
 0x4b5   : > { %v1403_v57 = vpack.i.b16 %v1345_v54, %v1329_v46  ;;  %v1406_v62 = vshrl.u32 %v1345_v54, 16 }
 0x4b7   : > { %v1449_v1 = vcombine.low %v1387_v59, %v1403_v57  ;;  %v1450_v9 = vcombine.high %v1387_v59, %v1403_v57  ;;  %v1407_v16 = vpack.i.b16 %v1406_v62, %v1405_v8  ;;  %v1282_v62 = vpop.trf.xlu0 }
 0x4b8   : > { %v7213_v56 = vpop.trf.xlu1 }
 0x4b9   : > { %v1457_v17 = vrot.slane %v1449_v1, %v7180_v4  ;;  %v1464_v23 = vrot.slane %v1450_v9, %v7180_v4  ;;  %v1517_v26 = vcombine.low %v1391_v20, %v1407_v16  ;;  %v1518_v33 = vcombine.high %v1391_v20, %v1407_v16 }
 0x4ba   : > { %v1427_v1 = vpack.i.b16 %v7209_v52, %v7203_v41  ;;  %v1438_v14 = vshrl.u32 %v7213_v56, 16 }
 0x4bb   : > { %v1525_v32 = vrot.slane %v1517_v26, %v7180_v4 }
 0x4bc   : > { %v1377_v63 = vpop.trf.xlu1 }
 0x4bd   : > { %v1411_v2 = vpack.i.b16 %v1377_v63, %v1361_v50  ;;  %v1414_v5 = vshrl.u32 %v1377_v63, 16  ;;  %v1532_v50 = vrot.slane %v1518_v33, %v7180_v4 }
 0x4bf   : > { %v1415_v11 = vpack.i.b16 %v1414_v5, %v1413_v60  ;;  %v1465_v12 = vcombine.low %v1395_v0, %v1411_v2  ;;  %v1466_v13 = vcombine.high %v1395_v0, %v1411_v2  ;;  %v1435_v2 = vpack.i.b16 %v7213_v56, %v7207_v48 }
 0x4c0   : > { %v1378_v55 = vpop.trf.xlu1  ;;  %v1419_v5 = vpack.i.b16 %v1282_v62, %v7201_v39 }
 0x4c1   : > { %v1473_v18 = vrot.slane %v1465_v12, %v7180_v4  ;;  %v1480_v19 = vrot.slane %v1466_v13, %v7180_v4  ;;  %v1533_v21 = vcombine.low %v1399_v15, %v1415_v11  ;;  %v1534_v31 = vcombine.high %v1399_v15, %v1415_v11 }
 0x4c2   : > { %v1443_v60 = vpack.i.b16 %v1378_v55, %v7211_v53  ;;  %v1446_v8 = vshrl.u32 %v1378_v55, 16  ;;  %v1585_v11 = vcombine.low %v1419_v5, %v1435_v2  ;;  %v1445_v12 = vshrl.u32 %v7211_v53, 16 }
 0x4c3   : > { %v1482_v22 = vcombine.high %v1457_v17, %v1473_v18  ;;  %v1481_v24 = vcombine.low %v1457_v17, %v1473_v18  ;;  %v1497_v28 = vcombine.low %v1464_v23, %v1480_v19  ;;  %v1541_v30 = vrot.slane %v1533_v21, %v7180_v4 }
 0x4c4   : > { %v1498_v35 = vcombine.high %v1464_v23, %v1480_v19  ;;  %v1548_v46 = vrot.slane %v1534_v31, %v7180_v4  ;;  %v1601_v6 = vcombine.low %v1427_v1, %v1443_v60  ;;  %v1430_v13 = vshrl.u32 %v7209_v52, 16 }
 0x4c5   : > { %v1496_v27 = vrot.slane %v1482_v22, %v7183_v10  ;;  %v1489_v29 = vrot.slane %v1481_v24, %v7183_v10  ;;  %v1505_v34 = vrot.slane %v1497_v28, %v7183_v10  ;;  %v1550_v40 = vcombine.high %v1525_v32, %v1541_v30 }
 0x4c6   : > { %v1512_v51 = vrot.slane %v1498_v35, %v7183_v10  ;;  %v1549_v54 = vcombine.low %v1525_v32, %v1541_v30  ;;  %v1565_v59 = vcombine.low %v1532_v50, %v1548_v46  ;;  %v1566_v0 = vcombine.high %v1532_v50, %v1548_v46 }
 0x4c7   : > { %1785 = vxpose.xlu1.c.b16.start.end [1/1] (short) (narrow) %v1496_v27, 16  ;;  %1721 = vxpose.xlu0.c.b16.start.end [1/1] (short) (narrow) %v1489_v29, 16  ;;  %v1513_v38 = vcombine.high %v1489_v29, %v6633_v25  ;;  %v1564_v57 = vrot.slane %v1550_v40, %v7183_v10  ;;  %v1514_v7 = vcombine.high %v1496_v27, %v6633_v25  ;;  %v1429_v15 = vshrl.u32 %v7203_v41, 16 }
 0x4c8   : > { %v1557_v61 = vrot.slane %v1549_v54, %v7183_v10  ;;  %v1573_v63 = vrot.slane %v1565_v59, %v7183_v10  ;;  %v1580_v9 = vrot.slane %v1566_v0, %v7183_v10  ;;  %v1515_v16 = vcombine.high %v1505_v34, %v6633_v25 }
 0x4c9   : > { %v1609_v17 = vrot.slane %v1601_v6, %v7180_v4  ;;  %v1422_v18 = vshrl.u32 %v1282_v62, 16  ;;  %v1437_v19 = vshrl.u32 %v7207_v48, 16  ;;  %v1447_v20 = vpack.i.b16 %v1446_v8, %v1445_v12 }
 0x4ca   : > { %v1581_v21 = vcombine.high %v1557_v61, %v6633_v25  ;;  %v1593_v53 = vrot.slane %v1585_v11, %v7180_v4  ;;  %v1421_v52 = vshrl.u32 %v7201_v39, 16  ;;  %v1431_v22 = vpack.i.b16 %v1430_v13, %v1429_v15 }
 0x4cb   : > { %1849 = vxpose.xlu1.c.b16.start.end [1/1] (short) (narrow) %v1505_v34, 16  ;;  %1753 = vxpose.xlu0.c.b16.start.end [1/1] (short) (narrow) %v1513_v38, 16  ;;  %v1439_v56 = vpack.i.b16 %v1438_v14, %v1437_v19  ;;  %v1602_v23 = vcombine.high %v1427_v1, %v1443_v60  ;;  %v1516_v41 = vcombine.high %v1512_v51, %v6633_v25 }
 0x4cc   : > { %v1617_v24 = vcombine.low %v1593_v53, %v1609_v17  ;;  %v1423_v26 = vpack.i.b16 %v1422_v18, %v1421_v52  ;;  %v1582_v27 = vcombine.high %v1564_v57, %v6633_v25  ;;  %v1669_v28 = vcombine.low %v1431_v22, %v1447_v20 }
 0x4cd   : > { %v1586_v48 = vcombine.high %v1419_v5, %v1435_v2  ;;  %v1618_v31 = vcombine.high %v1593_v53, %v1609_v17  ;;  %v1616_v39 = vrot.slane %v1602_v23, %v7180_v4  ;;  %v1583_v32 = vcombine.high %v1573_v63, %v6633_v25 }
 0x4ce   : > { %v1653_v29 = vcombine.low %v1423_v26, %v1439_v56  ;;  %v1625_v30 = vrot.slane %v1617_v24, %v7183_v10  ;;  %v1677_v33 = vrot.slane %v1669_v28, %v7180_v4  ;;  %v1584_v46 = vcombine.high %v1580_v9, %v6633_v25 }
 0x4cf   : > { %1913 = vxpose.xlu1.c.b16.start.end [1/1] (short) (narrow) %v1512_v51, 16  ;;  %1801 = vxpose.xlu0.c.b16.start.end [1/1] (short) (narrow) %v1564_v57, 16  ;;  %v1600_v34 = vrot.slane %v1586_v48, %v7180_v4  ;;  %v1632_v38 = vrot.slane %v1618_v31, %v7183_v10  ;;  %v1670_v51 = vcombine.high %v1431_v22, %v1447_v20 }
 0x4d0   : > { %v1661_v35 = vrot.slane %v1653_v29, %v7180_v4  ;;  %v1654_v54 = vcombine.high %v1423_v26, %v1439_v56  ;;  %v1649_v2 = vcombine.high %v1625_v30, %v6633_v25 }
 0x4d1   : > { %v1633_v40 = vcombine.low %v1600_v34, %v1616_v39  ;;  %v1634_v57 = vcombine.high %v1600_v34, %v1616_v39 }
 0x4d2   : > { %v1685_v50 = vcombine.low %v1661_v35, %v1677_v33  ;;  %v1686_v60 = vcombine.high %v1661_v35, %v1677_v33  ;;  %v1668_v62 = vrot.slane %v1654_v54, %v7180_v4 }
 0x4d3   : > { %1737 = vxpose.xlu1.c.b16.start.end [1/1] (short) (narrow) %v1557_v61, 16  ;;  %1865 = vxpose.xlu0.c.b16.start.end [1/1] (short) (narrow) %v1573_v63, 16  ;;  %v1641_v55 = vrot.slane %v1633_v40, %v7183_v10  ;;  %v1684_v61 = vrot.slane %v1670_v51, %v7180_v4  ;;  %v1648_v63 = vrot.slane %v1634_v57, %v7183_v10 }
 0x4d4   : > { %v1693_v59 = vrot.slane %v1685_v50, %v7183_v10  ;;  %v1700_v0 = vrot.slane %v1686_v60, %v7183_v10 }
 0x4d5   : > { %v1701_v1 = vcombine.low %v1668_v62, %v1684_v61  ;;  %v1702_v6 = vcombine.high %v1668_v62, %v1684_v61  ;;  %v1651_v11 = vcombine.high %v1641_v55, %v6633_v25  ;;  %v1652_v14 = vcombine.high %v1648_v63, %v6633_v25 }
 0x4d6   : > { %v1717_v12 = vcombine.high %v1693_v59, %v6633_v25  ;;  %v1718_v15 = vcombine.high %v1700_v0, %v6633_v25 }
 0x4d7   : > { %1817 = vxpose.xlu1.c.b16.start.end [1/1] (short) (narrow) %v1514_v7, 16  ;;  %1929 = vxpose.xlu0.c.b16.start.end [1/1] (short) (narrow) %v1580_v9, 16  ;;  %v1709_v5 = vrot.slane %v1701_v1, %v7183_v10  ;;  %v1650_v7 = vcombine.high %v1632_v38, %v6633_v25  ;;  %v1716_v8 = vrot.slane %v1702_v6, %v7183_v10  ;;  %v730_v9 = vsub.s32 2, %v7154_v42 }
 0x4d9   : > { %v731_v13 = vrot.slane %v7158_v45, %v730_v9  ;;  %v1719_v17 = vcombine.high %v1709_v5, %v6633_v25  ;;  %v1720_v18 = vcombine.high %v1716_v8, %v6633_v25 }
 0x4db   : > { %1881 = vxpose.xlu1.c.b16.start.end [1/1] (short) (narrow) %v1515_v16, 16  ;;  %1769 = vxpose.xlu0.c.b16.start.end [1/1] (short) (narrow) %v1581_v21, 16  ;;  %v7278_v16 = vadd.f32 %v7166_v49, %v731_v13 }
 0x4df   : > { %1945 = vxpose.xlu1.c.b16.start.end [1/1] (short) (narrow) %v1516_v41, 16  ;;  %1833 = vxpose.xlu0.c.b16.start.end [1/1] (short) (narrow) %v1582_v27, 16 }
 0x4e3   : > { %1977 = vxpose.xlu1.c.b16.start.end [1/1] (short) (narrow) %v1625_v30, 16  ;;  %1897 = vxpose.xlu0.c.b16.start.end [1/1] (short) (narrow) %v1583_v32, 16 }
 0x4e7   : > { %2041 = vxpose.xlu1.c.b16.start.end [1/1] (short) (narrow) %v1632_v38, 16  ;;  %1961 = vxpose.xlu0.c.b16.start.end [1/1] (short) (narrow) %v1584_v46, 16 }
 0x4eb   : > { %2105 = vxpose.xlu1.c.b16.start.end [1/1] (short) (narrow) %v1641_v55, 16  ;;  %1993 = vxpose.xlu0.c.b16.start.end [1/1] (short) (narrow) %v1693_v59, 16 }
 0x4ef   : > { %2169 = vxpose.xlu1.c.b16.start.end [1/1] (short) (narrow) %v1648_v63, 16  ;;  %2057 = vxpose.xlu0.c.b16.start.end [1/1] (short) (narrow) %v1700_v0, 16 }
 0x4f3   : > { %2009 = vxpose.xlu1.c.b16.start.end [1/1] (short) (narrow) %v1649_v2, 16  ;;  %2121 = vxpose.xlu0.c.b16.start.end [1/1] (short) (narrow) %v1709_v5, 16 }
 0x4f7   : > { %2073 = vxpose.xlu1.c.b16.start.end [1/1] (short) (narrow) %v1650_v7, 16  ;;  %2185 = vxpose.xlu0.c.b16.start.end [1/1] (short) (narrow) %v1716_v8, 16 }
 0x4fb   : > { %2137 = vxpose.xlu1.c.b16.start.end [1/1] (short) (narrow) %v1651_v11, 16  ;;  %2025 = vxpose.xlu0.c.b16.start.end [1/1] (short) (narrow) %v1717_v12, 16 }
 0x4ff   : > { %2201 = vxpose.xlu1.c.b16.start.end [1/1] (short) (narrow) %v1652_v14, 16  ;;  %2089 = vxpose.xlu0.c.b16.start.end [1/1] (short) (narrow) %v1718_v15, 16  ;;  %v971_v15 = vcombine.low %v7205_v47, %v7199_v37 }
 0x503   : > { %1102 = vrot.lane.b32.xlu1 %v7278_v16, %s6636_s23  ;;  %2153 = vxpose.xlu0.c.b16.start.end [1/1] (short) (narrow) %v1719_v17, 16  ;;  %v972_v17 = vcombine.high %v7205_v47, %v7199_v37 }
 0x507   : > { %1108 = vrot.lane.b32.xlu1 %v7278_v16, %s6635_s0  ;;  %2217 = vxpose.xlu0.c.b16.start.end [1/1] (short) (narrow) %v1720_v18, 16 }
 0x510   : > { %1105 = vrot.lane.b32.xlu0 %v7278_v16, %s6637_s20 }
 0x52d   : > { %v1793_v45 = vpop.trf.xlu1  ;;  %v1729_v19 = vpop.trf.xlu0 }
 0x52e   : > { %v2233_v32 = vcombine.low %v1729_v19, %v1793_v45  ;;  %v955_v19 = vcombine.low %v7170_v58, %v7197_v36 }
 0x530   : > { %v2240_v54 = vrot.slane %v2233_v32, %v7180_v4  ;;  %v963_v37 = vrot.slane %v955_v19, %v7180_v4 }
 0x531   : > { %v1857_v20 = vpop.trf.xlu1  ;;  %v1761_v49 = vpop.trf.xlu0 }
 0x535   : > { %v1921_v21 = vpop.trf.xlu1  ;;  %v1809_v53 = vpop.trf.xlu0 }
 0x536   : > { %v2249_v48 = vcombine.low %v1857_v20, %v1921_v21  ;;  %v956_v20 = vcombine.high %v7170_v58, %v7197_v36  ;;  %v979_v21 = vrot.slane %v971_v15, %v7180_v4 }
 0x538   : > { %v2256_v35 = vrot.slane %v2249_v48, %v7180_v4  ;;  %v970_v47 = vrot.slane %v956_v20, %v7180_v4 }
 0x539   : > { %v1745_v52 = vpop.trf.xlu1  ;;  %v1873_v22 = vpop.trf.xlu0 }
 0x53a   : > { %v2283_v33 = vcombine.low %v1745_v52, %v1809_v53  ;;  %v986_v53 = vrot.slane %v972_v17, %v7180_v4 }
 0x53c   : > { %v2290_v55 = vrot.slane %v2283_v33, %v7180_v4 }
 0x53d   : > { %v1825_v56 = vpop.trf.xlu1  ;;  %v1937_v23 = vpop.trf.xlu0 }
 0x53e   : > { %v2241_v29 = vcombine.low %v1761_v49, %v1825_v56  ;;  %v2299_v40 = vcombine.low %v1873_v22, %v1937_v23  ;;  %v987_v56 = vcombine.low %v963_v37, %v979_v21  ;;  %v988_v23 = vcombine.high %v963_v37, %v979_v21 }
 0x540   : > { %v2248_v38 = vrot.slane %v2241_v29, %v7180_v4  ;;  %v2306_v61 = vrot.slane %v2299_v40, %v7180_v4  ;;  %v995_v36 = vrot.slane %v987_v56, %v7183_v10 }
 0x541   : > { %v1889_v41 = vpop.trf.xlu1  ;;  %v1777_v24 = vpop.trf.xlu0 }
 0x542   : > { %v2265_v60 = vcombine.low %v2240_v54, %v2248_v38  ;;  %v1019_v32 = vcombine.high %v995_v36, %v6632_v3 }
 0x544   : > { %v7304_v6 = vrot.slane %v2265_v60, %v7183_v10 }
 0x545   : > { %v1953_v26 = vpop.trf.xlu1  ;;  %v1841_v27 = vpop.trf.xlu0 }
 0x546   : > { %v2257_v28 = vcombine.low %v1889_v41, %v1953_v26  ;;  %v2291_v30 = vcombine.low %v1777_v24, %v1841_v27  ;;  %v1003_v41 = vcombine.low %v970_v47, %v986_v53  ;;  %v1004_v24 = vcombine.high %v970_v47, %v986_v53 }
 0x547   : > { %v1002_v27 = vrot.slane %v988_v23, %v7183_v10 }
 0x548   : > { %v2264_v34 = vrot.slane %v2257_v28, %v7180_v4  ;;  %v2298_v46 = vrot.slane %v2291_v30, %v7180_v4  ;;  %v1011_v28 = vrot.slane %v1003_v41, %v7183_v10  ;;  %v1018_v48 = vrot.slane %v1004_v24, %v7183_v10 }
 0x549   : > { %v7288_v31 = vpop.trf.xlu1  ;;  %v1905_v39 = vpop.trf.xlu0  ;;  %v1020_v33 = vcombine.high %v1002_v27, %v6632_v3 }
 0x54a   : > { %v2273_v57 = vcombine.low %v2256_v35, %v2264_v34  ;;  %v2315_v62 = vcombine.low %v2290_v55, %v2298_v46  ;;  %v1021_v34 = vcombine.high %v1011_v28, %v6632_v3  ;;  %v1022_v35 = vcombine.high %v1018_v48, %v6632_v3 }
 0x54b   : > { %v5498_v15 = vpack.c.bf16 %v1011_v28, %v995_v36 }
 0x54c   : > { %v7301_v2 = vrot.slane %v2273_v57, %v7183_v10  ;;  %v7307_v7 = vrot.slane %v2315_v62, %v7183_v10  ;;  %v5501_v60 = vpack.c.bf16 %v1022_v35, %v1020_v33 }
 0x54d   : > { %v7294_v50 = vpop.trf.xlu1  ;;  %v1969_v51 = vpop.trf.xlu0  ;;  %v1202_v21 = vrot.slane %v5498_v15, %v7180_v4 }
 0x54e   : > { %v2307_v59 = vcombine.low %v1905_v39, %v1969_v51  ;;  %v7314_v13 = vcombine.low %v7304_v6, %v7301_v2  ;;  %v2333_v54 = vcombine.low %v7288_v31, %v7294_v50 }
 0x550   : > { %v2314_v63 = vrot.slane %v2307_v59, %v7180_v4  ;;  %v5500_v59 = vpack.c.bf16 %v1021_v34, %v1019_v32  ;;  %v2340_v17 = vrot.slane %v2333_v54, %v7180_v4 }
 0x551   : > { %v2113_v0 = vpop.trf.xlu1  ;;  %v2001_v1 = vpop.trf.xlu0 }
 0x552   : > { %v2323_v5 = vcombine.low %v2306_v61, %v2314_v63 }
 0x554   : > { %v7310_v8 = vrot.slane %v2323_v5, %v7183_v10 }
 0x555   : > { %v2177_v11 = vpop.trf.xlu1  ;;  %v2065_v12 = vpop.trf.xlu0 }
 0x556   : > { %v7318_v14 = vcombine.low %v7307_v7, %v7310_v8  ;;  %v2349_v38 = vcombine.low %v2113_v0, %v2177_v11  ;;  %v2383_v55 = vcombine.low %v2001_v1, %v2065_v12  ;;  %v5499_v0 = vpack.c.bf16 %v1018_v48, %v1002_v27 }
 0x557   : > { %v1227_v1 = vrot.slane %v5500_v59, %v7180_v4  ;;  %v1235_v12 = vrot.slane %v5501_v60, %v7180_v4  ;;  %v2332_v35 = vcombine.high %v7307_v7, %v7310_v8 }
 0x558   : > { %v2435_v45 = vpack.i.b16 %v7318_v14, %v7314_v13  ;;  %v2356_v61 = vrot.slane %v2349_v38, %v7180_v4  ;;  %v1210_v53 = vrot.slane %v5499_v0, %v7180_v4  ;;  %v2438_v28 = vshrl.u32 %v7318_v14, 16 }
 0x559   : > { %v2017_v18 = vpop.trf.xlu1  ;;  %v2129_v49 = vpop.trf.xlu0  ;;  %v1236_v47 = vcombine.low %v1227_v1, %v1235_v12  ;;  %v2446_v15 = vshrl.u32 %v2332_v35, 16 }
 0x55a   : > { %5703 = vmatpush3.bf16.msra.mxu1 %v2435_v45  ;;  %v1211_v41 = vcombine.low %v1202_v21, %v1210_v53 }
 0x55b   : > { %5704 = vmatprep.subr.bf16.mxu1 %v6632_v3 }
 0x55c   : > { %v1218_v48 = vrot.slane %v1211_v41, %v7183_v10 }
 0x55d   : > { %v2081_v52 = vpop.trf.xlu1  ;;  %v2193_v22 = vpop.trf.xlu0 }
 0x55e   : > { %v2341_v40 = vcombine.low %v2017_v18, %v2081_v52  ;;  %v2399_v63 = vcombine.low %v2129_v49, %v2193_v22  ;;  %v2390_v18 = vrot.slane %v2383_v55, %v7180_v4 }
 0x560   : > { %v2348_v62 = vrot.slane %v2341_v40, %v7180_v4  ;;  %v2406_v19 = vrot.slane %v2399_v63, %v7180_v4  ;;  %v1248_v40 = vshrl.u32 %v1218_v48, 16 }
 0x561   : > { %v2145_v26 = vpop.trf.xlu1  ;;  %v2033_v58 = vpop.trf.xlu0 }
 0x562   : > { %v2365_v45 = vcombine.low %v2340_v17, %v2348_v62 }
 0x564   : > { %v2372_v22 = vrot.slane %v2365_v45, %v7183_v10 }
 0x565   : > { %v2209_v29 = vpop.trf.xlu1  ;;  %v2097_v30 = vpop.trf.xlu0 }
 0x566   : > { %v2357_v39 = vcombine.low %v2145_v26, %v2209_v29  ;;  %v2391_v46 = vcombine.low %v2033_v58, %v2097_v30  ;;  %v1243_v58 = vrot.slane %v1236_v47, %v7183_v10  ;;  %v2437_v29 = vshrl.u32 %v7314_v13, 16 }
 0x568   : > { %v2364_v57 = vrot.slane %v2357_v39, %v7180_v4  ;;  %v2398_v5 = vrot.slane %v2391_v46, %v7180_v4  ;;  %v1247_v30 = vpack.i.b16 %v1243_v58, %v1218_v48  ;;  %v2439_v39 = vpack.i.b16 %v2438_v28, %v2437_v29 }
 0x569   : > { %v2161_v51 = vpop.trf.xlu0  ;;  %v1249_v14 = vshrl.u32 %v1243_v58, 16  ;;  %v2282_v46 = vcombine.high %v7304_v6, %v7301_v2  ;;  %v1244_v6 = vcombine.high %v1243_v58, %v6633_v25 }
 0x56a   : > { %v2373_v31 = vcombine.low %v2356_v61, %v2364_v57  ;;  %v2415_v20 = vcombine.low %v2390_v18, %v2398_v5 }
 0x56b   : > { %v1250_v57 = vpack.i.b16 %v1249_v14, %v1248_v40  ;;  %v2443_v60 = vpack.i.b16 %v2332_v35, %v2282_v46  ;;  %v2445_v18 = vshrl.u32 %v2282_v46, 16 }
 0x56c   : > { %v2380_v52 = vrot.slane %v2373_v31, %v7183_v10  ;;  %v2422_v56 = vrot.slane %v2415_v20, %v7183_v10 }
 0x56d   : > { %v2225_v11 = vpop.trf.xlu0 }
 0x56e   : > { %v2407_v50 = vcombine.low %v2161_v51, %v2225_v11  ;;  %v2381_v24 = vcombine.low %v2372_v22, %v2380_v52  ;;  %v2382_v62 = vcombine.high %v2372_v22, %v2380_v52  ;;  %v1219_v11 = vcombine.high %v1218_v48, %v6633_v25 }
 0x56f   : > { %v1255_v52 = vshrl.u32 %v1244_v6, 16 }
 0x570   : > { %v2414_v49 = vrot.slane %v2407_v50, %v7180_v4  ;;  %v2453_v34 = vshrl.u32 %v2381_v24, 16  ;;  %v1253_v50 = vpack.i.b16 %v1244_v6, %v1219_v11  ;;  %v2461_v21 = vshrl.u32 %v2382_v62, 16 }
 0x572   : > { %v2423_v37 = vcombine.low %v2406_v19, %v2414_v49  ;;  %v2447_v19 = vpack.i.b16 %v2446_v15, %v2445_v18 }
 0x574   : > { %v2430_v23 = vrot.slane %v2423_v37, %v7183_v10 }
 0x575   : > { %v1103_v36 = vpop.permute.xlu1 %1102 }
 0x576   : > { %v2431_v26 = vcombine.low %v2422_v56, %v2430_v23  ;;  %v2432_v59 = vcombine.high %v2422_v56, %v2430_v23  ;;  %v1254_v23 = vshrl.u32 %v1219_v11, 16 }
 0x578   : > { %v2451_v27 = vpack.i.b16 %v2431_v26, %v2381_v24  ;;  %v2454_v32 = vshrl.u32 %v2431_v26, 16  ;;  %v2459_v5 = vpack.i.b16 %v2432_v59, %v2382_v62  ;;  %v2462_v20 = vshrl.u32 %v2432_v59, 16 }
 0x579   : > { %v1109_v33 = vpop.permute.xlu1 %1108  ;;  %v1256_v24 = vpack.i.b16 %v1255_v52, %v1254_v23 }
 0x57a   : > { %5705 = vmatpush3.bf16.msra.mxu1 %v2451_v27  ;;  %v2455_v13 = vpack.i.b16 %v2454_v32, %v2453_v34  ;;  %v1127_v38 = vcombine.low %v1103_v36, %v1109_v33  ;;  %v1128_v61 = vcombine.high %v1103_v36, %v1109_v33  ;;  %v2463_v47 = vpack.i.b16 %v2462_v20, %v2461_v21 }
 0x57b   : > { %5710 = vmatprep.subr.bf16.mxu1 %v6632_v3 }
 0x57c   : > { %v1135_v7 = vrot.slane %v1127_v38, %v7180_v4  ;;  %v1142_v0 = vrot.slane %v1128_v61, %v7180_v4 }
 0x57d   : > { %5707 = vmatmul.mubr.msk.bf16.vlgmr.msra.gmra.mrb[4].mxu1 %vm2465_vm1, %v1247_v30 }
 0x57e   : > { %5711 = vmatpush3.bf16.msra.mxu1 %v2439_v39  ;;  %5714 = vmatprep.mubr.msk.bf16.mxu1 %vm6634_vm0, %v6632_v3 }
 0x57f   : > { %5712 = vmatprep.subr.bf16.mxu1 %v6632_v3 }
 0x582   : > { %5713 = vmatpush3.bf16.msra.mxu1 %v2455_v13  ;;  %v1106_v51 = vpop.permute.xlu0 %1105 }
 0x583   : > { %v1111_v54 = vcombine.low %v7278_v16, %v1106_v51  ;;  %v1112_v55 = vcombine.high %v7278_v16, %v1106_v51  ;;  %5718 = vmatprep.subr.bf16.mxu1 %v6632_v3 }
 0x585   : > { %v1119_v8 = vrot.slane %v1111_v54, %v7180_v4  ;;  %5715 = vmatmul.mubr.msk.bf16.vlgmr.msra.gmra.mrb[8].mxu1 %vm2465_vm1, %v1250_v57  ;;  %v1126_v2 = vrot.slane %v1112_v55, %v7180_v4 }
 0x586   : > { %5719 = vmatpush3.bf16.msra.mxu1 %v2443_v60  ;;  %5722 = vmatprep.mubr.msk.bf16.mxu1 %vm6634_vm0, %v6632_v3 }
 0x587   : > { %v1143_v16 = vcombine.low %v1119_v8, %v1135_v7  ;;  %5720 = vmatprep.subr.bf16.mxu1 %v6632_v3  ;;  %v1144_v63 = vcombine.high %v1119_v8, %v1135_v7  ;;  %v1159_v45 = vcombine.low %v1126_v2, %v1142_v0  ;;  %v1160_v56 = vcombine.high %v1126_v2, %v1142_v0 }
 0x589   : > { %v1151_v17 = vrot.slane %v1143_v16, %v7183_v10  ;;  %v1158_v31 = vrot.slane %v1144_v63, %v7183_v10  ;;  %v1167_v37 = vrot.slane %v1159_v45, %v7183_v10  ;;  %v1174_v58 = vrot.slane %v1160_v56, %v7183_v10 }
 0x58a   : > { %5721 = vmatpush3.bf16.msra.mxu1 %v2459_v5 }
 0x58b   : > { %5726 = vmatprep.subr.bf16.mxu1 %v6632_v3  ;;  %v2687_v1 = vpack.c.bf16 %v1151_v17, %v1151_v17  ;;  %v1175_v12 = vcombine.high %v1151_v17, %v6632_v3  ;;  %v1176_v53 = vcombine.high %v1158_v31, %v6632_v3  ;;  %v2689_v22 = vpack.c.bf16 %v1158_v31, %v1158_v31 }
 0x58c   : > { %v1177_v26 = vcombine.high %v1167_v37, %v6632_v3  ;;  %v2691_v36 = vpack.c.bf16 %v1167_v37, %v1167_v37  ;;  %v1178_v28 = vcombine.high %v1174_v58, %v6632_v3  ;;  %v2693_v48 = vpack.c.bf16 %v1174_v58, %v1174_v58 }
 0x58d   : > { %5723 = vmatmul.mubr.msk.bf16.vlgmr.msra.gmra.mrb[12].mxu1 %vm2465_vm1, %v1253_v50  ;;  %2695 = vxpose.xlu0.c.b16.start.end [1/1] (short) (narrow) %v2687_v1, 32  ;;  %v2688_v49 = vpack.c.bf16 %v1175_v12, %v1175_v12  ;;  %v2690_v41 = vpack.c.bf16 %v1176_v53, %v1176_v53 }
 0x58e   : > { %5727 = vmatpush3.bf16.msra.mxu1 %v2447_v19  ;;  %5730 = vmatprep.mubr.msk.bf16.mxu1 %vm6634_vm0, %v6632_v3  ;;  %v2692_v27 = vpack.c.bf16 %v1177_v26, %v1177_v26  ;;  %v2694_v29 = vpack.c.bf16 %v1178_v28, %v1178_v28 }
 0x58f   : > { %2711 = vxpose.xlu1.c.b16.start.end [1/1] (short) (narrow) %v2688_v49, 32  ;;  %5728 = vmatprep.subr.bf16.mxu1 %v6632_v3 }
 0x592   : > { %5729 = vmatpush3.bf16.msra.mxu1 %v2463_v47  ;;  %2727 = vxpose.xlu0.c.b16.start.end [1/1] (short) (narrow) %v2689_v22, 32 }
 0x594   : > { %2743 = vxpose.xlu1.c.b16.start.end [1/1] (short) (narrow) %v2690_v41, 32 }
 0x595   : > { %5731 = vmatmul.mubr.msk.bf16.vlgmr.msra.gmra.mrb[16].mxu1 %vm2465_vm1, %v1256_v24 }
 0x597   : > { %2759 = vxpose.xlu0.c.b16.start.end [1/1] (short) (narrow) %v2691_v36, 32 }
 0x599   : > { %2775 = vxpose.xlu1.c.b16.start.end [1/1] (short) (narrow) %v2692_v27, 32 }
 0x59c   : > { %2791 = vxpose.xlu0.c.b16.start.end [1/1] (short) (narrow) %v2693_v48, 32 }
 0x59e   : > { %2807 = vxpose.xlu1.c.b16.start.end [1/1] (short) (narrow) %v2694_v29, 32 }
 0x5f3   : > { %v2703_v30 = vpop.trf.xlu0 }
 0x5f4   : > { %v2827_v54 = vshrl.u32 %v2703_v30, 16 }
 0x5f5   : > { %v2719_v39 = vpop.trf.xlu1 }
 0x5f6   : > { %v2828_v55 = vshrl.u32 %v2719_v39, 16  ;;  %v7405_v5 = vpack.i.b16 %v2719_v39, %v2703_v30 }
 0x5f7   : > { %v2704_v32 = vpop.trf.xlu0 }
 0x5f8   : > { %v2859_v46 = vshrl.u32 %v2704_v32, 16  ;;  %v7407_v15 = vpack.i.b16 %v2828_v55, %v2827_v54 }
 0x5f9   : > { %v2720_v33 = vpop.trf.xlu1 }
 0x5fa   : > { %v2860_v51 = vshrl.u32 %v2720_v33, 16  ;;  %v7401_v59 = vpack.i.b16 %v2720_v33, %v2704_v32 }
 0x5fb   : > { %v2735_v34 = vpop.trf.xlu0 }
 0x5fc   : > { %v2835_v8 = vshrl.u32 %v2735_v34, 16  ;;  %v2861_v16 = vpack.i.b16 %v2860_v51, %v2859_v46 }
 0x5fd   : > { %v2751_v14 = vpop.trf.xlu1 }
 0x5fe   : > { %v2836_v62 = vshrl.u32 %v2751_v14, 16  ;;  %v7409_v0 = vpack.i.b16 %v2751_v14, %v2735_v34 }
 0x5ff   : > { %v2736_v35 = vpop.trf.xlu0 }
 0x600   : > { %v2837_v12 = vpack.i.b16 %v2836_v62, %v2835_v8  ;;  %v2867_v45 = vshrl.u32 %v2736_v35, 16 }
 0x601   : > { %v2752_v13 = vpop.trf.xlu1 }
 0x602   : > { %v2868_v20 = vshrl.u32 %v2752_v13, 16  ;;  %v2865_v47 = vpack.i.b16 %v2752_v13, %v2736_v35 }
 0x603   : > { %v2767_v38 = vpop.trf.xlu0 }
 0x604   : > { %v2843_v60 = vshrl.u32 %v2767_v38, 16  ;;  %v2869_v26 = vpack.i.b16 %v2868_v20, %v2867_v45 }
 0x605   : > { %v2783_v40 = vpop.trf.xlu1 }
 0x606   : > { %v2844_v61 = vshrl.u32 %v2783_v40, 16  ;;  %v7411_v11 = vpack.i.b16 %v2783_v40, %v2767_v38 }
 0x607   : > { %v2768_v57 = vpop.trf.xlu0 }
 0x608   : > { %v2875_v7 = vshrl.u32 %v2768_v57, 16  ;;  %v7413_v18 = vpack.i.b16 %v2844_v61, %v2843_v60  ;;  %v2887_v52 = vcombine.low %v7405_v5, %v7411_v11 }
 0x609   : > { %v2784_v2 = vpop.trf.xlu1 }
 0x60a   : > { %v7403_v6 = vpack.i.b16 %v2784_v2, %v2768_v57  ;;  %v2876_v63 = vshrl.u32 %v2784_v2, 16  ;;  %v2955_v22 = vcombine.low %v7407_v15, %v7413_v18  ;;  %v2895_v28 = vrot.slane %v2887_v52, %v7180_v4 }
 0x60b   : > { %v2799_v17 = vpop.trf.xlu0 }
 0x60c   : > { %v2877_v31 = vpack.i.b16 %v2876_v63, %v2875_v7  ;;  %v3024_v50 = vcombine.high %v7401_v59, %v7403_v6  ;;  %v2851_v1 = vshrl.u32 %v2799_v17, 16  ;;  %v2963_v39 = vrot.slane %v2955_v22, %v7180_v4 }
 0x60d   : > { %v2815_v19 = vpop.trf.xlu1  ;;  %v3023_v14 = vcombine.low %v7401_v59, %v7403_v6 }
 0x60e   : > { %v3092_v49 = vcombine.high %v2861_v16, %v2877_v31  ;;  %v2849_v21 = vpack.i.b16 %v2815_v19, %v2799_v17  ;;  %v2852_v53 = vshrl.u32 %v2815_v19, 16  ;;  %v3091_v33 = vcombine.low %v2861_v16, %v2877_v31 }
 0x60f   : > { %v2800_v37 = vpop.trf.xlu0  ;;  %v7444_v7 = vrot.slane %v3023_v14, %v7180_v4  ;;  %v2888_v31 = vcombine.high %v7405_v5, %v7411_v11 }
 0x610   : > { %v2853_v56 = vpack.i.b16 %v2852_v53, %v2851_v1  ;;  %v2903_v23 = vcombine.low %v7409_v0, %v2849_v21  ;;  %v2883_v41 = vshrl.u32 %v2800_v37, 16  ;;  %v7437_v57 = vrot.slane %v3091_v33, %v7180_v4 }
 0x611   : > { %v2816_v24 = vpop.trf.xlu1  ;;  %v7440_v59 = vrot.slane %v3092_v49, %v7180_v4  ;;  %v2904_v60 = vcombine.high %v7409_v0, %v2849_v21  ;;  %v7468_v21 = vrot.slane %v3024_v50, %v7180_v4  ;;  %v2902_v11 = vrot.slane %v2888_v31, %v7180_v4 }
 0x612   : > { %v2971_v58 = vcombine.low %v2837_v12, %v2853_v56  ;;  %v2881_v36 = vpack.i.b16 %v2816_v24, %v2800_v37  ;;  %v2884_v27 = vshrl.u32 %v2816_v24, 16  ;;  %v2911_v48 = vrot.slane %v2903_v23, %v7180_v4 }
 0x613   : > { %v2972_v61 = vcombine.high %v2837_v12, %v2853_v56  ;;  %v2956_v12 = vcombine.high %v7407_v15, %v7413_v18  ;;  %v2918_v19 = vrot.slane %v2904_v60, %v7180_v4 }
 0x614   : > { %v2885_v29 = vpack.i.b16 %v2884_v27, %v2883_v41  ;;  %v3040_v30 = vcombine.high %v2865_v47, %v2881_v36  ;;  %v2979_v32 = vrot.slane %v2971_v58, %v7180_v4  ;;  %v2919_v34 = vcombine.low %v2895_v28, %v2911_v48 }
 0x615   : > { %v3039_v40 = vcombine.low %v2865_v47, %v2881_v36  ;;  %v2920_v62 = vcombine.high %v2895_v28, %v2911_v48  ;;  %v2986_v49 = vrot.slane %v2972_v61, %v7180_v4  ;;  %v2970_v15 = vrot.slane %v2956_v12, %v7180_v4 }
 0x616   : > { %v3107_v35 = vcombine.low %v2869_v26, %v2885_v29  ;;  %v3108_v13 = vcombine.high %v2869_v26, %v2885_v29  ;;  %v2987_v38 = vcombine.low %v2963_v39, %v2979_v32  ;;  %v2927_v46 = vrot.slane %v2919_v34, %v7183_v10 }
 0x617   : > { %v7448_v2 = vrot.slane %v3039_v40, %v7180_v4  ;;  %v2988_v63 = vcombine.high %v2963_v39, %v2979_v32  ;;  %v2934_v45 = vrot.slane %v2920_v62, %v7183_v10  ;;  %v7471_v5 = vrot.slane %v3040_v30, %v7180_v4  ;;  %v656_v32 = vld [vmem:[#allocation5] sm:$0xff] }
 0x618   : > { %v7430_v51 = vrot.slane %v3107_v35, %v7180_v4  ;;  %v7433_v54 = vrot.slane %v3108_v13, %v7180_v4  ;;  %v2995_v55 = vrot.slane %v2987_v38, %v7183_v10  ;;  %3159 = vxpose.xlu0.c.b16.start.end [1/1] (short) (narrow) %v2927_v46, 16  ;;  %v2951_v8 = vcombine.high %v2927_v46, %v6633_v25 }
 0x619   : > { %v3056_v1 = vcombine.high %v7444_v7, %v7448_v2  ;;  %v3002_v20 = vrot.slane %v2988_v63, %v7183_v10  ;;  %v3071_v18 = vcombine.low %v7468_v21, %v7471_v5  ;;  %v3072_v53 = vcombine.high %v7468_v21, %v7471_v5 }
 0x61a   : > { %3175 = vxpose.xlu1.c.b16.start.end [1/1] (short) (narrow) %v2995_v55, 16  ;;  %v3124_v16 = vcombine.high %v7437_v57, %v7430_v51  ;;  %v3019_v6 = vcombine.high %v2995_v55, %v6633_v25  ;;  %v3139_v0 = vcombine.low %v7440_v59, %v7433_v54  ;;  %v3140_v17 = vcombine.high %v7440_v59, %v7433_v54 }
 0x61b   : > { %v2952_v52 = vcombine.high %v2934_v45, %v6633_v25  ;;  %v2935_v37 = vcombine.low %v2902_v11, %v2918_v19  ;;  %v3020_v50 = vcombine.high %v3002_v20, %v6633_v25  ;;  %v3003_v47 = vcombine.low %v2970_v15, %v2986_v49 }
 0x61c   : > { %3191 = vxpose.xlu0.c.b16.start.end [1/1] (short) (narrow) %v2951_v8, 16  ;;  %v2936_v41 = vcombine.high %v2902_v11, %v2918_v19  ;;  %v3004_v26 = vcombine.high %v2970_v15, %v2986_v49  ;;  %v3055_v28 = vcombine.low %v7444_v7, %v7448_v2  ;;  %v3123_v29 = vcombine.low %v7437_v57, %v7430_v51 }
 0x61d   : > { %v2943_v22 = vrot.slane %v2935_v37, %v7183_v10  ;;  %v3011_v56 = vrot.slane %v3003_v47, %v7183_v10  ;;  %v3154_v57 = vrot.slane %v3140_v17, %v7183_v10  ;;  %v3086_v2 = vrot.slane %v3072_v53, %v7183_v10 }
 0x61e   : > { %3207 = vxpose.xlu1.c.b16.start.end [1/1] (short) (narrow) %v3019_v6, 16  ;;  %v2950_v58 = vrot.slane %v2936_v41, %v7183_v10  ;;  %v3018_v36 = vrot.slane %v3004_v26, %v7183_v10  ;;  %v3063_v30 = vrot.slane %v3055_v28, %v7183_v10  ;;  %v3131_v39 = vrot.slane %v3123_v29, %v7183_v10 }
 0x61f   : > { %v2953_v23 = vcombine.high %v2943_v22, %v6633_v25  ;;  %v3021_v24 = vcombine.high %v3011_v56, %v6633_v25 }
 0x620   : > { %3223 = vxpose.xlu0.c.b16.start.end [1/1] (short) (narrow) %v2934_v45, 16  ;;  %v2954_v27 = vcombine.high %v2950_v58, %v6633_v25  ;;  %v3022_v48 = vcombine.high %v3018_v36, %v6633_v25  ;;  %v3155_v11 = vcombine.high %v3131_v39, %v6633_v25  ;;  %v3087_v47 = vcombine.high %v3063_v30, %v6633_v25 }
 0x622   : > { %3239 = vxpose.xlu1.c.b16.start.end [1/1] (short) (narrow) %v3002_v20, 16 }
 0x624   : > { %3255 = vxpose.xlu0.c.b16.start.end [1/1] (short) (narrow) %v2952_v52, 16 }
 0x626   : > { %3271 = vxpose.xlu1.c.b16.start.end [1/1] (short) (narrow) %v3020_v50, 16 }
 0x628   : > { %3287 = vxpose.xlu0.c.b16.start.end [1/1] (short) (narrow) %v2943_v22, 16 }
 0x62a   : > { %3303 = vxpose.xlu1.c.b16.start.end [1/1] (short) (narrow) %v3011_v56, 16 }
 0x62c   : > { %3319 = vxpose.xlu0.c.b16.start.end [1/1] (short) (narrow) %v2953_v23, 16 }
 0x62e   : > { %3335 = vxpose.xlu1.c.b16.start.end [1/1] (short) (narrow) %v3021_v24, 16 }
 0x630   : > { %3351 = vxpose.xlu0.c.b16.start.end [1/1] (short) (narrow) %v2950_v58, 16 }
 0x632   : > { %3367 = vxpose.xlu1.c.b16.start.end [1/1] (short) (narrow) %v3018_v36, 16 }
 0x634   : > { %3383 = vxpose.xlu0.c.b16.start.end [1/1] (short) (narrow) %v2954_v27, 16 }
 0x636   : > { %3399 = vxpose.xlu1.c.b16.start.end [1/1] (short) (narrow) %v3022_v48, 16 }
 0x638   : > { %3415 = vxpose.xlu0.c.b16.start.end [1/1] (short) (narrow) %v3063_v30, 16 }
 0x63a   : > { %3431 = vxpose.xlu1.c.b16.start.end [1/1] (short) (narrow) %v3131_v39, 16 }
 0x650   : > { %v2503_v33 = vpop.f32.mrb[4].mxu1 }
 0x651   : > { %v7495_v34 = vadd.f32 %v2503_v33, %v656_v32  ;;  %v5708_v14 = vpop.f32.mrb[5].mxu1 }
 0x652   : > { %v2506_v35 = vpop.f32.mrb[6].mxu1 }
 0x653   : > { %v5709_v13 = vpop.f32.mrb[7].mxu1  ;;  %v2639_v38 = vsel %vm2638_vm2, %v7495_v34, -inf }
 0x654   : > { %2640 = vmax.xlane.f32.xlu1 %v2639_v38 }
 0x658   : > { %v2546_v40 = vpop.f32.mrb[8].mxu1 }
 0x659   : > { %v7499_v46 = vadd.f32 %v2546_v40, %v656_v32  ;;  %v5716_v55 = vpop.f32.mrb[9].mxu1 }
 0x65a   : > { %v2549_v60 = vpop.f32.mrb[10].mxu1 }
 0x65b   : > { %v5717_v61 = vpop.f32.mrb[11].mxu1  ;;  %v2642_v8 = vsel %vm2638_vm2, %v7499_v46, -inf }
 0x65c   : > { %2643 = vmax.xlane.f32.xlu0 %v2642_v8 }
 0x660   : > { %v2589_v62 = vpop.f32.mrb[12].mxu1 }
 0x661   : > { %v5724_v6 = vpop.f32.mrb[13].mxu1  ;;  %v7507_v23 = vadd.f32 %v2589_v62, %v656_v32 }
 0x662   : > { %v2592_v63 = vpop.f32.mrb[14].mxu1 }
 0x663   : > { %v5725_v31 = vpop.f32.mrb[15].mxu1  ;;  %v2645_v26 = vsel %vm2638_vm2, %v7507_v23, -inf }
 0x668   : > { %v2632_v12 = vpop.f32.mrb[16].mxu1 }
 0x669   : > { %v7503_v45 = vadd.f32 %v2632_v12, %v656_v32  ;;  %v5732_v19 = vpop.f32.mrb[17].mxu1 }
 0x66a   : > { %v2635_v20 = vpop.f32.mrb[18].mxu1 }
 0x66b   : > { %v5733_v49 = vpop.f32.mrb[19].mxu1  ;;  %v2648_v30 = vsel %vm2638_vm2, %v7503_v45, -inf }
 0x67e   : > { %v3167_v15 = vpop.trf.xlu0 }
 0x680   : > { %v3183_v52 = vpop.trf.xlu1 }
 0x681   : > { %3463 = vxpose.xlu1.c.b16.start.end [1/1] (short) (narrow) %v3155_v11, 16 }
 0x682   : > { %v3199_v37 = vpop.trf.xlu0 }
 0x684   : > { %v3215_v50 = vpop.trf.xlu1 }
 0x686   : > { %v3231_v22 = vpop.trf.xlu0 }
 0x687   : > { %v3671_v28 = vcombine.low %v3167_v15, %v3231_v22 }
 0x688   : > { %v3247_v56 = vpop.trf.xlu1 }
 0x689   : > { %3447 = vxpose.xlu0.c.b16.start.end [1/1] (short) (narrow) %v3087_v47, 16  ;;  %v3721_v39 = vcombine.low %v3183_v52, %v3247_v56  ;;  %v3678_v14 = vrot.slane %v3671_v28, %v7180_v4 }
 0x68a   : > { %v3263_v41 = vpop.trf.xlu0 }
 0x68b   : > { %v3679_v48 = vcombine.low %v3199_v37, %v3263_v41  ;;  %v3728_v40 = vrot.slane %v3721_v39, %v7180_v4  ;;  %v3138_v39 = vrot.slane %v3124_v16, %v7183_v10  ;;  %v3079_v16 = vrot.slane %v3071_v18, %v7183_v10 }
 0x68c   : > { %v3279_v24 = vpop.trf.xlu1 }
 0x68d   : > { %v3729_v33 = vcombine.low %v3215_v50, %v3279_v24  ;;  %v3686_v35 = vrot.slane %v3679_v48, %v7180_v4  ;;  %v3089_v7 = vcombine.high %v3079_v16, %v6633_v25 }
 0x68e   : > { %2646 = vmax.xlane.f32.xlu1 %v2645_v26  ;;  %v3295_v58 = vpop.trf.xlu0 }
 0x68f   : > { %v3736_v55 = vrot.slane %v3729_v33, %v7180_v4  ;;  %v3703_v8 = vcombine.low %v3678_v14, %v3686_v35  ;;  %v3156_v33 = vcombine.high %v3138_v39, %v6633_v25  ;;  %v3070_v14 = vrot.slane %v3056_v1, %v7183_v10 }
 0x690   : > { %v3311_v36 = vpop.trf.xlu1 }
 0x691   : > { %v3753_v31 = vcombine.low %v3728_v40, %v3736_v55  ;;  %v3710_v11 = vrot.slane %v3703_v8, %v7183_v10  ;;  %v3088_v51 = vcombine.high %v3070_v14, %v6633_v25 }
 0x692   : > { %v3327_v27 = vpop.trf.xlu0 }
 0x693   : > { %v3760_v52 = vrot.slane %v3753_v31, %v7183_v10 }
 0x694   : > { %v3343_v29 = vpop.trf.xlu1 }
 0x696   : > { %2649 = vmax.xlane.f32.xlu0 %v2648_v30  ;;  %v3359_v32 = vpop.trf.xlu0 }
 0x697   : > { %v3687_v38 = vcombine.low %v3295_v58, %v3359_v32  ;;  %v3147_v32 = vrot.slane %v3139_v0, %v7183_v10 }
 0x698   : > { %v3375_v13 = vpop.trf.xlu1 }
 0x699   : > { %v3737_v60 = vcombine.low %v3311_v36, %v3375_v13  ;;  %v3694_v6 = vrot.slane %v3687_v38, %v7180_v4  ;;  %v3157_v35 = vcombine.high %v3147_v32, %v6633_v25 }
 0x69a   : > { %v3391_v61 = vpop.trf.xlu0 }
 0x69b   : > { %v3695_v63 = vcombine.low %v3327_v27, %v3391_v61  ;;  %v3744_v12 = vrot.slane %v3737_v60, %v7180_v4 }
 0x69c   : > { %v3407_v62 = vpop.trf.xlu1 }
 0x69d   : > { %v3745_v19 = vcombine.low %v3343_v29, %v3407_v62  ;;  %v3702_v20 = vrot.slane %v3695_v63, %v7180_v4 }
 0x69e   : > { %v3423_v59 = vpop.trf.xlu0 }
 0x69f   : > { %v3752_v49 = vrot.slane %v3745_v19, %v7180_v4  ;;  %v3711_v15 = vcombine.low %v3694_v6, %v3702_v20 }
 0x6a0   : > { %v3439_v0 = vpop.trf.xlu1 }
 0x6a1   : > { %v3761_v37 = vcombine.low %v3744_v12, %v3752_v49  ;;  %v3718_v50 = vrot.slane %v3711_v15, %v7183_v10 }
 0x6a3   : > { %v3768_v47 = vrot.slane %v3761_v37, %v7183_v10  ;;  %v3719_v22 = vcombine.low %v3710_v11, %v3718_v50  ;;  %v7525_v56 = vcombine.high %v3710_v11, %v3718_v50 }
 0x6a5   : > { %v3769_v41 = vcombine.low %v3760_v52, %v3768_v47  ;;  %v7527_v24 = vcombine.high %v3760_v52, %v3768_v47  ;;  %v3874_v26 = vshrl.u32 %v3719_v22, 16  ;;  %v3880_v58 = vshrl.u32 %v7525_v56, 16 }
 0x6a7   : > { %v3873_v36 = vpack.i.b16 %v3769_v41, %v3719_v22  ;;  %v3875_v27 = vshrl.u32 %v3769_v41, 16  ;;  %v3879_v28 = vpack.i.b16 %v7527_v24, %v7525_v56  ;;  %v3881_v48 = vshrl.u32 %v7527_v24, 16 }
 0x6a9   : > { %5736 = vmatprep.mubr.msk.bf16.mxu0 %vm2638_vm2, %v3873_v36  ;;  %v3876_v29 = vpack.i.b16 %v3875_v27, %v3874_v26  ;;  %v7534_v30 = vpack.i.b16 %v3881_v48, %v3880_v58  ;;  %v3090_v36 = vcombine.high %v3086_v2, %v6633_v25  ;;  %v3158_v27 = vcombine.high %v3154_v57, %v6633_v25 }
 0x6ab   : > { %5742 = vmatprep.mubr.msk.bf16.mxu1 %vm2638_vm2, %v3876_v29 }
 0x6bb   : > { %3495 = vxpose.xlu1.c.b16.start.end [1/1] (short) (narrow) %v3138_v39, 16 }
 0x6bf   : > { %3527 = vxpose.xlu1.c.b16.start.end [1/1] (short) (narrow) %v3156_v33, 16 }
 0x6c3   : > { %3559 = vxpose.xlu1.c.b16.start.end [1/1] (short) (narrow) %v3147_v32, 16  ;;  %3479 = vxpose.xlu0.c.b16.start.end [1/1] (short) (narrow) %v3070_v14, 16 }
 0x6c7   : > { %3591 = vxpose.xlu1.c.b16.start.end [1/1] (short) (narrow) %v3157_v35, 16  ;;  %3511 = vxpose.xlu0.c.b16.start.end [1/1] (short) (narrow) %v3088_v51, 16 }
 0x6cb   : > { %3623 = vxpose.xlu1.c.b16.start.end [1/1] (short) (narrow) %v3154_v57, 16  ;;  %3543 = vxpose.xlu0.c.b16.start.end [1/1] (short) (narrow) %v3079_v16, 16 }
 0x6cf   : > { %3575 = vxpose.xlu0.c.b16.start.end [1/1] (short) (narrow) %v3089_v7, 16 }
 0x6d3   : > { %3607 = vxpose.xlu0.c.b16.start.end [1/1] (short) (narrow) %v3086_v2, 16 }
 0x6e1   : > { %v2641_v1 = vpop.xlane.xlu1 %2640 }
 0x6e2   : > { %v2651_v54 = vsub.f32 %v7495_v34, %v2641_v1 }
 0x6e4   : > { %v2655_v17 = vmul.f32 1.442695, %v2651_v54 }
 0x6e6   : > { %6095 = vpow2.f32 %v2655_v17 }
 0x6e7   : > { %v3471_v5 = vpop.trf.xlu1 }
 0x6e9   : > { %v2644_v13 = vpop.xlane.xlu0 %2643 }
 0x6ea   : > { %v2652_v18 = vsub.f32 %v7499_v46, %v2644_v13 }
 0x6ec   : > { %v2657_v38 = vmul.f32 1.442695, %v2652_v18 }
 0x6ee   : > { %6097 = vpow2.f32 %v2657_v38 }
 0x6ef   : > { %v3455_v61 = vpop.trf.xlu0 }
 0x6f0   : > { %v6096_v40 = vpop.eup %6095 }
 0x6f1   : > { %v2663_v55 = vsel %vm2638_vm2, %v6096_v40, 0.0 }
 0x6f2   : > { %2664 = vadd.xlane.f32.xlu0 %v2663_v55 }
 0x6f8   : > { %v6098_v60 = vpop.eup %6097 }
 0x6f9   : > { %v2666_v21 = vsel %vm2638_vm2, %v6098_v60, 0.0 }
 0x6fa   : > { %2667 = vadd.xlane.f32.xlu1 %v2666_v21 }
 0x71b   : > { %v2647_v53 = vpop.xlane.xlu1 %2646 }
 0x71c   : > { %v2653_v34 = vsub.f32 %v7507_v23, %v2647_v53 }
 0x71e   : > { %v2659_v8 = vmul.f32 1.442695, %v2653_v34 }
 0x720   : > { %6099 = vpow2.f32 %v2659_v8 }
 0x721   : > { %v3503_v62 = vpop.trf.xlu1 }
 0x722   : > { %v3821_v46 = vcombine.low %v3439_v0, %v3503_v62 }
 0x723   : > { %v2650_v6 = vpop.xlane.xlu0 %2649 }
 0x724   : > { %v2654_v63 = vsub.f32 %v7503_v45, %v2650_v6  ;;  %v7572_v20 = vrot.slane %v3821_v46, %v7180_v4 }
 0x725   : > { %v3535_v31 = vpop.trf.xlu1 }
 0x726   : > { %v2661_v12 = vmul.f32 1.442695, %v2654_v63  ;;  %v3829_v19 = vcombine.low %v3471_v5, %v3535_v31 }
 0x728   : > { %6101 = vpow2.f32 %v2661_v12  ;;  %v7575_v49 = vrot.slane %v3829_v19, %v7180_v4 }
 0x729   : > { %v3487_v11 = vpop.trf.xlu0  ;;  %v3567_v39 = vpop.trf.xlu1 }
 0x72a   : > { %v6100_v23 = vpop.eup %6099  ;;  %v3853_v15 = vcombine.low %v7572_v20, %v7575_v49  ;;  %v3771_v37 = vcombine.low %v3423_v59, %v3487_v11 }
 0x72b   : > { %v2669_v52 = vsel %vm2638_vm2, %v6100_v23, 0.0 }
 0x72c   : > { %2670 = vadd.xlane.f32.xlu0 %v2669_v52  ;;  %v3778_v47 = vrot.slane %v3771_v37, %v7180_v4 }
 0x72d   : > { %v3519_v45 = vpop.trf.xlu0  ;;  %v3599_v32 = vpop.trf.xlu1 }
 0x72e   : > { %v3779_v50 = vcombine.low %v3455_v61, %v3519_v45 }
 0x730   : > { %v3786_v22 = vrot.slane %v3779_v50, %v7180_v4 }
 0x731   : > { %v3551_v48 = vpop.trf.xlu0  ;;  %v3631_v35 = vpop.trf.xlu1 }
 0x732   : > { %v6102_v41 = vpop.eup %6101  ;;  %v3803_v26 = vcombine.low %v3778_v47, %v3786_v22  ;;  %v3837_v61 = vcombine.low %v3567_v39, %v3631_v35 }
 0x733   : > { %v2672_v58 = vsel %vm2638_vm2, %v6102_v41, 0.0 }
 0x734   : > { %2673 = vadd.xlane.f32.xlu1 %v2672_v58  ;;  %v3810_v34 = vrot.slane %v3803_v26, %v7183_v10  ;;  %v3844_v12 = vrot.slane %v3837_v61, %v7180_v4 }
 0x735   : > { %v3583_v29 = vpop.trf.xlu0 }
 0x739   : > { %v3615_v33 = vpop.trf.xlu0 }
 0x73a   : > { %v3787_v13 = vcombine.low %v3551_v48, %v3615_v33 }
 0x73c   : > { %v3794_v55 = vrot.slane %v3787_v13, %v7180_v4  ;;  %v6008_v13 = vld [vmem:[#allocation13 + $0x18] sm:$0xff]  }
 0x759   : > { %3639 = vxpose.xlu0.c.b16.start.end [1/1] (short) (narrow) %v3090_v36, 16 }
 0x761   : > { %3655 = vxpose.xlu1.c.b16.start.end [1/1] (short) (narrow) %v3158_v27, 16 }
 0x77f   : > { %v2665_v14 = vpop.xlane.xlu0 %2664 }
 0x780   : > { %6103 = vrcp.f32 %v2665_v14 }
 0x787   : > { %v2668_v51 = vpop.xlane.xlu1 %2667 }
 0x788   : > { %6105 = vrcp.f32 %v2668_v51 }
 0x78a   : > { %v6104_v16 = vpop.eup %6103 }
 0x78b   : > { %v2679_v7 = vmul.f32 %v6104_v16, %v6096_v40 }
 0x78d   : > { %v2683_v0 = vpack.c.bf16 %v2679_v7, %v2679_v7 }
 0x78f   : > { %5778 = vmatprep.subr.msk.bf16.mxu0 %vm2638_vm2, %v2683_v0  ;;  %v3902_v2 = vsel %vm2638_vm2, %v2683_v0, 0 }
 0x790   : > { %5735 = vmatpush3.bf16.xpose.msra.mxu0 %v3902_v2 }
 0x792   : > { %v6106_v57 = vpop.eup %6105 }
 0x793   : > { %v2680_v1 = vmul.f32 %v6106_v57, %v6098_v60 }
 0x795   : > { %v2684_v54 = vpack.c.bf16 %v2680_v1, %v2680_v1 }
 0x797   : > { %5779 = vmatprep.subr.msk.bf16.mxu1 %vm2638_vm2, %v2684_v54  ;;  %v3960_v59 = vsel %vm2638_vm2, %v2684_v54, 0  ;;  %v6005_v54 = vld [vmem:[#allocation13] sm:$0xff]  }
 0x798   : > { %5741 = vmatpush3.bf16.xpose.msra.mxu1 %v3960_v59  ;;  %v6006_v59 = vld [vmem:[#allocation13 + $0x8] sm:$0xff]  }
 0x7b9   : > { %v2671_v17 = vpop.xlane.xlu0 %2670 }
 0x7ba   : > { %6107 = vrcp.f32 %v2671_v17  ;;  %v6007_v17 = vld [vmem:[#allocation13 + $0x10] sm:$0xff]  }
 0x7bf   : > { %v3647_v18 = vpop.trf.xlu0 }
 0x7c0   : > { %v3795_v38 = vcombine.low %v3583_v29, %v3647_v18  ;;  %v6009_v18 = vld [vmem:[#allocation13 + $0x20] sm:$0xff]  }
 0x7c1   : > { %v2674_v40 = vpop.xlane.xlu1 %2673 }
 0x7c2   : > { %v3802_v21 = vrot.slane %v3795_v38, %v7180_v4  ;;  %6109 = vrcp.f32 %v2674_v40  ;;  %v6010_v38 = vld [vmem:[#allocation13 + $0x28] sm:$0xff]  }
 0x7c4   : > { %v6108_v5 = vpop.eup %6107  ;;  %v3811_v53 = vcombine.low %v3794_v55, %v3802_v21 }
 0x7c5   : > { %v2681_v60 = vmul.f32 %v6108_v5, %v6100_v23  ;;  %v3860_v23 = vrot.slane %v3853_v15, %v7183_v10 }
 0x7c6   : > { %v3818_v8 = vrot.slane %v3811_v53, %v7183_v10 }
 0x7c7   : > { %v3663_v62 = vpop.trf.xlu1  ;;  %v2685_v6 = vpack.c.bf16 %v2681_v60, %v2681_v60 }
 0x7c8   : > { %v3819_v46 = vcombine.low %v3810_v34, %v3818_v8  ;;  %v3820_v63 = vcombine.high %v3810_v34, %v3818_v8  ;;  %v3845_v31 = vcombine.low %v3599_v32, %v3663_v62 }
 0x7c9   : > { %5780 = vmatprep.subr.msk.bf16.mxu0 %vm2638_vm2, %v2685_v6 }
 0x7ca   : > { %v3852_v19 = vrot.slane %v3845_v31, %v7180_v4  ;;  %v3886_v26 = vshrl.u32 %v3819_v46, 16  ;;  %v3892_v58 = vshrl.u32 %v3820_v63, 16 }
 0x7cc   : > { %v6110_v11 = vpop.eup %6109  ;;  %v3861_v52 = vcombine.low %v3844_v12, %v3852_v19 }
 0x7cd   : > { %v2682_v37 = vmul.f32 %v6110_v11, %v6102_v41  ;;  %v4018_v41 = vsel %vm2638_vm2, %v2685_v6, 0  ;;  %v6011_v11 = vld [vmem:[#allocation13 + $0x30] sm:$0xff]  }
 0x7ce   : > { %v3868_v45 = vrot.slane %v3861_v52, %v7183_v10 }
 0x7cf   : > { %v2686_v50 = vpack.c.bf16 %v2682_v37, %v2682_v37 }
 0x7d0   : > { %v3869_v47 = vcombine.low %v3860_v23, %v3868_v45  ;;  %v3870_v22 = vcombine.high %v3860_v23, %v3868_v45 }
 0x7d1   : > { %5781 = vmatprep.subr.msk.bf16.mxu1 %vm2638_vm2, %v2686_v50  ;;  %v4076_v49 = vsel %vm2638_vm2, %v2686_v50, 0 }
 0x7d2   : > { %v3885_v36 = vpack.i.b16 %v3869_v47, %v3819_v46  ;;  %v3887_v27 = vshrl.u32 %v3869_v47, 16  ;;  %v3891_v48 = vpack.i.b16 %v3870_v22, %v3820_v63  ;;  %v3893_v29 = vshrl.u32 %v3870_v22, 16 }
 0x7d4   : > { %5737 = vmatmul.mubr.msk.bf16.vlgmr.msra.gmra.mrb[4].mxu0 %vm2638_vm2, %v3885_v36  ;;  %v3888_v39 = vpack.i.b16 %v3887_v27, %v3886_v26  ;;  %v3894_v20 = vpack.i.b16 %v3893_v29, %v3892_v58  ;;  %v6012_v29 = vld [vmem:[#allocation13 + $0x38] sm:$0xff]  }
 0x7d5   : > { %5747 = vmatpush3.bf16.xpose.msra.mxu0 %v4018_v41  ;;  %5748 = vmatprep.mubr.msk.bf16.mxu0 %vm2638_vm2, %v3879_v28 }
 0x7d6   : > { %5743 = vmatmul.mubr.msk.bf16.vlgmr.msra.gmra.mrb[20].mxu1 %vm2638_vm2, %v3888_v39  ;;  %5758 = vmatprep.subr.bf16.mxu0 %v6632_v3 }
 0x7d7   : > { %5753 = vmatpush3.bf16.xpose.msra.mxu1 %v4076_v49  ;;  %5754 = vmatprep.mubr.msk.bf16.mxu1 %vm2638_vm2, %v7534_v30 }
 0x7dc   : > { %5749 = vmatmul.mubr.msk.bf16.vlgmr.msra.gmra.mrb[8].mxu0 %vm2638_vm2, %v3891_v48 }
 0x7dd   : > { %5774 = vmatprep.mubr.msk.bf16.mxu0 %vm6634_vm0, %v6632_v3  ;;  %5759 = vmatpush3.bf16.msra.mxu0 %v6005_v54 }
 0x7de   : > { %5755 = vmatmul.mubr.msk.bf16.vlgmr.msra.gmra.mrb[24].mxu1 %vm2638_vm2, %v3894_v20  ;;  %5760 = vmatprep.subr.bf16.mxu0 %v6632_v3 }
 0x7df   : > { %4795 = vmatprep.mubr.bf16.mxu1 %v6633_v25 }
 0x7e1   : > { %5761 = vmatpush3.bf16.msra.mxu0 %v6006_v59  ;;  %v6121_v59 = vld [vmem:[%s7105_s14] sm:$0xff]  ;;  %s7665_s14 = scalar_lea.hbm %s7776_s26, %s5593_s18 }
 0x7e2   : > { %5762 = vmatprep.subr.bf16.mxu0 %v6632_v3 }
 0x7e5   : > { %5763 = vmatpush3.bf16.msra.mxu0 %v6007_v17 }
 0x7e6   : > { %5764 = vmatprep.subr.bf16.mxu0 %v6632_v3 }
 0x7e9   : > { %5765 = vmatpush3.bf16.msra.mxu0 %v6008_v13 }
 0x7ea   : > { %5766 = vmatprep.subr.bf16.mxu0 %v6632_v3 }
 0x7ed   : > { %5767 = vmatpush3.bf16.msra.mxu0 %v6009_v18  ;;  %v6013_v18 = vld [vmem:[#allocation19] ss:$16 sps:$4 sm:$0xff]  }
 0x7ee   : > { %5768 = vmatprep.subr.bf16.mxu0 %v6632_v3 }
 0x7f1   : > { %5769 = vmatpush3.bf16.msra.mxu0 %v6010_v38  ;;  %v6015_v38 = vld [vmem:[#allocation19 + $0x4] ss:$16 sps:$4 sm:$0xff]  }
 0x7f2   : > { %5770 = vmatprep.subr.bf16.mxu0 %v6632_v3  ;;  %4763 = vmatprep.subr.bf16.mxu1 %v6015_v38  ;;  %v6075_v38 = vld [vmem:[#allocation22 + $0x18] sm:$0xff]  }
 0x7f3   : > { %4764 = vmatpush1.bf16.msra.mxu1 %v6013_v18  ;;  %v6074_v18 = vld [vmem:[#allocation22 + $0xd8] sm:$0xff]  }
 0x7f5   : > { %5771 = vmatpush3.bf16.msra.mxu0 %v6011_v11  ;;  %v6034_v11 = vld [vmem:[#allocation19 + $0x68] ss:$16 sps:$4 sm:$0xff]  }
 0x7f6   : > { %5772 = vmatprep.subr.bf16.mxu0 %v6632_v3 }
 0x7f9   : > { %5773 = vmatpush3.bf16.msra.mxu0 %v6012_v29  ;;  %v6057_v29 = vld [vmem:[#allocation19 + $0xe4] ss:$16 sps:$4 sm:$0xff]  }
 0x8a7   : > { %v5738_v56 = vpop.f32.mrb[4].mxu0 }
 0x8a8   : > { %v3938_v24 = vpop.f32.mrb[5].mxu0 }
 0x8a9   : > { %v5744_v28 = vpop.f32.mrb[20].mxu1  ;;  %4127 = vxpose.xlu0.b32.start [1/4] (short) (narrow) %v3938_v24, 8  ;;  %v5739_v15 = vpop.f32.mrb[6].mxu0 }
 0x8aa   : > { %v3941_v33 = vpop.f32.mrb[7].mxu0  ;;  %v3996_v32 = vpop.f32.mrb[21].mxu1 }
 0x8ab   : > { %4159 = vxpose.xlu1.b32.start [1/4] (short) (narrow) %v3996_v32, 8  ;;  %v5745_v14 = vpop.f32.mrb[22].mxu1 }
 0x8ac   : > { %v3999_v35 = vpop.f32.mrb[23].mxu1 }
 0x8ad   : > { %4128 = vxpose.xlu0.b32.cont [2/4] (short) (narrow) %v3941_v33, 8 }
 0x8af   : > { %4160 = vxpose.xlu1.b32.cont [2/4] (short) (narrow) %v3999_v35, 8  ;;  %v5750_v30 = vpop.f32.mrb[8].mxu0 }
 0x8b0   : > { %v4054_v51 = vpop.f32.mrb[9].mxu0 }
 0x8b1   : > { %v5756_v16 = vpop.f32.mrb[24].mxu1  ;;  %4129 = vxpose.xlu0.b32.cont [3/4] (short) (narrow) %v5738_v56, 8  ;;  %v5751_v7 = vpop.f32.mrb[10].mxu0 }
 0x8b2   : > { %v4057_v0 = vpop.f32.mrb[11].mxu0  ;;  %v4112_v2 = vpop.f32.mrb[25].mxu1 }
 0x8b3   : > { %4161 = vxpose.xlu1.b32.cont [3/4] (short) (narrow) %v5744_v28, 8  ;;  %v5757_v57 = vpop.f32.mrb[26].mxu1 }
 0x8b4   : > { %v4115_v1 = vpop.f32.mrb[27].mxu1 }
 0x8b5   : > { %4130 = vxpose.xlu0.b32.end [4/4] (short) (narrow) %v5739_v15, 8 }
 0x8b7   : > { %4162 = vxpose.xlu1.b32.end [4/4] (short) (narrow) %v5745_v14, 8 }
 0x8b9   : > { %4191 = vxpose.xlu0.b32.start [1/4] (short) (narrow) %v4054_v51, 8 }
 0x8bb   : > { %4223 = vxpose.xlu1.b32.start [1/4] (short) (narrow) %v4112_v2, 8 }
 0x8bd   : > { %4192 = vxpose.xlu0.b32.cont [2/4] (short) (narrow) %v4057_v0, 8  ;;  %v5516_v0 = vld [vmem:[#allocation14] ss:$0 sm:$0xff] }
 0x8bf   : > { %4224 = vxpose.xlu1.b32.cont [2/4] (short) (narrow) %v4115_v1, 8 }
 0x8c1   : > { %4193 = vxpose.xlu0.b32.cont [3/4] (short) (narrow) %v5750_v30, 8 }
 0x8c3   : > { %4225 = vxpose.xlu1.b32.cont [3/4] (short) (narrow) %v5756_v16, 8 }
 0x8c5   : > { %4194 = vxpose.xlu0.b32.end [4/4] (short) (narrow) %v5751_v7, 8 }
 0x8c7   : > { %4226 = vxpose.xlu1.b32.end [4/4] (short) (narrow) %v5757_v57, 8 }
 0x929   : > { %v4143_v40 = vpop.trf.xlu0 }
 0x92b   : > { %v4175_v55 = vpop.trf.xlu1 }
 0x939   : > { %v4207_v21 = vpop.trf.xlu0 }
 0x93a   : > { %v4255_v5 = vcombine.low %v4143_v40, %v4207_v21  ;;  %v4256_v53 = vcombine.high %v4143_v40, %v4207_v21  ;;  %v6016_v40 = vld [vmem:[#allocation19 + $0x8] ss:$16 sps:$4 sm:$0xff]   ;;  %v6021_v21 = vld [vmem:[#allocation19 + $0x24] ss:$16 sps:$4 sm:$0xff]  }
 0x93b   : > { %v4239_v60 = vpop.trf.xlu1  ;;  %4765 = vmatprep.subr.bf16.mxu1 %v6021_v21  ;;  %v6078_v21 = vld [vmem:[#allocation22 + $0xe0] sm:$0xff]  }
 0x93c   : > { %v4271_v34 = vcombine.low %v4175_v55, %v4239_v60  ;;  %v4272_v61 = vcombine.high %v4175_v55, %v4239_v60  ;;  %v4263_v8 = vrot.slane %v4255_v5, %v7180_v4  ;;  %v4270_v62 = vrot.slane %v4256_v53, %v7180_v4  ;;  %v6018_v55 = vld [vmem:[#allocation19 + $0xc] ss:$16 sps:$4 sm:$0xff]   ;;  %v6022_v53 = vld [vmem:[#allocation19 + $0x28] ss:$16 sps:$4 sm:$0xff]   ;;  %v6027_v60 = vld [vmem:[#allocation19 + $0x44] ss:$16 sps:$4 sm:$0xff]  }
 0x93d   : > { %v6024_v5 = vld [vmem:[#allocation19 + $0x2c] ss:$16 sps:$4 sm:$0xff]   ;;  %4804 = vmatprep.subr.bf16.mxu0 %v6018_v55  ;;  %v6077_v55 = vld [vmem:[#allocation22 + $0x60] sm:$0xff]  }
 0x93e   : > { %v4279_v6 = vrot.slane %v4271_v34, %v7180_v4  ;;  %v4286_v46 = vrot.slane %v4272_v61, %v7180_v4  ;;  %v6030_v34 = vld [vmem:[#allocation19 + $0x4c] ss:$16 sps:$4 sm:$0xff]   ;;  %v6025_v61 = vld [vmem:[#allocation19 + $0x40] ss:$16 sps:$4 sm:$0xff]  }
 0x940   : > { %v4287_v63 = vcombine.low %v4263_v8, %v4279_v6  ;;  %v4288_v31 = vcombine.high %v4263_v8, %v4279_v6  ;;  %v4303_v12 = vcombine.low %v4270_v62, %v4286_v46  ;;  %v4304_v19 = vcombine.high %v4270_v62, %v4286_v46  ;;  %v6028_v8 = vld [vmem:[#allocation19 + $0x48] ss:$16 sps:$4 sm:$0xff]  }
 0x942   : > { %v4295_v52 = vrot.slane %v4287_v63, %v7183_v10  ;;  %v4302_v37 = vrot.slane %v4288_v31, %v7183_v10  ;;  %v4311_v23 = vrot.slane %v4303_v12, %v7183_v10  ;;  %v4318_v45 = vrot.slane %v4304_v19, %v7183_v10  ;;  %v6033_v31 = vld [vmem:[#allocation19 + $0x64] ss:$16 sps:$4 sm:$0xff]   ;;  %v6036_v12 = vld [vmem:[#allocation19 + $0x6c] ss:$16 sps:$4 sm:$0xff]   ;;  %v6031_v19 = vld [vmem:[#allocation19 + $0x60] ss:$16 sps:$4 sm:$0xff]  }
 0x944   : > { %v4323_v50 = vcombine.low %v4295_v52, %v4302_v37  ;;  %v5514_v47 = vcombine.high %v4295_v52, %v4302_v37  ;;  %v4339_v22 = vcombine.low %v4311_v23, %v4318_v45  ;;  %v5515_v26 = vcombine.high %v4311_v23, %v4318_v45  ;;  %v6037_v52 = vld [vmem:[#allocation19 + $0x80] ss:$16 sps:$4 sm:$0xff]   ;;  %v6039_v37 = vld [vmem:[#allocation19 + $0x84] ss:$16 sps:$4 sm:$0xff]   ;;  %v6040_v23 = vld [vmem:[#allocation19 + $0x88] ss:$16 sps:$4 sm:$0xff]  }
 0x945   : > { %v6042_v45 = vld [vmem:[#allocation19 + $0x8c] ss:$16 sps:$4 sm:$0xff]  }
 0x946   : > { %v4330_v58 = vrot.slane %v4323_v50, %v7180_v4  ;;  %v4338_v36 = vrot.slane %v5514_v47, %v7180_v4  ;;  %v4346_v27 = vrot.slane %v4339_v22, %v7180_v4  ;;  %v4354_v48 = vrot.slane %v5515_v26, %v7180_v4  ;;  %v6045_v50 = vld [vmem:[#allocation19 + $0xa4] ss:$16 sps:$4 sm:$0xff]   ;;  %v6048_v47 = vld [vmem:[#allocation19 + $0xac] ss:$16 sps:$4 sm:$0xff]   ;;  %v6043_v22 = vld [vmem:[#allocation19 + $0xa0] ss:$16 sps:$4 sm:$0xff]  }
 0x947   : > { %v6046_v26 = vld [vmem:[#allocation19 + $0xa8] ss:$16 sps:$4 sm:$0xff]  }
 0x948   : > { %v4356_v41 = vcombine.high %v4330_v58, %v4338_v36  ;;  %v4372_v39 = vcombine.high %v4346_v27, %v4354_v48  ;;  %v4355_v20 = vcombine.low %v4330_v58, %v4338_v36  ;;  %v4371_v49 = vcombine.low %v4346_v27, %v4354_v48  ;;  %v6051_v58 = vld [vmem:[#allocation19 + $0xc4] ss:$16 sps:$4 sm:$0xff]   ;;  %v6054_v36 = vld [vmem:[#allocation19 + $0xcc] ss:$16 sps:$4 sm:$0xff]   ;;  %v6049_v27 = vld [vmem:[#allocation19 + $0xc0] ss:$16 sps:$4 sm:$0xff]  }
 0x949   : > { %v6052_v48 = vld [vmem:[#allocation19 + $0xc8] ss:$16 sps:$4 sm:$0xff]  }
 0x94a   : > { %v4370_v56 = vrot.slane %v4356_v41, %v7183_v10  ;;  %v4386_v24 = vrot.slane %v4372_v39, %v7183_v10  ;;  %v4363_v3 = vrot.slane %v4355_v20, %v7183_v10  ;;  %v4379_v28 = vrot.slane %v4371_v49, %v7183_v10  ;;  %v6060_v41 = vld [vmem:[#allocation19 + $0xec] ss:$16 sps:$4 sm:$0xff]   ;;  %v6055_v39 = vld [vmem:[#allocation19 + $0xe0] ss:$16 sps:$4 sm:$0xff]   ;;  %v6058_v20 = vld [vmem:[#allocation19 + $0xe8] ss:$16 sps:$4 sm:$0xff]  }
 0x94b   : > { %v6061_v49 = vld [vmem:[#allocation22 + $0x40] sm:$0xff]  }
 0x94c   : > { %v4389_v15 = vcombine.low %v4370_v56, %v4386_v24  ;;  %v4388_v33 = vcombine.high %v4363_v3, %v4379_v28  ;;  %v4387_v32 = vcombine.low %v4363_v3, %v4379_v28  ;;  %v4390_v4 = vcombine.high %v4370_v56, %v4386_v24  ;;  %v6062_v56 = vld [vmem:[#allocation22 + $0xc0] sm:$0xff]  }
 0x94e   : > { %4396 = vrot.lane.b32.xlu1 %v4389_v15, %s6637_s20  ;;  %4392 = vrot.lane.b32.xlu0 %v4388_v33, %s6635_s0  ;;  %v5525_v33 = vld [vmem:[#allocation16] ss:$0 sm:$0xff]  ;;  %s5231_s0 = scalar_lea.sflag [#allocation4], %s7099_s27  ;;  %s6522_s20 = scalar_lea.vmem %s6521_s21, 256 }
 0x952   : > { %4400 = vrot.lane.b32.xlu1 %v4390_v4, %s6636_s23  ;;  %v5526_v4 = vld [vmem:[#allocation17] ss:$0 sm:$0xff]  ;;  %s6516_s23 = scalar_lea.vmem %s7667_s28, 128 }
 0x953   : > { %p6517_p6 = scmp.ne.s32.totalorder %s7667_s28, %s6516_s23  ;;  %p6524_p9 = scmp.lt.s32.totalorder %s6522_s20, %s6516_s23 }
 0x955   : > { %p6518_p11 = pnand %p6517_p6, %p7777_p4  ;;  %p6525_p7 = por %p6524_p9, %p6523_p5 }
 0x957   : > { %p6519_p8 = pneg %p6518_p11 }
 0x959   : > { %p6526_p10 = pnand %p6525_p7, %p6519_p8 }
 0x9c0   : > { %v4397_v14 = vpop.permute.xlu1 %4396  ;;  %v4393_v35 = vpop.permute.xlu0 %4392 }
 0x9c1   : > { %v4403_v30 = vsel %vm2465_vm1, %v4387_v32, %v4393_v35 }
 0x9c2   : > { %v4405_v16 = vsel %vm4404_vm3, %v4403_v30, %v4397_v14  ;;  %v6063_v30 = vld [vmem:[#allocation22] sm:$0xff]  }
 0x9c4   : > { %v4401_v51 = vpop.permute.xlu1 %4400 }
 0x9c5   : > { %v4407_v10 = vsel %vm4406_vm4, %v4405_v16, %v4401_v51  ;;  %v6064_v51 = vld [vmem:[#allocation22 + $0x80] sm:$0xff]  }
 0x9c6   : > { %v4408_v7 = vpack.c.bf16 %v4407_v10, %v4407_v10  ;;  %v6065_v10 = vld [vmem:[#allocation22 + $0x48] sm:$0xff]  }
 0x9c8   : > { %5775 = vmatmul.mubr.bf16.vlgmr.msra.gmra.mrb[12].mxu0 %v4408_v7  ;;  %v6066_v7 = vld [vmem:[#allocation22 + $0xc8] sm:$0xff]  }
 0x9c9   : > { %4836 = vmatprep.mubr.bf16.mxu0 %v6633_v25  ;;  %v6019_v25 = vld [vmem:[#allocation19 + $0x20] ss:$16 sps:$4 sm:$0xff]   ;;  %4805 = vmatpush1.bf16.msra.mxu0 %v6016_v40 }
 0x9ca   : > { %4806 = vmatprep.subr.bf16.mxu0 %v6024_v5  ;;  %4766 = vmatpush1.bf16.msra.mxu1 %v6019_v25  ;;  %v6076_v40 = vld [vmem:[#allocation22 + $0x98] sm:$0xff]   ;;  %v6079_v5 = vld [vmem:[#allocation22 + $0x20] sm:$0xff]  }
 0x9cb   : > { %4767 = vmatprep.subr.bf16.mxu1 %v6027_v60  ;;  %v6080_v25 = vld [vmem:[#allocation22 + $0xa0] sm:$0xff]   ;;  %v6082_v60 = vld [vmem:[#allocation22 + $0xe8] sm:$0xff]  }
 0x9cd   : > { %4807 = vmatpush1.bf16.msra.mxu0 %v6022_v53  ;;  %v6081_v53 = vld [vmem:[#allocation22 + $0x68] sm:$0xff]  }
 0x9ce   : > { %4808 = vmatprep.subr.bf16.mxu0 %v6030_v34  ;;  %4768 = vmatpush1.bf16.msra.mxu1 %v6025_v61  ;;  %v6083_v34 = vld [vmem:[#allocation22 + $0x28] sm:$0xff]  }
 0x9cf   : > { %4769 = vmatprep.subr.bf16.mxu1 %v6033_v31  ;;  %v6084_v61 = vld [vmem:[#allocation22 + $0xa8] sm:$0xff]   ;;  %v6090_v31 = vld [vmem:[#allocation22 + $0xf8] sm:$0xff]  }
 0x9d1   : > { %4809 = vmatpush1.bf16.msra.mxu0 %v6028_v8  ;;  %v6085_v8 = vld [vmem:[#allocation22 + $0x70] sm:$0xff]  }
 0x9d2   : > { %4810 = vmatprep.subr.bf16.mxu0 %v6036_v12  ;;  %4770 = vmatpush1.bf16.msra.mxu1 %v6031_v19  ;;  %v6091_v12 = vld [vmem:[#allocation22 + $0x38] sm:$0xff]  }
 0x9d3   : > { %4771 = vmatprep.subr.bf16.mxu1 %v6039_v37  ;;  %v6092_v19 = vld [vmem:[#allocation22 + $0xb8] sm:$0xff]  }
 0x9d5   : > { %4811 = vmatpush1.bf16.msra.mxu0 %v6034_v11  ;;  %v4581_v11 = vld [vmem:[#allocation20] sm:$0xf] }
 0x9d6   : > { %4812 = vmatprep.subr.bf16.mxu0 %v6042_v45  ;;  %4772 = vmatpush1.bf16.msra.mxu1 %v6037_v52  ;;  %v4597_v52 = vsub.s32 3, %v7154_v42  ;;  %v4586_v37 = vrot.slane %v4581_v11, %v722_v43  ;;  %v4590_v45 = vrot.slane %v4581_v11, %v726_v44 }
 0x9d7   : > { %4773 = vmatprep.subr.bf16.mxu1 %v6045_v50 }
 0x9d8   : > { %v4598_v50 = vrot.slane %v4581_v11, %v4597_v52 }
 0x9d9   : > { %4813 = vmatpush1.bf16.msra.mxu0 %v6040_v23  ;;  %v4594_v23 = vrot.slane %v4581_v11, %v730_v9 }
 0x9da   : > { %4814 = vmatprep.subr.bf16.mxu0 %v6048_v47  ;;  %4774 = vmatpush1.bf16.msra.mxu1 %v6043_v22 }
 0x9db   : > { %4775 = vmatprep.subr.bf16.mxu1 %v6051_v58 }
 0x9dd   : > { %4815 = vmatpush1.bf16.msra.mxu0 %v6046_v26 }
 0x9de   : > { %4816 = vmatprep.subr.bf16.mxu0 %v6054_v36  ;;  %4776 = vmatpush1.bf16.msra.mxu1 %v6049_v27 }
 0x9df   : > { %4777 = vmatprep.subr.bf16.mxu1 %v6057_v29 }
 0x9e1   : > { %4817 = vmatpush1.bf16.msra.mxu0 %v6052_v48 }
 0x9e2   : > { %4818 = vmatprep.subr.bf16.mxu0 %v6060_v41  ;;  %4778 = vmatpush1.bf16.msra.mxu1 %v6055_v39 }
 0x9e3   : > { %5638 = vmatprep.subr.bf16.mxu1 %v6061_v49 }
 0x9e5   : > { %4819 = vmatpush1.bf16.msra.mxu0 %v6058_v20 }
 0x9e6   : > { %5660 = vmatprep.subr.bf16.mxu0 %v6062_v56 }
 0xa9b   : > { %v4514_v2 = vpop.f32.mrb[12].mxu0 }
 0xa9c   : > { %v4515_v57 = vadd.f32 %v5516_v0, %v4514_v2  ;;  %v5776_v1 = vpop.f32.mrb[13].mxu0  ;;  %v6067_v0 = vld [vmem:[#allocation22 + $0x8] sm:$0xff]  }
 0xa9d   : > { %v4517_v54 = vpop.f32.mrb[14].mxu0  ;;  %v6068_v2 = vld [vmem:[#allocation22 + $0x88] sm:$0xff]   ;;  %v6070_v1 = vld [vmem:[#allocation22 + $0xd0] sm:$0xff]  }
 0xa9e   : > { %v7647_v17 = vadd.f32 %v6121_v59, %v4515_v57  ;;  %v5777_v13 = vpop.f32.mrb[15].mxu0  ;;  %v6069_v57 = vld [vmem:[#allocation22 + $0x50] sm:$0xff]  }
 0xa9f   : > { %v6071_v54 = vld [vmem:[#allocation22 + $0x10] sm:$0xff]   ;;  %v6073_v13 = vld [vmem:[#allocation22 + $0x58] sm:$0xff]  }
 0xaa0   : > { %4523 = vadd.xlane.f32.xlu0 %v7647_v17  ;;  %v6072_v59 = vld [vmem:[#allocation22 + $0x90] sm:$0xff]  }
 0xb2d   : > { %v4524_v62 = vpop.xlane.xlu0 %4523 }
 0xb2e   : > { %v4525_v6 = vmul.f32 0.0078125, %v4524_v62  ;;  %v6086_v62 = vld [vmem:[#allocation22 + $0xf0] sm:$0xff]  }
 0xb30   : > { %v4526_v46 = vsub.f32 %v7647_v17, %v4525_v6  ;;  %v6087_v6 = vld [vmem:[#allocation22 + $0x30] sm:$0xff]  }
 0xb32   : > { %v4527_v63 = vmul.f32 %v4526_v46, %v4526_v46 }
 0xb34   : > { %4528 = vadd.xlane.f32.xlu1 %v4527_v63  ;;  %v6089_v63 = vld [vmem:[#allocation22 + $0x78] sm:$0xff]  }
 0xbc1   : > { %v4529_v24 = vpop.xlane.xlu1 %4528 }
 0xbc2   : > { %v4530_v3 = vmul.f32 0.0078125, %v4529_v24 }
 0xbc4   : > { %v4531_v28 = vadd.f32 1e-05, %v4530_v3 }
 0xbc6   : > { %6111 = vrsqrt.f32 %v4531_v28 }
 0xbd0   : > { %v6112_v15 = vpop.eup %6111 }
 0xbd1   : > { %v4533_v32 = vmul.f32 %v6112_v15, %v4526_v46  ;;  %v6088_v46 = vld [vmem:[#allocation22 + $0xb0] sm:$0xff]  }
 0xbd3   : > { %v4540_v14 = vmul.f32 %v5525_v33, %v4533_v32 }
 0xbd5   : > { %v4547_v35 = vadd.f32 %v5526_v4, %v4540_v14 }
 0xbd7   : > { %v4548_v16 = vpack.c.bf16 %v4547_v35, %v4547_v35 }
 0xbd9   : > { %4796 = vmatmul.mubr.bf16.vlgmr.msra.gmra.mrb[28].mxu1 %v4548_v16  ;;  %4837 = vmatmul.mubr.bf16.vlgmr.msra.gmra.mrb[16].mxu0 %v4548_v16 }
 0xbda   : > { %5639 = vmatpush3.bf16.msra.mxu1 %v6063_v30  ;;  %5661 = vmatpush3.bf16.msra.mxu0 %v6064_v51 }
 0xbdb   : > { %5640 = vmatprep.subr.bf16.mxu1 %v6065_v10  ;;  %5662 = vmatprep.subr.bf16.mxu0 %v6066_v7 }
 0xbde   : > { %5641 = vmatpush3.bf16.msra.mxu1 %v6067_v0  ;;  %5663 = vmatpush3.bf16.msra.mxu0 %v6068_v2 }
 0xbdf   : > { %5642 = vmatprep.subr.bf16.mxu1 %v6069_v57  ;;  %5664 = vmatprep.subr.bf16.mxu0 %v6070_v1 }
 0xbe2   : > { %5643 = vmatpush3.bf16.msra.mxu1 %v6071_v54  ;;  %5665 = vmatpush3.bf16.msra.mxu0 %v6072_v59 }
 0xbe3   : > { %5644 = vmatprep.subr.bf16.mxu1 %v6073_v13  ;;  %5666 = vmatprep.subr.bf16.mxu0 %v6074_v18 }
 0xbe6   : > { %5645 = vmatpush3.bf16.msra.mxu1 %v6075_v38  ;;  %5667 = vmatpush3.bf16.msra.mxu0 %v6076_v40 }
 0xbe7   : > { %5646 = vmatprep.subr.bf16.mxu1 %v6077_v55  ;;  %5668 = vmatprep.subr.bf16.mxu0 %v6078_v21 }
 0xbea   : > { %5647 = vmatpush3.bf16.msra.mxu1 %v6079_v5  ;;  %5669 = vmatpush3.bf16.msra.mxu0 %v6080_v25 }
 0xbeb   : > { %5648 = vmatprep.subr.bf16.mxu1 %v6081_v53  ;;  %5670 = vmatprep.subr.bf16.mxu0 %v6082_v60 }
 0xbee   : > { %5649 = vmatpush3.bf16.msra.mxu1 %v6083_v34  ;;  %5671 = vmatpush3.bf16.msra.mxu0 %v6084_v61 }
 0xbef   : > { %5650 = vmatprep.subr.bf16.mxu1 %v6085_v8  ;;  %5672 = vmatprep.subr.bf16.mxu0 %v6086_v62 }
 0xbf2   : > { %5651 = vmatpush3.bf16.msra.mxu1 %v6087_v6  ;;  %5673 = vmatpush3.bf16.msra.mxu0 %v6088_v46 }
 0xbf3   : > { %5652 = vmatprep.subr.bf16.mxu1 %v6089_v63  ;;  %5674 = vmatprep.subr.bf16.mxu0 %v6090_v31  ;;  %v5559_v31 = vld [vmem:[#allocation23] ss:$0 sm:$0xff] }
 0xbf6   : > { %5653 = vmatpush3.bf16.msra.mxu1 %v6091_v12  ;;  %5675 = vmatpush3.bf16.msra.mxu0 %v6092_v19 }
 0xcac   : > { %v4797_v47 = vpop.f32.mrb[28].mxu1  ;;  %v4838_v22 = vpop.f32.mrb[16].mxu0 }
 0xcad   : > { %v4798_v26 = vadd.f32 %v4797_v47, %v4586_v37  ;;  %v4839_v58 = vadd.f32 %v4838_v22, %v4594_v23  ;;  %v4799_v36 = vpop.f32.mrb[29].mxu1  ;;  %v4840_v27 = vpop.f32.mrb[17].mxu0 }
 0xcae   : > { %v4800_v48 = vadd.f32 %v4799_v36, %v4590_v45  ;;  %v4841_v29 = vadd.f32 %v4840_v27, %v4598_v50  ;;  %v4801_v41 = vpop.f32.mrb[30].mxu1  ;;  %v4842_v39 = vpop.f32.mrb[18].mxu0 }
 0xcaf   : > { %v4853_v20 = vmul.f32 0.044715, %v4798_v26  ;;  %v4855_v49 = vmul.f32 0.044715, %v4839_v58  ;;  %v4802_v3 = vpop.f32.mrb[31].mxu1  ;;  %v4843_v42 = vpop.f32.mrb[19].mxu0 }
 0xcb0   : > { %v4854_v56 = vmul.f32 0.044715, %v4800_v48  ;;  %v4856_v24 = vmul.f32 0.044715, %v4841_v29  ;;  %v4849_v44 = vmul.f32 0.7978846, %v4798_v26 }
 0xcb1   : > { %v4857_v43 = vmul.f32 %v4853_v20, %v4798_v26  ;;  %v4859_v9 = vmul.f32 %v4855_v49, %v4839_v58  ;;  %v4851_v32 = vmul.f32 0.7978846, %v4839_v58  ;;  %v4850_v14 = vmul.f32 0.7978846, %v4800_v48 }
 0xcb2   : > { %v4858_v15 = vmul.f32 %v4854_v56, %v4800_v48  ;;  %v4860_v33 = vmul.f32 %v4856_v24, %v4841_v29  ;;  %v4852_v51 = vmul.f32 0.7978846, %v4841_v29  ;;  %v4845_v59 = vmul.f32 0.5, %v4798_v26 }
 0xcb3   : > { %v4861_v28 = vadd.f32 1.0, %v4857_v43  ;;  %v4863_v4 = vadd.f32 1.0, %v4859_v9  ;;  %v4847_v38 = vmul.f32 0.5, %v4839_v58  ;;  %v4846_v40 = vmul.f32 0.5, %v4800_v48 }
 0xcb4   : > { %v4862_v30 = vadd.f32 1.0, %v4858_v15  ;;  %v4864_v16 = vadd.f32 1.0, %v4860_v33  ;;  %v4848_v21 = vmul.f32 0.5, %v4841_v29 }
 0xcb5   : > { %v4865_v35 = vmul.f32 %v4861_v28, %v4849_v44  ;;  %v4867_v10 = vmul.f32 %v4863_v4, %v4851_v32 }
 0xcb6   : > { %v4866_v7 = vmul.f32 %v4862_v30, %v4850_v14  ;;  %v4868_v0 = vmul.f32 %v4864_v16, %v4852_v51 }
 0xcb7   : > { %6113 = vtanh.f32 %v4865_v35 }
 0xcb8   : > { %6115 = vtanh.f32 %v4867_v10 }
 0xcb9   : > { %6117 = vtanh.f32 %v4866_v7 }
 0xcba   : > { %6119 = vtanh.f32 %v4868_v0 }
 0xcc1   : > { %v6114_v2 = vpop.eup %6113 }
 0xcc2   : > { %v6116_v57 = vpop.eup %6115  ;;  %v4873_v1 = vadd.f32 1.0, %v6114_v2 }
 0xcc3   : > { %v6118_v54 = vpop.eup %6117  ;;  %v4875_v13 = vadd.f32 1.0, %v6116_v57 }
 0xcc4   : > { %v6120_v18 = vpop.eup %6119  ;;  %v4874_v55 = vadd.f32 1.0, %v6118_v54  ;;  %v4877_v25 = vmul.f32 %v4873_v1, %v4845_v59 }
 0xcc5   : > { %v4876_v5 = vadd.f32 1.0, %v6120_v18  ;;  %v4879_v60 = vmul.f32 %v4875_v13, %v4847_v38 }
 0xcc6   : > { %v4878_v53 = vmul.f32 %v4874_v55, %v4846_v40  ;;  %v4881_v62 = vpack.c.bf16 %v4877_v25, %v4877_v25 }
 0xcc7   : > { %v4880_v34 = vmul.f32 %v4876_v5, %v4848_v21  ;;  %v4883_v6 = vpack.c.bf16 %v4879_v60, %v4879_v60 }
 0xcc8   : > { %v4882_v61 = vpack.c.bf16 %v4878_v53, %v4878_v53 }
 0xcc9   : > { %v4884_v8 = vpack.c.bf16 %v4880_v34, %v4880_v34 }
 0xcca   : > { %5180 = vmatprep.mubr.bf16.mxu1 %v4882_v61 }
 0xccb   : > { %5220 = vmatprep.mubr.bf16.mxu0 %v4884_v8  ;;  %5181 = vmatmul.mubr.bf16.vlgmr.msra.gmra.mrb[32].mxu1 %v4881_v62 }
 0xccc   : > { %5221 = vmatmul.mubr.bf16.vlgmr.msra.gmra.mrb[20].mxu0 %v4883_v6 }
 0xd9e   : > { %v5654_v46 = vpop.f32.mrb[32].mxu1 }
 0xd9f   : > { %v5676_v63 = vpop.f32.mrb[20].mxu0  ;;  %v5655_v12 = vpop.f32.mrb[33].mxu1 }
 0xda0   : > { %v5656_v19 = vadd.f32 %v5655_v12, %v5654_v46  ;;  %v5677_v11 = vpop.f32.mrb[21].mxu0  ;;  %v5657_v52 = vpop.f32.mrb[34].mxu1 }
 0xda1   : > { %v5678_v37 = vadd.f32 %v5677_v11, %v5676_v63  ;;  %v5679_v23 = vpop.f32.mrb[22].mxu0  ;;  %v5658_v45 = vpop.f32.mrb[35].mxu1 }
 0xda2   : > { %v5183_v50 = vadd.f32 %v5656_v19, %v5559_v31  ;;  %v5680_v47 = vpop.f32.mrb[23].mxu0 }
 0xda4   : > { %v5223_v22 = vadd.f32 %v5678_v37, %v5183_v50 }
 0xda6   : > { %v5228_v26 = vadd.f32 %v5223_v22, %v7647_v17 }
 0xda8   : > { %5229 = vst [vmem:[%s653_s19] sm:$0xff] %v5228_v26 }
 0xda9   : > { %6529 = shalt.err (!%p6526_p10)
}
 0xdaa   : > { %s6530_s27 = scalar_lea.hbm %s7665_s14, 128  ;;  %s6534_s24 = scalar_lea.hbm %s7776_s26, 256 }
 0xdab   : > { %p6531_p12 = scmp.ne.s32.totalorder %s7665_s14, %s6530_s27  ;;  %p6535_p3 = scmp.lt.u32.totalorder %s7665_s14, %s7776_s26 }
 0xdac   : > { %p6536_p2 = scmp.lt.u32.totalorder %s6534_s24, %s6530_s27  ;;  %p6538_p6 = scmp.lt.u32.totalorder %s6530_s27, %s7665_s14 }
 0xdad   : > { %p6532_p13 = pnand %p6531_p12, %p7777_p4 }
 0xdae   : > { %p6537_p0 = por %p6536_p2, %p6535_p3 }
 0xdaf   : > { %p6533_p1 = pneg %p6532_p13 }
 0xdb0   : > { %p6539_p11 = por %p6538_p6, %p6537_p0 }
 0xdb2   : > { %p6540_p8 = pnand %p6539_p11, %p6533_p1 }
 0xdb4   : > { %6543 = shalt.err (!%p6540_p8)
}
 0xdb5   : > { %5836 = dma.vmem_to_hbm [thread:$0]  (%p7777_p4), %s7667_s28, 128, %s7665_s14, %s5231_s0  }
 0xdb6 PF: > { %s7778_s23 = sld [smem:[#allocation35_spill]]  ;;  %p7779_p5 = scmp.ne.s32.totalorder %s7756_s3, 0 }
 0xdb7   : > { %p7780_p9 = scmp.ge.s32.totalorder %s6610_s16, 2 }
 0xdb9   : > { %p5883_p7 = pnand %p7780_p9, %p7779_p5 }
 0xdbc   : > { %s5256_s21 = sand.u32 1, %s7778_s23  }
 0xdbd   : > { %s5257_s20 = scalar_lea.sflag [#allocation4], %s5256_s21 }
 0xdbe   : > { %6593 = dma.done.wait (!%p5883_p7), %s5257_s20, 128  }
 0xdbf   : > { %6595 = vsyncadd (!%p5883_p7), %s5257_s20, 4294967168  ;;  %p34_p10 = scmp.ge.s32.totalorder %s7029_s25, 4   ;;  %s7781_s29 = smov %s6602_s30 }
 0xdc0   : > { %s7782_s30 = smov %s6606_s15  ;;  %s7783_s15 = smov %s7041_s1 }
 0xdc1   : > { %s7784_s16 = smov %s7029_s25  ;;  %36 = sbr.rel (!%p34_p10) target bundleno = 18 (0x12), region = 173 }
 0xdc8   :  { %5262 = vsyncpa [#allocation3], 1 }
 0xdc9   :  { %5264 = vsyncpa [#allocation3 + $0x1], 1 }
 0xdca   :  { %5265 = vsyncpa [#allocation6], 1 }
 0xdcb   :  { %5266 = vsyncpa [#allocation9], 1 }
 0xdcc   :  { %5267 = vsyncpa [#allocation12], 1 }
 0xdcd   :  { %5268 = vsyncpa [#allocation15], 1 }
 0xdce   :  { %5269 = vsyncpa [#allocation18], 1 }
 0xdcf   :  { %5270 = vsyncpa [#allocation21], 1 }
 0xdd0   :  { %5271 = vsyncpa [#allocation24], 1 }
 0xdd1   :  { %5272 = vsyncpa [#allocation4], 1 }
 0xdd2   :  { %5274 = vsyncpa [#allocation4 + $0x1], 1 }

</bundles_post_ra>
